<compile_context>
chip_gen: v5e
topology: v5e:2x2
jax: 0.10.0
libtpu: 0.0.40
codegen_flags: <defaults>
</compile_context>

<pallas_src>
import functools
import math

import jax
import jax.numpy as jnp
import numpy as np
from jax import lax
from jax.experimental import pallas as pl
from jax.experimental.pallas import tpu as pltpu


def _choose_tile_n(n, max_rows):
    """Largest divisor of n that is <= max_rows (prefer multiples of 8)."""
    if n <= max_rows:
        return n
    divs = [t for t in range(1, max_rows + 1) if n % t == 0]
    div8 = [t for t in divs if t % 8 == 0]
    return max(div8) if div8 else max(divs)


# -----------------------------------------------------------------------------
# Kernel 1: fused dual-branch attention with in-kernel gather + online softmax
#   per branch b:  q = x_b Wq_b^T + bq_b ; k = v = mem_b[idx] Wk_b^T + bk_b
#                  out_b = exp( softmax(q k^T / sqrt(D)) v / T )
# -----------------------------------------------------------------------------
def fused_attention(flat_idx, xq, wq_t, bq, wk_t, bk, memory_v1, memory_v2, *,
                    T, max_tile_rows=4096, vmem_limit_bytes=32 * 1024 * 1024):
    # max_tile_rows sizing (per the HBM/VMEM budget): ~4-8K rows on v7x
    # (64 MiB VMEM / 2 TCs), 16-32K rows on v5e/v6e (raise vmem_limit_bytes).
    _, B, D = xq.shape
    N = int(flat_idx.shape[0])
    tile_n = _choose_tile_n(N, max_tile_rows)
    n_chunks = N // tile_n
    scale = 1.0 / math.sqrt(D)
    inv_T = 1.0 / T

    def kernel(idx_ref, x_ref, wq_ref, bq_ref, wk_ref, bk_ref, m1_ref, m2_ref,
               o_ref, rows, q_s, m_s, l_s, acc_s, sem):
        b = pl.program_id(0)           # branch (0: A/v2, 1: B/v1)
        nj = pl.program_id(1)          # N-chunk (reduction axis)
        nc = pl.num_programs(1)
        slot = nj % 2
        nslot = 1 - slot

        def start_gather(chunk, slot_):
            # Per-row DMA gather of tile_n selected bank rows into slot_.
            # TODO(synk): at real CRD sizes coalesce contiguous idx runs /
            # larger descriptors; 512 B row DMAs are descriptor-latency bound.
            def issue(bank_ref):
                @pl.loop(0, tile_n)
                def _(i):
                    r = idx_ref[chunk * tile_n + i]
                    pltpu.make_async_copy(
                        bank_ref.at[pl.ds(r, 1), :],
                        rows.at[pl.ds(slot_ * tile_n + i, 1), :],
                        sem.at[slot_]).start()

            @pl.when(b == 0)
            def _():
                issue(m1_ref)

            @pl.when(b == 1)
            def _():
                issue(m2_ref)

        def wait_gather(slot_):
            @pl.loop(0, tile_n)
            def _(i):
                pltpu.make_async_copy(
                    m1_ref.at[pl.ds(0, 1), :],
                    rows.at[pl.ds(slot_ * tile_n + i, 1), :],
                    sem.at[slot_]).wait()

        @pl.when(nj == 0)
        def _():
            # Kick off chunk 0's gather, then project q while the DMAs fly.
            start_gather(0, 0)
            xb = x_ref[0].astype(jnp.bfloat16)
            q = jnp.dot(xb, wq_ref[0],
                        preferred_element_type=jnp.float32) + bq_ref[0]
            q_s[...] = (q * scale).astype(jnp.bfloat16)   # fold 1/sqrt(D) into q
            m_s[...] = jnp.full_like(m_s, -jnp.inf)
            l_s[...] = jnp.zeros_like(l_s)
            acc_s[...] = jnp.zeros_like(acc_s)

        # Prefetch the NEXT chunk's rows before waiting on the current one so
        # the gather DMA hides under this chunk's k-projection / matmuls.
        @pl.when(nj + 1 < nc)
        def _():
            start_gather(nj + 1, nslot)

        wait_gather(slot)

        row_base = slot * tile_n
        if tile_n % 8 == 0:
            row_base = pl.multiple_of(row_base, 8)
        rows_bf = rows[pl.ds(row_base, tile_n), :].astype(jnp.bfloat16)

        # key == value (the module reuses the key projection for the value);
        # cast to bf16 immediately so the f32 k dies before the score matmuls.
        kb = (jnp.dot(rows_bf, wk_ref[0], preferred_element_type=jnp.float32)
              + bk_ref[0]).astype(jnp.bfloat16)
        # q @ k^T without a materialized transpose: contract last dims.
        s = lax.dot_general(q_s[...], kb, (((1,), (1,)), ((), ())),
                            preferred_element_type=jnp.float32)

        # Online softmax across N-chunks.
        m_new = jnp.maximum(m_s[...], jnp.max(s, axis=-1, keepdims=True))
        alpha = jnp.exp(m_s[...] - m_new)
        p = jnp.exp(s - m_new)
        l_s[...] = alpha * l_s[...] + jnp.sum(p, axis=-1, keepdims=True)
        acc_s[...] = alpha * acc_s[...] + jnp.dot(
            p.astype(jnp.bfloat16), kb, preferred_element_type=jnp.float32)
        m_s[...] = m_new

        @pl.when(nj == nc - 1)
        def _():
            # Exact division (not approx reciprocal): the trailing exp(o/T)
            # with 1/T ~ 14.3 would amplify the ~2^-12 approximation error.
            o = acc_s[...] / l_s[...]
            o_ref[...] = jnp.exp(o * inv_T)[None]

    grid_spec = pltpu.PrefetchScalarGridSpec(
        num_scalar_prefetch=1,                                       # flat_idx -> SMEM
        grid=(2, n_chunks),
        in_specs=[
            pl.BlockSpec((1, B, D), lambda b, j, idx: (b, 0, 0)),    # stacked queries
            pl.BlockSpec((1, D, D), lambda b, j, idx: (b, 0, 0)),    # Wq^T per branch
            pl.BlockSpec((1, 1, D), lambda b, j, idx: (b, 0, 0)),    # bq per branch
            pl.BlockSpec((1, D, D), lambda b, j, idx: (b, 0, 0)),    # Wk^T per branch
            pl.BlockSpec((1, 1, D), lambda b, j, idx: (b, 0, 0)),    # bk per branch
            pl.BlockSpec(memory_space=pl.ANY),                       # memory_v1 (HBM)
            pl.BlockSpec(memory_space=pl.ANY),                       # memory_v2 (HBM)
        ],
        out_specs=pl.BlockSpec((1, B, D), lambda b, j, idx: (b, 0, 0)),
        scratch_shapes=[
            pltpu.VMEM((2 * tile_n, D), jnp.float32),   # double-buffered gathered rows
            pltpu.VMEM((B, D), jnp.bfloat16),           # scaled q (bf16)
            pltpu.VMEM((B, 1), jnp.float32),            # running max
            pltpu.VMEM((B, 1), jnp.float32),            # running sum
            pltpu.VMEM((B, D), jnp.float32),            # output accumulator
            pltpu.SemaphoreType.DMA((2,)),              # one semaphore per slot
        ],
    )

    # TODO(synk): on v7x use pltpu.CORE_PARALLEL on the branch axis (or split
    # the N axis across the 2 TCs); plain "parallel" is only a megacore hint
    # and a no-op on single-TC v5e/v6e.
    return pl.pallas_call(
        kernel,
        out_shape=jax.ShapeDtypeStruct((2, B, D), jnp.float32),
        grid_spec=grid_spec,
        compiler_params=pltpu.CompilerParams(
            dimension_semantics=("parallel", "arbitrary"),
            vmem_limit_bytes=vmem_limit_bytes),
    )(flat_idx, xq, wq_t, bq, wk_t, bk, memory_v1, memory_v2)


# -----------------------------------------------------------------------------
# Kernel 2: in-place momentum update + L2 row normalization of BOTH banks
#   pos = momentum * mem[y] + (1 - momentum) * v ;  mem[y] = pos / ||pos||_2
# Banks stay in HBM (aliased to outputs); only the B selected rows move.
# TODO(synk): fuse this under kernel 1's chunk loop to hide the DMA latency.
# -----------------------------------------------------------------------------
def fused_memory_update(memory_v1, memory_v2, v1, v2, y, keep, momentum):
    n_data, D = memory_v1.shape
    B = v1.shape[0]
    eps = 1e-12

    def kernel(y_ref, keep_ref, v1_ref, v2_ref, m1_ref, m2_ref, o1_ref, o2_ref,
               rows1, rows2, sem):
        # Hoist all SMEM scalar reads before any DMA wait (waits break the
        # sst->sld forwarding path).
        ys = [y_ref[i] for i in range(B)]
        keeps = [keep_ref[i] for i in range(B)]

        # Gather the B selected rows of both banks (all DMAs in flight at once).
        for i in range(B):
            pltpu.make_async_copy(m1_ref.at[pl.ds(ys[i], 1), :],
                                  rows1.at[pl.ds(i, 1), :], sem.at[0, i]).start()
            pltpu.make_async_copy(m2_ref.at[pl.ds(ys[i], 1), :],
                                  rows2.at[pl.ds(i, 1), :], sem.at[1, i]).start()
        for i in range(B):
            pltpu.make_async_copy(m1_ref.at[pl.ds(0, 1), :],
                                  rows1.at[pl.ds(i, 1), :], sem.at[0, i]).wait()
            pltpu.make_async_copy(m2_ref.at[pl.ds(0, 1), :],
                                  rows2.at[pl.ds(i, 1), :], sem.at[1, i]).wait()

        # Momentum update + L2 normalize (rsqrt -> EUP slot; eps avoids NaN).
        pos1 = momentum * rows1[...] + (1.0 - momentum) * v1_ref[...]
        pos2 = momentum * rows2[...] + (1.0 - momentum) * v2_ref[...]
        rows1[...] = pos1 * lax.rsqrt(jnp.sum(pos1 * pos1, axis=1, keepdims=True) + eps)
        rows2[...] = pos2 * lax.rsqrt(jnp.sum(pos2 * pos2, axis=1, keepdims=True) + eps)

        # Scatter back with ALL rows overlapped.  Duplicate labels were deduped
        # host-side (keep==1 only on the last occurrence), so no two DMAs hit
        # the same bank row and index_copy_'s whole-row semantics are kept.
        for i in range(B):
            @pl.when(keeps[i] == 1)
            def _(i=i):
                pltpu.make_async_copy(rows1.at[pl.ds(i, 1), :],
                                      o1_ref.at[pl.ds(ys[i], 1), :],
                                      sem.at[0, i]).start()
                pltpu.make_async_copy(rows2.at[pl.ds(i, 1), :],
                                      o2_ref.at[pl.ds(ys[i], 1), :],
                                      sem.at[1, i]).start()
        for i in range(B):
            @pl.when(keeps[i] == 1)
            def _(i=i):
                pltpu.make_async_copy(rows1.at[pl.ds(i, 1), :],
                                      o1_ref.at[pl.ds(0, 1), :],
                                      sem.at[0, i]).wait()
                pltpu.make_async_copy(rows2.at[pl.ds(i, 1), :],
                                      o2_ref.at[pl.ds(0, 1), :],
                                      sem.at[1, i]).wait()

    return pl.pallas_call(
        kernel,
        out_shape=(jax.ShapeDtypeStruct((n_data, D), jnp.float32),
                   jax.ShapeDtypeStruct((n_data, D), jnp.float32)),
        grid=(1,),
        in_specs=[
            pl.BlockSpec(memory_space=pltpu.MemorySpace.SMEM),   # y (B,) int32
            pl.BlockSpec(memory_space=pltpu.MemorySpace.SMEM),   # keep (B,) int32
            pl.BlockSpec((B, D), lambda i: (0, 0)),              # v1
            pl.BlockSpec((B, D), lambda i: (0, 0)),              # v2
            pl.BlockSpec(memory_space=pl.ANY),                   # memory_v1 (HBM)
            pl.BlockSpec(memory_space=pl.ANY),                   # memory_v2 (HBM)
        ],
        out_specs=(pl.BlockSpec(memory_space=pl.ANY),
                   pl.BlockSpec(memory_space=pl.ANY)),
        scratch_shapes=[pltpu.VMEM((B, D), jnp.float32),
                        pltpu.VMEM((B, D), jnp.float32),
                        pltpu.SemaphoreType.DMA((2, B))],
        input_output_aliases={4: 0, 5: 1},                       # banks in place
    )(y, keep, v1, v2, memory_v1, memory_v2)


# -----------------------------------------------------------------------------
# Full forward (thin JAX glue around the two kernels), run under jit.
# -----------------------------------------------------------------------------
def contrast_memory_forward(v1, v2, y, idx, memory_v1, memory_v2, params, *,
                            T, momentum, max_tile_rows=4096):
    n_data, rep_dim = memory_v1.shape

    flat_idx = idx.reshape(-1).astype(jnp.int32)   # gathered in-kernel from HBM

    # Stack branches: 0 = branch A (query v2, memory_v1 rows, layers A) -> out_v2
    #                 1 = branch B (query v1, memory_v2 rows, layers B) -> out_v1
    xq = jnp.stack([v2, v1])
    wq_t = jnp.stack([params["WqA_t"], params["WqB_t"]]).astype(jnp.bfloat16)
    bq = jnp.stack([params["bqA"], params["bqB"]])
    wk_t = jnp.stack([params["WkA_t"], params["WkB_t"]]).astype(jnp.bfloat16)
    bk = jnp.stack([params["bkA"], params["bkB"]])

    out = fused_attention(flat_idx, xq, wq_t, bq, wk_t, bk,
                          memory_v1, memory_v2,
                          T=T, max_tile_rows=max_tile_rows)
    out_v2, out_v1 = out[0], out[1]

    # First-call normalization constants: Z = mean(out) * n_data.
    # TODO(synk): the original freezes Z in the params buffer after the first
    # batch (and prints it); we recompute it per call instead.
    Z_v1 = jnp.mean(out_v1) * n_data
    Z_v2 = jnp.mean(out_v2) * n_data
    out_v1 = (out_v1 / Z_v1)[..., None]   # (B, rep_dim, 1)
    out_v2 = (out_v2 / Z_v2)[..., None]   # (B, rep_dim, 1)

    # Dedupe flags: keep only the LAST occurrence of each label (matches the
    # "last copy wins" behaviour of index_copy_ with duplicate indices) so the
    # in-kernel scatter can run fully overlapped without same-row races.
    eq = y[:, None] == y[None, :]
    has_later_dup = jnp.triu(eq, k=1).any(axis=1)
    keep = jnp.where(has_later_dup, 0, 1).astype(jnp.int32)

    # Memory bank updates (the no_grad block), in place on the aliased banks.
    new_memory_v1, new_memory_v2 = fused_memory_update(
        memory_v1, memory_v2, v1, v2, y, keep, momentum)

    return out_v1, out_v2, new_memory_v1, new_memory_v2


# -----------------------------------------------------------------------------
# Deterministic setup + single run
# -----------------------------------------------------------------------------
if __name__ == "__main__":
    rep_dim = 128
    n_data = 64
    K = 15          # -> B*(K+1) = 128 gathered rows per branch
    T = 0.07
    momentum = 0.5
    B = 8

    key = jax.random.PRNGKey(0)
    keys = jax.random.split(key, 16)

    # memory buffers: uniform in [-stdv, stdv], stdv = 1/sqrt(rep_dim/3)
    stdv = 1.0 / math.sqrt(rep_dim / 3)
    memory_v1 = jax.random.uniform(keys[0], (n_data, rep_dim), jnp.float32, -stdv, stdv)
    memory_v2 = jax.random.uniform(keys[1], (n_data, rep_dim), jnp.float32, -stdv, stdv)

    # nn.Linear(rep_dim, rep_dim) params, uniform(-1/sqrt(D), 1/sqrt(D)).
    # PyTorch Linear computes x @ W^T + b; W is pre-transposed once here.
    bound = 1.0 / math.sqrt(rep_dim)

    def make_linear(k):
        kw, kb = jax.random.split(k)
        W = jax.random.uniform(kw, (rep_dim, rep_dim), jnp.float32, -bound, bound)
        b = jax.random.uniform(kb, (1, rep_dim), jnp.float32, -bound, bound)
        return W.T, b  # (in, out), (1, out)

    WqA_t, bqA = make_linear(keys[2])
    WkA_t, bkA = make_linear(keys[3])
    _WvA_t, _bvA = make_linear(keys[4])   # value_layer_A exists but unused in forward
    WqB_t, bqB = make_linear(keys[5])
    WkB_t, bkB = make_linear(keys[6])
    _WvB_t, _bvB = make_linear(keys[7])   # value_layer_B exists but unused in forward

    params = dict(WqA_t=WqA_t, bqA=bqA, WkA_t=WkA_t, bkA=bkA,
                  WqB_t=WqB_t, bqB=bqB, WkB_t=WkB_t, bkB=bkB)

    # inputs
    v1 = jax.random.normal(keys[8], (B, rep_dim), jnp.float32)
    v2 = jax.random.normal(keys[9], (B, rep_dim), jnp.float32)
    y = jax.random.randint(keys[10], (B,), 0, n_data)
    # TODO(synk): AliasMethod multinomial sampling is a host-side stateful-RNG
    # loop; we pass a deterministic idx instead (the module's `idx is not None`
    # path), with idx[:, 0] = y like the sampled path.
    idx = jax.random.randint(keys[11], (B, K + 1), 0, n_data)
    idx = idx.at[:, 0].set(y)

    # Host copies (banks are donated below) for a pure-numpy check of kernel 2.
    m1_host = np.asarray(memory_v1)
    m2_host = np.asarray(memory_v2)
    v1_host = np.asarray(v1)
    v2_host = np.asarray(v2)
    y_host = np.asarray(y)

    # max_tile_rows=64 exercises the multi-chunk online-softmax + prefetch path.
    fwd = jax.jit(
        functools.partial(contrast_memory_forward, T=T, momentum=momentum,
                          max_tile_rows=64),
        donate_argnums=(4, 5))   # donate memory banks -> true in-place update

    out_v1, out_v2, new_m1, new_m2 = fwd(v1, v2, y, idx, memory_v1, memory_v2, params)
    jax.block_until_ready((out_v1, out_v2, new_m1, new_m2))

    assert out_v1.shape == (B, rep_dim, 1) and out_v2.shape == (B, rep_dim, 1)
    assert new_m1.shape == (n_data, rep_dim) and new_m2.shape == (n_data, rep_dim)
    assert bool(jnp.isfinite(out_v1).all()) and bool(jnp.isfinite(out_v2).all())
    assert bool(jnp.isfinite(new_m1).all()) and bool(jnp.isfinite(new_m2).all())

    # Reference check of the (pure f32) memory-bank update, last-write-wins.
    def ref_update(mem, v, labels):
        out = mem.copy()
        pos = momentum * mem[labels] + (1.0 - momentum) * v
        pos = pos / np.sqrt((pos * pos).sum(axis=1, keepdims=True))
        for i in range(labels.shape[0]):
            out[labels[i]] = pos[i]
        return out

    np.testing.assert_allclose(np.asarray(new_m1),
                               ref_update(m1_host, v1_host, y_host),
                               rtol=2e-3, atol=2e-3)
    np.testing.assert_allclose(np.asarray(new_m2),
                               ref_update(m2_host, v2_host, y_host),
                               rtol=2e-3, atol=2e-3)

    print("KERNEL_OK")
</pallas_src>

<mosaic_0001>
module attributes {stable_mosaic.version = 11 : i64} {
  func.func @kernel(%arg0: i32, %arg1: i32, %arg2: memref<128xi32, #tpu.memory_space<smem>>, %arg3: memref<1x8x128xf32, #tpu.memory_space<vmem>>, %arg4: memref<1x128x128xbf16, #tpu.memory_space<vmem>>, %arg5: memref<1x1x128xf32, #tpu.memory_space<vmem>>, %arg6: memref<1x128x128xbf16, #tpu.memory_space<vmem>>, %arg7: memref<1x1x128xf32, #tpu.memory_space<vmem>>, %arg8: memref<64x128xf32, #tpu.memory_space<any>>, %arg9: memref<64x128xf32, #tpu.memory_space<any>>, %arg10: memref<1x8x128xf32, #tpu.memory_space<vmem>>, %arg11: memref<128x128xf32, #tpu.memory_space<vmem>>, %arg12: memref<8x128xbf16, #tpu.memory_space<vmem>>, %arg13: memref<8x1xf32, #tpu.memory_space<vmem>>, %arg14: memref<8x1xf32, #tpu.memory_space<vmem>>, %arg15: memref<8x128xf32, #tpu.memory_space<vmem>>, %arg16: memref<2x!tpu.dma_semaphore, #tpu.memory_space<semaphore_mem>>) attributes {dimension_semantics = [#tpu.dimension_semantics<parallel>, #tpu.dimension_semantics<arbitrary>], iteration_bounds = array<i64: 2, 2>, scalar_prefetch = 1 : i64, scratch_operands = 6 : i64, tpu.core_type = #tpu.core_type<tc>, window_params = [{transform_indices = @transform_0, window_bounds = array<i64: 1, 8, 128>}, {transform_indices = @transform_1, window_bounds = array<i64: 1, 128, 128>}, {transform_indices = @transform_2, window_bounds = array<i64: 1, 1, 128>}, {transform_indices = @transform_3, window_bounds = array<i64: 1, 128, 128>}, {transform_indices = @transform_4, window_bounds = array<i64: 1, 1, 128>}, {}, {}, {transform_indices = @transform_7, window_bounds = array<i64: 1, 8, 128>}]} {
    %c2_i32 = arith.constant 2 : i32
    %c0_i32 = arith.constant 0 : i32
    %0 = arith.cmpi eq, %c2_i32, %c0_i32 : i32
    %c1_i32 = arith.constant 1 : i32
    %1 = arith.select %0, %c1_i32, %c2_i32 : i32
    %2 = arith.remsi %arg1, %1 : i32
    %c0_i32_0 = arith.constant 0 : i32
    %3 = arith.cmpi ne, %2, %c0_i32_0 : i32
    %c0_i32_1 = arith.constant 0 : i32
    %4 = arith.cmpi slt, %2, %c0_i32_1 : i32
    %c0_i32_2 = arith.constant 0 : i32
    %5 = arith.cmpi slt, %1, %c0_i32_2 : i32
    %6 = arith.xori %4, %5 : i1
    %7 = arith.andi %6, %3 : i1
    %8 = arith.addi %2, %1 : i32
    %9 = arith.select %7, %8, %2 : i32
    %c1_i32_3 = arith.constant 1 : i32
    %10 = arith.subi %c1_i32_3, %9 : i32
    %c0_i32_4 = arith.constant 0 : i32
    %11 = arith.cmpi eq, %arg1, %c0_i32_4 : i32
    %12 = arith.extui %11 : i1 to i32
    %c0_i32_5 = arith.constant 0 : i32
    %13 = arith.cmpi ne, %12, %c0_i32_5 : i32
    scf.if %13 {
      %c0_i32_41 = arith.constant 0 : i32
      %61 = arith.cmpi eq, %arg0, %c0_i32_41 : i32
      %62 = arith.extui %61 : i1 to i32
      %c0_i32_42 = arith.constant 0 : i32
      %63 = arith.cmpi ne, %62, %c0_i32_42 : i32
      scf.if %63 {
        %c0_i32_67 = arith.constant 0 : i32
        %c64_i32_68 = arith.constant 64 : i32
        %87 = arith.addi %c0_i32_67, %c64_i32_68 : i32
        %c1_i32_69 = arith.constant 1 : i32
        scf.for %arg17 = %c0_i32_67 to %87 step %c1_i32_69  : i32 {
          %c1_i32_71 = arith.constant 1 : i32
          %88 = arith.muli %arg17, %c1_i32_71 : i32
          %c0_i32_72 = arith.constant 0 : i32
          %89 = arith.addi %c0_i32_72, %88 : i32
          %c0_i32_73 = arith.constant 0 : i32
          %90 = arith.addi %c0_i32_73, %89 : i32
          %91 = arith.index_cast %90 : i32 to index
          %92 = memref.load %arg2[%91] : memref<128xi32, #tpu.memory_space<smem>>
          %c0_i32_74 = arith.constant 0 : i32
          %93 = arith.addi %c0_i32_74, %89 : i32
          %c0_i32_75 = arith.constant 0 : i32
          %c0_i32_76 = arith.constant 0 : i32
          %94 = tpu.memref_slice %arg8[%92, %c0_i32_76] : memref<64x128xf32, #tpu.memory_space<any>> -> memref<1x128xf32, #tpu.memory_space<any>>
          %c0_i32_77 = arith.constant 0 : i32
          %95 = tpu.memref_slice %arg11[%93, %c0_i32_77] : memref<128x128xf32, #tpu.memory_space<vmem>> -> memref<1x128xf32, #tpu.memory_space<vmem>>
          %96 = tpu.memref_slice %arg16[%c0_i32_75] : memref<2x!tpu.dma_semaphore, #tpu.memory_space<semaphore_mem>> -> memref<1x!tpu.dma_semaphore, #tpu.memory_space<semaphore_mem>>
          %97 = tpu.memref_squeeze %96 : memref<1x!tpu.dma_semaphore, #tpu.memory_space<semaphore_mem>> -> memref<!tpu.dma_semaphore, #tpu.memory_space<semaphore_mem>>
          tpu.enqueue_dma source(%94 : memref<1x128xf32, #tpu.memory_space<any>>) target(%95 : memref<1x128xf32, #tpu.memory_space<vmem>>) target_semaphore(%97 : memref<!tpu.dma_semaphore, #tpu.memory_space<semaphore_mem>>)
        }
        %c64_i32_70 = arith.constant 64 : i32
      } else {
      }
      %c1_i32_43 = arith.constant 1 : i32
      %64 = arith.cmpi eq, %arg0, %c1_i32_43 : i32
      %65 = arith.extui %64 : i1 to i32
      %c0_i32_44 = arith.constant 0 : i32
      %66 = arith.cmpi ne, %65, %c0_i32_44 : i32
      scf.if %66 {
        %c0_i32_67 = arith.constant 0 : i32
        %c64_i32_68 = arith.constant 64 : i32
        %87 = arith.addi %c0_i32_67, %c64_i32_68 : i32
        %c1_i32_69 = arith.constant 1 : i32
        scf.for %arg17 = %c0_i32_67 to %87 step %c1_i32_69  : i32 {
          %c1_i32_71 = arith.constant 1 : i32
          %88 = arith.muli %arg17, %c1_i32_71 : i32
          %c0_i32_72 = arith.constant 0 : i32
          %89 = arith.addi %c0_i32_72, %88 : i32
          %c0_i32_73 = arith.constant 0 : i32
          %90 = arith.addi %c0_i32_73, %89 : i32
          %91 = arith.index_cast %90 : i32 to index
          %92 = memref.load %arg2[%91] : memref<128xi32, #tpu.memory_space<smem>>
          %c0_i32_74 = arith.constant 0 : i32
          %93 = arith.addi %c0_i32_74, %89 : i32
          %c0_i32_75 = arith.constant 0 : i32
          %c0_i32_76 = arith.constant 0 : i32
          %94 = tpu.memref_slice %arg9[%92, %c0_i32_76] : memref<64x128xf32, #tpu.memory_space<any>> -> memref<1x128xf32, #tpu.memory_space<any>>
          %c0_i32_77 = arith.constant 0 : i32
          %95 = tpu.memref_slice %arg11[%93, %c0_i32_77] : memref<128x128xf32, #tpu.memory_space<vmem>> -> memref<1x128xf32, #tpu.memory_space<vmem>>
          %96 = tpu.memref_slice %arg16[%c0_i32_75] : memref<2x!tpu.dma_semaphore, #tpu.memory_space<semaphore_mem>> -> memref<1x!tpu.dma_semaphore, #tpu.memory_space<semaphore_mem>>
          %97 = tpu.memref_squeeze %96 : memref<1x!tpu.dma_semaphore, #tpu.memory_space<semaphore_mem>> -> memref<!tpu.dma_semaphore, #tpu.memory_space<semaphore_mem>>
          tpu.enqueue_dma source(%94 : memref<1x128xf32, #tpu.memory_space<any>>) target(%95 : memref<1x128xf32, #tpu.memory_space<vmem>>) target_semaphore(%97 : memref<!tpu.dma_semaphore, #tpu.memory_space<semaphore_mem>>)
        }
        %c64_i32_70 = arith.constant 64 : i32
      } else {
      }
      %c0_45 = arith.constant 0 : index
      %c0_46 = arith.constant 0 : index
      %c0_47 = arith.constant 0 : index
      %67 = vector.load %arg3[%c0_45, %c0_46, %c0_47] : memref<1x8x128xf32, #tpu.memory_space<vmem>>, vector<1x8x128xf32>
      %68 = vector.shape_cast %67 : vector<1x8x128xf32> to vector<8x128xf32>
      %69 = arith.truncf %68 : vector<8x128xf32> to vector<8x128xbf16>
      %c0_48 = arith.constant 0 : index
      %c0_49 = arith.constant 0 : index
      %c0_50 = arith.constant 0 : index
      %70 = vector.load %arg4[%c0_48, %c0_49, %c0_50] : memref<1x128x128xbf16, #tpu.memory_space<vmem>>, vector<1x128x128xbf16>
      %71 = vector.shape_cast %70 : vector<1x128x128xbf16> to vector<128x128xbf16>
      %cst_51 = arith.constant dense<0.000000e+00> : vector<8x128xf32>
      %72 = tpu.matmul %69, %71, %cst_51 {dimension_numbers = #tpu.dot_dimension_numbers<[1], [0], [0], [1], [0, 0, 1, 1], [], []>} : vector<8x128xbf16>, vector<128x128xbf16>, vector<8x128xf32> -> vector<8x128xf32>
      %c0_52 = arith.constant 0 : index
      %c0_53 = arith.constant 0 : index
      %c0_54 = arith.constant 0 : index
      %73 = vector.load %arg5[%c0_52, %c0_53, %c0_54] : memref<1x1x128xf32, #tpu.memory_space<vmem>>, vector<1x1x128xf32>
      %74 = vector.shape_cast %73 : vector<1x1x128xf32> to vector<1x128xf32>
      %75 = vector.broadcast %74 : vector<1x128xf32> to vector<8x128xf32>
      %76 = arith.addf %72, %75 : vector<8x128xf32>
      %cst_55 = arith.constant 0.0883883461 : f32
      %77 = vector.broadcast %cst_55 : f32 to vector<8x128xf32>
      %78 = arith.mulf %76, %77 : vector<8x128xf32>
      %79 = arith.truncf %78 : vector<8x128xf32> to vector<8x128xbf16>
      %c0_56 = arith.constant 0 : index
      %c0_57 = arith.constant 0 : index
      %80 = vector.load %arg12[%c0_56, %c0_57] : memref<8x128xbf16, #tpu.memory_space<vmem>>, vector<8x128xbf16>
      tpu.vector_store %arg12[%c0_56, %c0_57], %79 {strides = array<i32>} : memref<8x128xbf16, #tpu.memory_space<vmem>>, vector<8x128xbf16>,
      %cst_58 = arith.constant 0xFF800000 : f32
      %81 = vector.broadcast %cst_58 : f32 to vector<8x1xf32>
      %c0_59 = arith.constant 0 : index
      %c0_60 = arith.constant 0 : index
      %82 = vector.load %arg13[%c0_59, %c0_60] : memref<8x1xf32, #tpu.memory_space<vmem>>, vector<8x1xf32>
      tpu.vector_store %arg13[%c0_59, %c0_60], %81 {strides = array<i32>} : memref<8x1xf32, #tpu.memory_space<vmem>>, vector<8x1xf32>,
      %cst_61 = arith.constant 0.000000e+00 : f32
      %83 = vector.broadcast %cst_61 : f32 to vector<8x1xf32>
      %c0_62 = arith.constant 0 : index
      %c0_63 = arith.constant 0 : index
      %84 = vector.load %arg14[%c0_62, %c0_63] : memref<8x1xf32, #tpu.memory_space<vmem>>, vector<8x1xf32>
      tpu.vector_store %arg14[%c0_62, %c0_63], %83 {strides = array<i32>} : memref<8x1xf32, #tpu.memory_space<vmem>>, vector<8x1xf32>,
      %cst_64 = arith.constant 0.000000e+00 : f32
      %85 = vector.broadcast %cst_64 : f32 to vector<8x128xf32>
      %c0_65 = arith.constant 0 : index
      %c0_66 = arith.constant 0 : index
      %86 = vector.load %arg15[%c0_65, %c0_66] : memref<8x128xf32, #tpu.memory_space<vmem>>, vector<8x128xf32>
      tpu.vector_store %arg15[%c0_65, %c0_66], %85 {strides = array<i32>} : memref<8x128xf32, #tpu.memory_space<vmem>>, vector<8x128xf32>,
    } else {
    }
    %c1_i32_6 = arith.constant 1 : i32
    %14 = arith.addi %arg1, %c1_i32_6 : i32
    %c2_i32_7 = arith.constant 2 : i32
    %15 = arith.cmpi slt, %14, %c2_i32_7 : i32
    %16 = arith.extui %15 : i1 to i32
    %c0_i32_8 = arith.constant 0 : i32
    %17 = arith.cmpi ne, %16, %c0_i32_8 : i32
    scf.if %17 {
      %c1_i32_41 = arith.constant 1 : i32
      %61 = arith.addi %arg1, %c1_i32_41 : i32
      %c0_i32_42 = arith.constant 0 : i32
      %62 = arith.cmpi eq, %arg0, %c0_i32_42 : i32
      %63 = arith.extui %62 : i1 to i32
      %c0_i32_43 = arith.constant 0 : i32
      %64 = arith.cmpi ne, %63, %c0_i32_43 : i32
      scf.if %64 {
        %c0_i32_46 = arith.constant 0 : i32
        %c64_i32_47 = arith.constant 64 : i32
        %68 = arith.addi %c0_i32_46, %c64_i32_47 : i32
        %c1_i32_48 = arith.constant 1 : i32
        scf.for %arg17 = %c0_i32_46 to %68 step %c1_i32_48  : i32 {
          %c1_i32_50 = arith.constant 1 : i32
          %69 = arith.muli %arg17, %c1_i32_50 : i32
          %c0_i32_51 = arith.constant 0 : i32
          %70 = arith.addi %c0_i32_51, %69 : i32
          %c64_i32_52 = arith.constant 64 : i32
          %71 = arith.muli %61, %c64_i32_52 : i32
          %72 = arith.addi %71, %70 : i32
          %73 = arith.index_cast %72 : i32 to index
          %74 = memref.load %arg2[%73] : memref<128xi32, #tpu.memory_space<smem>>
          %c64_i32_53 = arith.constant 64 : i32
          %75 = arith.muli %10, %c64_i32_53 : i32
          %76 = arith.addi %75, %70 : i32
          %c0_i32_54 = arith.constant 0 : i32
          %77 = tpu.memref_slice %arg8[%74, %c0_i32_54] : memref<64x128xf32, #tpu.memory_space<any>> -> memref<1x128xf32, #tpu.memory_space<any>>
          %c0_i32_55 = arith.constant 0 : i32
          %78 = tpu.memref_slice %arg11[%76, %c0_i32_55] : memref<128x128xf32, #tpu.memory_space<vmem>> -> memref<1x128xf32, #tpu.memory_space<vmem>>
          %79 = tpu.memref_slice %arg16[%10] : memref<2x!tpu.dma_semaphore, #tpu.memory_space<semaphore_mem>> -> memref<1x!tpu.dma_semaphore, #tpu.memory_space<semaphore_mem>>
          %80 = tpu.memref_squeeze %79 : memref<1x!tpu.dma_semaphore, #tpu.memory_space<semaphore_mem>> -> memref<!tpu.dma_semaphore, #tpu.memory_space<semaphore_mem>>
          tpu.enqueue_dma source(%77 : memref<1x128xf32, #tpu.memory_space<any>>) target(%78 : memref<1x128xf32, #tpu.memory_space<vmem>>) target_semaphore(%80 : memref<!tpu.dma_semaphore, #tpu.memory_space<semaphore_mem>>)
        }
        %c64_i32_49 = arith.constant 64 : i32
      } else {
      }
      %c1_i32_44 = arith.constant 1 : i32
      %65 = arith.cmpi eq, %arg0, %c1_i32_44 : i32
      %66 = arith.extui %65 : i1 to i32
      %c0_i32_45 = arith.constant 0 : i32
      %67 = arith.cmpi ne, %66, %c0_i32_45 : i32
      scf.if %67 {
        %c0_i32_46 = arith.constant 0 : i32
        %c64_i32_47 = arith.constant 64 : i32
        %68 = arith.addi %c0_i32_46, %c64_i32_47 : i32
        %c1_i32_48 = arith.constant 1 : i32
        scf.for %arg17 = %c0_i32_46 to %68 step %c1_i32_48  : i32 {
          %c1_i32_50 = arith.constant 1 : i32
          %69 = arith.muli %arg17, %c1_i32_50 : i32
          %c0_i32_51 = arith.constant 0 : i32
          %70 = arith.addi %c0_i32_51, %69 : i32
          %c64_i32_52 = arith.constant 64 : i32
          %71 = arith.muli %61, %c64_i32_52 : i32
          %72 = arith.addi %71, %70 : i32
          %73 = arith.index_cast %72 : i32 to index
          %74 = memref.load %arg2[%73] : memref<128xi32, #tpu.memory_space<smem>>
          %c64_i32_53 = arith.constant 64 : i32
          %75 = arith.muli %10, %c64_i32_53 : i32
          %76 = arith.addi %75, %70 : i32
          %c0_i32_54 = arith.constant 0 : i32
          %77 = tpu.memref_slice %arg9[%74, %c0_i32_54] : memref<64x128xf32, #tpu.memory_space<any>> -> memref<1x128xf32, #tpu.memory_space<any>>
          %c0_i32_55 = arith.constant 0 : i32
          %78 = tpu.memref_slice %arg11[%76, %c0_i32_55] : memref<128x128xf32, #tpu.memory_space<vmem>> -> memref<1x128xf32, #tpu.memory_space<vmem>>
          %79 = tpu.memref_slice %arg16[%10] : memref<2x!tpu.dma_semaphore, #tpu.memory_space<semaphore_mem>> -> memref<1x!tpu.dma_semaphore, #tpu.memory_space<semaphore_mem>>
          %80 = tpu.memref_squeeze %79 : memref<1x!tpu.dma_semaphore, #tpu.memory_space<semaphore_mem>> -> memref<!tpu.dma_semaphore, #tpu.memory_space<semaphore_mem>>
          tpu.enqueue_dma source(%77 : memref<1x128xf32, #tpu.memory_space<any>>) target(%78 : memref<1x128xf32, #tpu.memory_space<vmem>>) target_semaphore(%80 : memref<!tpu.dma_semaphore, #tpu.memory_space<semaphore_mem>>)
        }
        %c64_i32_49 = arith.constant 64 : i32
      } else {
      }
    } else {
    }
    %c0_i32_9 = arith.constant 0 : i32
    %c64_i32 = arith.constant 64 : i32
    %18 = arith.addi %c0_i32_9, %c64_i32 : i32
    %c1_i32_10 = arith.constant 1 : i32
    scf.for %arg17 = %c0_i32_9 to %18 step %c1_i32_10  : i32 {
      %c1_i32_41 = arith.constant 1 : i32
      %61 = arith.muli %arg17, %c1_i32_41 : i32
      %c0_i32_42 = arith.constant 0 : i32
      %62 = arith.addi %c0_i32_42, %61 : i32
      %c64_i32_43 = arith.constant 64 : i32
      %63 = arith.muli %9, %c64_i32_43 : i32
      %64 = arith.addi %63, %62 : i32
      %c0_i32_44 = arith.constant 0 : i32
      %c0_i32_45 = arith.constant 0 : i32
      %65 = tpu.memref_slice %arg8[%c0_i32_44, %c0_i32_45] : memref<64x128xf32, #tpu.memory_space<any>> -> memref<1x128xf32, #tpu.memory_space<any>>
      %c0_i32_46 = arith.constant 0 : i32
      %66 = tpu.memref_slice %arg11[%64, %c0_i32_46] : memref<128x128xf32, #tpu.memory_space<vmem>> -> memref<1x128xf32, #tpu.memory_space<vmem>>
      %67 = tpu.memref_slice %arg16[%9] : memref<2x!tpu.dma_semaphore, #tpu.memory_space<semaphore_mem>> -> memref<1x!tpu.dma_semaphore, #tpu.memory_space<semaphore_mem>>
      %68 = tpu.memref_squeeze %67 : memref<1x!tpu.dma_semaphore, #tpu.memory_space<semaphore_mem>> -> memref<!tpu.dma_semaphore, #tpu.memory_space<semaphore_mem>>
      tpu.wait_dma2 semaphore(%68 : memref<!tpu.dma_semaphore, #tpu.memory_space<semaphore_mem>>) src(%65 : memref<1x128xf32, #tpu.memory_space<any>>) dst(%66 : memref<1x128xf32, #tpu.memory_space<vmem>>)
    }
    %c64_i32_11 = arith.constant 64 : i32
    %c64_i32_12 = arith.constant 64 : i32
    %19 = arith.muli %9, %c64_i32_12 : i32
    %20 = tpu.assume_multiple %19, 8 : i32
    %21 = arith.index_cast %20 : i32 to index
    %c0 = arith.constant 0 : index
    %22 = vector.load %arg11[%21, %c0] : memref<128x128xf32, #tpu.memory_space<vmem>>, vector<64x128xf32>
    %23 = arith.truncf %22 : vector<64x128xf32> to vector<64x128xbf16>
    %c0_13 = arith.constant 0 : index
    %c0_14 = arith.constant 0 : index
    %c0_15 = arith.constant 0 : index
    %24 = vector.load %arg6[%c0_13, %c0_14, %c0_15] : memref<1x128x128xbf16, #tpu.memory_space<vmem>>, vector<1x128x128xbf16>
    %25 = vector.shape_cast %24 : vector<1x128x128xbf16> to vector<128x128xbf16>
    %cst = arith.constant dense<0.000000e+00> : vector<64x128xf32>
    %26 = tpu.matmul %23, %25, %cst {dimension_numbers = #tpu.dot_dimension_numbers<[1], [0], [0], [1], [0, 0, 1, 1], [], []>} : vector<64x128xbf16>, vector<128x128xbf16>, vector<64x128xf32> -> vector<64x128xf32>
    %c0_16 = arith.constant 0 : index
    %c0_17 = arith.constant 0 : index
    %c0_18 = arith.constant 0 : index
    %27 = vector.load %arg7[%c0_16, %c0_17, %c0_18] : memref<1x1x128xf32, #tpu.memory_space<vmem>>, vector<1x1x128xf32>
    %28 = vector.shape_cast %27 : vector<1x1x128xf32> to vector<1x128xf32>
    %29 = vector.broadcast %28 : vector<1x128xf32> to vector<64x128xf32>
    %30 = arith.addf %26, %29 : vector<64x128xf32>
    %31 = arith.truncf %30 : vector<64x128xf32> to vector<64x128xbf16>
    %c0_19 = arith.constant 0 : index
    %c0_20 = arith.constant 0 : index
    %32 = vector.load %arg12[%c0_19, %c0_20] : memref<8x128xbf16, #tpu.memory_space<vmem>>, vector<8x128xbf16>
    %cst_21 = arith.constant dense<0.000000e+00> : vector<8x64xf32>
    %33 = tpu.matmul %32, %31, %cst_21 {dimension_numbers = #tpu.dot_dimension_numbers<[1], [1], [0], [0], [0, 0, 1, 0], [], []>} : vector<8x128xbf16>, vector<64x128xbf16>, vector<8x64xf32> -> vector<8x64xf32>
    %c0_22 = arith.constant 0 : index
    %c0_23 = arith.constant 0 : index
    %34 = vector.load %arg13[%c0_22, %c0_23] : memref<8x1xf32, #tpu.memory_space<vmem>>, vector<8x1xf32>
    %cst_24 = arith.constant dense<0xFF800000> : vector<8xf32>
    %35 = vector.multi_reduction <maximumf>, %33, %cst_24 [1] : vector<8x64xf32> to vector<8xf32>
    %36 = vector.shape_cast %35 : vector<8xf32> to vector<8x1xf32>
    %37 = arith.maximumf %34, %36 : vector<8x1xf32>
    %c0_25 = arith.constant 0 : index
    %c0_26 = arith.constant 0 : index
    %38 = vector.load %arg13[%c0_25, %c0_26] : memref<8x1xf32, #tpu.memory_space<vmem>>, vector<8x1xf32>
    %39 = arith.subf %38, %37 : vector<8x1xf32>
    %40 = math.exp %39 : vector<8x1xf32>
    %41 = vector.broadcast %37 : vector<8x1xf32> to vector<8x64xf32>
    %42 = arith.subf %33, %41 : vector<8x64xf32>
    %43 = math.exp %42 : vector<8x64xf32>
    %c0_27 = arith.constant 0 : index
    %c0_28 = arith.constant 0 : index
    %44 = vector.load %arg14[%c0_27, %c0_28] : memref<8x1xf32, #tpu.memory_space<vmem>>, vector<8x1xf32>
    %45 = arith.mulf %40, %44 : vector<8x1xf32>
    %cst_29 = arith.constant dense<0.000000e+00> : vector<8xf32>
    %46 = vector.multi_reduction <add>, %43, %cst_29 [1] : vector<8x64xf32> to vector<8xf32>
    %47 = vector.shape_cast %46 : vector<8xf32> to vector<8x1xf32>
    %48 = arith.addf %45, %47 : vector<8x1xf32>
    %c0_30 = arith.constant 0 : index
    %c0_31 = arith.constant 0 : index
    %49 = vector.load %arg14[%c0_30, %c0_31] : memref<8x1xf32, #tpu.memory_space<vmem>>, vector<8x1xf32>
    tpu.vector_store %arg14[%c0_30, %c0_31], %48 {strides = array<i32>} : memref<8x1xf32, #tpu.memory_space<vmem>>, vector<8x1xf32>,
    %c0_32 = arith.constant 0 : index
    %c0_33 = arith.constant 0 : index
    %50 = vector.load %arg15[%c0_32, %c0_33] : memref<8x128xf32, #tpu.memory_space<vmem>>, vector<8x128xf32>
    %51 = vector.broadcast %40 : vector<8x1xf32> to vector<8x128xf32>
    %52 = arith.mulf %51, %50 : vector<8x128xf32>
    %53 = arith.truncf %43 : vector<8x64xf32> to vector<8x64xbf16>
    %cst_34 = arith.constant dense<0.000000e+00> : vector<8x128xf32>
    %54 = tpu.matmul %53, %31, %cst_34 {dimension_numbers = #tpu.dot_dimension_numbers<[1], [0], [0], [1], [0, 0, 1, 1], [], []>} : vector<8x64xbf16>, vector<64x128xbf16>, vector<8x128xf32> -> vector<8x128xf32>
    %55 = arith.addf %52, %54 : vector<8x128xf32>
    %c0_35 = arith.constant 0 : index
    %c0_36 = arith.constant 0 : index
    %56 = vector.load %arg15[%c0_35, %c0_36] : memref<8x128xf32, #tpu.memory_space<vmem>>, vector<8x128xf32>
    tpu.vector_store %arg15[%c0_35, %c0_36], %55 {strides = array<i32>} : memref<8x128xf32, #tpu.memory_space<vmem>>, vector<8x128xf32>,
    %c0_37 = arith.constant 0 : index
    %c0_38 = arith.constant 0 : index
    %57 = vector.load %arg13[%c0_37, %c0_38] : memref<8x1xf32, #tpu.memory_space<vmem>>, vector<8x1xf32>
    tpu.vector_store %arg13[%c0_37, %c0_38], %37 {strides = array<i32>} : memref<8x1xf32, #tpu.memory_space<vmem>>, vector<8x1xf32>,
    %c1_i32_39 = arith.constant 1 : i32
    %58 = arith.cmpi eq, %arg1, %c1_i32_39 : i32
    %59 = arith.extui %58 : i1 to i32
    %c0_i32_40 = arith.constant 0 : i32
    %60 = arith.cmpi ne, %59, %c0_i32_40 : i32
    scf.if %60 {
      %c0_41 = arith.constant 0 : index
      %c0_42 = arith.constant 0 : index
      %61 = vector.load %arg15[%c0_41, %c0_42] : memref<8x128xf32, #tpu.memory_space<vmem>>, vector<8x128xf32>
      %c0_43 = arith.constant 0 : index
      %c0_44 = arith.constant 0 : index
      %62 = vector.load %arg14[%c0_43, %c0_44] : memref<8x1xf32, #tpu.memory_space<vmem>>, vector<8x1xf32>
      %63 = vector.broadcast %62 : vector<8x1xf32> to vector<8x128xf32>
      %64 = arith.divf %61, %63 : vector<8x128xf32>
      %cst_45 = arith.constant 14.2857141 : f32
      %65 = vector.broadcast %cst_45 : f32 to vector<8x128xf32>
      %66 = arith.mulf %64, %65 : vector<8x128xf32>
      %67 = math.exp %66 : vector<8x128xf32>
      %68 = vector.shape_cast %67 : vector<8x128xf32> to vector<1x8x128xf32>
      %c0_46 = arith.constant 0 : index
      %c0_47 = arith.constant 0 : index
      %c0_48 = arith.constant 0 : index
      %69 = vector.load %arg10[%c0_46, %c0_47, %c0_48] : memref<1x8x128xf32, #tpu.memory_space<vmem>>, vector<1x8x128xf32>
      tpu.vector_store %arg10[%c0_46, %c0_47, %c0_48], %68 {strides = array<i32>} : memref<1x8x128xf32, #tpu.memory_space<vmem>>, vector<1x8x128xf32>,
    } else {
    }
    return
  }
  func.func @transform_0(%arg0: i32, %arg1: i32, %arg2: memref<128xi32, #tpu.memory_space<smem>>) -> (i32, i32, i32) {
    %c0_i32 = arith.constant 0 : i32
    %c0_i32_0 = arith.constant 0 : i32
    %c0_i32_1 = arith.constant 0 : i32
    return %arg0, %c0_i32, %c0_i32_0 : i32, i32, i32
  }
  func.func @transform_1(%arg0: i32, %arg1: i32, %arg2: memref<128xi32, #tpu.memory_space<smem>>) -> (i32, i32, i32) {
    %c0_i32 = arith.constant 0 : i32
    %c0_i32_0 = arith.constant 0 : i32
    %c0_i32_1 = arith.constant 0 : i32
    return %arg0, %c0_i32, %c0_i32_0 : i32, i32, i32
  }
  func.func @transform_2(%arg0: i32, %arg1: i32, %arg2: memref<128xi32, #tpu.memory_space<smem>>) -> (i32, i32, i32) {
    %c0_i32 = arith.constant 0 : i32
    %c0_i32_0 = arith.constant 0 : i32
    %c0_i32_1 = arith.constant 0 : i32
    return %arg0, %c0_i32, %c0_i32_0 : i32, i32, i32
  }
  func.func @transform_3(%arg0: i32, %arg1: i32, %arg2: memref<128xi32, #tpu.memory_space<smem>>) -> (i32, i32, i32) {
    %c0_i32 = arith.constant 0 : i32
    %c0_i32_0 = arith.constant 0 : i32
    %c0_i32_1 = arith.constant 0 : i32
    return %arg0, %c0_i32, %c0_i32_0 : i32, i32, i32
  }
  func.func @transform_4(%arg0: i32, %arg1: i32, %arg2: memref<128xi32, #tpu.memory_space<smem>>) -> (i32, i32, i32) {
    %c0_i32 = arith.constant 0 : i32
    %c0_i32_0 = arith.constant 0 : i32
    %c0_i32_1 = arith.constant 0 : i32
    return %arg0, %c0_i32, %c0_i32_0 : i32, i32, i32
  }
  func.func @transform_7(%arg0: i32, %arg1: i32, %arg2: memref<128xi32, #tpu.memory_space<smem>>) -> (i32, i32, i32) {
    %c0_i32 = arith.constant 0 : i32
    %c0_i32_0 = arith.constant 0 : i32
    %c0_i32_1 = arith.constant 0 : i32
    return %arg0, %c0_i32, %c0_i32_0 : i32, i32, i32
  }
}

module attributes {stable_mosaic.version = 11 : i64} {
  func.func @kernel(%arg0: i32, %arg1: memref<8xi32, #tpu.memory_space<smem>>, %arg2: memref<8xi32, #tpu.memory_space<smem>>, %arg3: memref<8x128xf32, #tpu.memory_space<vmem>>, %arg4: memref<8x128xf32, #tpu.memory_space<vmem>>, %arg5: memref<64x128xf32, #tpu.memory_space<any>>, %arg6: memref<64x128xf32, #tpu.memory_space<any>>, %arg7: memref<64x128xf32, #tpu.memory_space<any>>, %arg8: memref<64x128xf32, #tpu.memory_space<any>>, %arg9: memref<8x128xf32, #tpu.memory_space<vmem>>, %arg10: memref<8x128xf32, #tpu.memory_space<vmem>>, %arg11: memref<2x8x!tpu.dma_semaphore, #tpu.memory_space<semaphore_mem>>) attributes {dimension_semantics = [#tpu.dimension_semantics<arbitrary>], iteration_bounds = array<i64: 1>, scalar_prefetch = 0 : i64, scratch_operands = 3 : i64, tpu.core_type = #tpu.core_type<tc>, window_params = [{transform_indices = @transform_0, window_bounds = array<i64: 8>}, {transform_indices = @transform_1, window_bounds = array<i64: 8>}, {pipeline_mode = #tpu.pipeline_mode<synchronous>, transform_indices = @transform_2, window_bounds = array<i64: 8, 128>}, {pipeline_mode = #tpu.pipeline_mode<synchronous>, transform_indices = @transform_3, window_bounds = array<i64: 8, 128>}, {}, {}, {}, {}]} {
    %c0 = arith.constant 0 : index
    %0 = memref.load %arg1[%c0] : memref<8xi32, #tpu.memory_space<smem>>
    %c1 = arith.constant 1 : index
    %1 = memref.load %arg1[%c1] : memref<8xi32, #tpu.memory_space<smem>>
    %c2 = arith.constant 2 : index
    %2 = memref.load %arg1[%c2] : memref<8xi32, #tpu.memory_space<smem>>
    %c3 = arith.constant 3 : index
    %3 = memref.load %arg1[%c3] : memref<8xi32, #tpu.memory_space<smem>>
    %c4 = arith.constant 4 : index
    %4 = memref.load %arg1[%c4] : memref<8xi32, #tpu.memory_space<smem>>
    %c5 = arith.constant 5 : index
    %5 = memref.load %arg1[%c5] : memref<8xi32, #tpu.memory_space<smem>>
    %c6 = arith.constant 6 : index
    %6 = memref.load %arg1[%c6] : memref<8xi32, #tpu.memory_space<smem>>
    %c7 = arith.constant 7 : index
    %7 = memref.load %arg1[%c7] : memref<8xi32, #tpu.memory_space<smem>>
    %c0_0 = arith.constant 0 : index
    %8 = memref.load %arg2[%c0_0] : memref<8xi32, #tpu.memory_space<smem>>
    %c1_1 = arith.constant 1 : index
    %9 = memref.load %arg2[%c1_1] : memref<8xi32, #tpu.memory_space<smem>>
    %c2_2 = arith.constant 2 : index
    %10 = memref.load %arg2[%c2_2] : memref<8xi32, #tpu.memory_space<smem>>
    %c3_3 = arith.constant 3 : index
    %11 = memref.load %arg2[%c3_3] : memref<8xi32, #tpu.memory_space<smem>>
    %c4_4 = arith.constant 4 : index
    %12 = memref.load %arg2[%c4_4] : memref<8xi32, #tpu.memory_space<smem>>
    %c5_5 = arith.constant 5 : index
    %13 = memref.load %arg2[%c5_5] : memref<8xi32, #tpu.memory_space<smem>>
    %c6_6 = arith.constant 6 : index
    %14 = memref.load %arg2[%c6_6] : memref<8xi32, #tpu.memory_space<smem>>
    %c7_7 = arith.constant 7 : index
    %15 = memref.load %arg2[%c7_7] : memref<8xi32, #tpu.memory_space<smem>>
    %c0_i32 = arith.constant 0 : i32
    %c0_i32_8 = arith.constant 0 : i32
    %c0_i32_9 = arith.constant 0 : i32
    %16 = tpu.memref_slice %arg5[%0, %c0_i32_9] : memref<64x128xf32, #tpu.memory_space<any>> -> memref<1x128xf32, #tpu.memory_space<any>>
    %c0_i32_10 = arith.constant 0 : i32
    %c0_i32_11 = arith.constant 0 : i32
    %17 = tpu.memref_slice %arg9[%c0_i32_10, %c0_i32_11] : memref<8x128xf32, #tpu.memory_space<vmem>> -> memref<1x128xf32, #tpu.memory_space<vmem>>
    %18 = tpu.memref_slice %arg11[%c0_i32, %c0_i32_8] : memref<2x8x!tpu.dma_semaphore, #tpu.memory_space<semaphore_mem>> -> memref<1x1x!tpu.dma_semaphore, #tpu.memory_space<semaphore_mem>>
    %19 = tpu.memref_squeeze %18 : memref<1x1x!tpu.dma_semaphore, #tpu.memory_space<semaphore_mem>> -> memref<!tpu.dma_semaphore, #tpu.memory_space<semaphore_mem>>
    tpu.enqueue_dma source(%16 : memref<1x128xf32, #tpu.memory_space<any>>) target(%17 : memref<1x128xf32, #tpu.memory_space<vmem>>) target_semaphore(%19 : memref<!tpu.dma_semaphore, #tpu.memory_space<semaphore_mem>>)
    %c1_i32 = arith.constant 1 : i32
    %c0_i32_12 = arith.constant 0 : i32
    %c0_i32_13 = arith.constant 0 : i32
    %20 = tpu.memref_slice %arg6[%0, %c0_i32_13] : memref<64x128xf32, #tpu.memory_space<any>> -> memref<1x128xf32, #tpu.memory_space<any>>
    %c0_i32_14 = arith.constant 0 : i32
    %c0_i32_15 = arith.constant 0 : i32
    %21 = tpu.memref_slice %arg10[%c0_i32_14, %c0_i32_15] : memref<8x128xf32, #tpu.memory_space<vmem>> -> memref<1x128xf32, #tpu.memory_space<vmem>>
    %22 = tpu.memref_slice %arg11[%c1_i32, %c0_i32_12] : memref<2x8x!tpu.dma_semaphore, #tpu.memory_space<semaphore_mem>> -> memref<1x1x!tpu.dma_semaphore, #tpu.memory_space<semaphore_mem>>
    %23 = tpu.memref_squeeze %22 : memref<1x1x!tpu.dma_semaphore, #tpu.memory_space<semaphore_mem>> -> memref<!tpu.dma_semaphore, #tpu.memory_space<semaphore_mem>>
    tpu.enqueue_dma source(%20 : memref<1x128xf32, #tpu.memory_space<any>>) target(%21 : memref<1x128xf32, #tpu.memory_space<vmem>>) target_semaphore(%23 : memref<!tpu.dma_semaphore, #tpu.memory_space<semaphore_mem>>)
    %c0_i32_16 = arith.constant 0 : i32
    %c1_i32_17 = arith.constant 1 : i32
    %c0_i32_18 = arith.constant 0 : i32
    %24 = tpu.memref_slice %arg5[%1, %c0_i32_18] : memref<64x128xf32, #tpu.memory_space<any>> -> memref<1x128xf32, #tpu.memory_space<any>>
    %c1_i32_19 = arith.constant 1 : i32
    %c0_i32_20 = arith.constant 0 : i32
    %25 = tpu.memref_slice %arg9[%c1_i32_19, %c0_i32_20] : memref<8x128xf32, #tpu.memory_space<vmem>> -> memref<1x128xf32, #tpu.memory_space<vmem>>
    %26 = tpu.memref_slice %arg11[%c0_i32_16, %c1_i32_17] : memref<2x8x!tpu.dma_semaphore, #tpu.memory_space<semaphore_mem>> -> memref<1x1x!tpu.dma_semaphore, #tpu.memory_space<semaphore_mem>>
    %27 = tpu.memref_squeeze %26 : memref<1x1x!tpu.dma_semaphore, #tpu.memory_space<semaphore_mem>> -> memref<!tpu.dma_semaphore, #tpu.memory_space<semaphore_mem>>
    tpu.enqueue_dma source(%24 : memref<1x128xf32, #tpu.memory_space<any>>) target(%25 : memref<1x128xf32, #tpu.memory_space<vmem>>) target_semaphore(%27 : memref<!tpu.dma_semaphore, #tpu.memory_space<semaphore_mem>>)
    %c1_i32_21 = arith.constant 1 : i32
    %c1_i32_22 = arith.constant 1 : i32
    %c0_i32_23 = arith.constant 0 : i32
    %28 = tpu.memref_slice %arg6[%1, %c0_i32_23] : memref<64x128xf32, #tpu.memory_space<any>> -> memref<1x128xf32, #tpu.memory_space<any>>
    %c1_i32_24 = arith.constant 1 : i32
    %c0_i32_25 = arith.constant 0 : i32
    %29 = tpu.memref_slice %arg10[%c1_i32_24, %c0_i32_25] : memref<8x128xf32, #tpu.memory_space<vmem>> -> memref<1x128xf32, #tpu.memory_space<vmem>>
    %30 = tpu.memref_slice %arg11[%c1_i32_21, %c1_i32_22] : memref<2x8x!tpu.dma_semaphore, #tpu.memory_space<semaphore_mem>> -> memref<1x1x!tpu.dma_semaphore, #tpu.memory_space<semaphore_mem>>
    %31 = tpu.memref_squeeze %30 : memref<1x1x!tpu.dma_semaphore, #tpu.memory_space<semaphore_mem>> -> memref<!tpu.dma_semaphore, #tpu.memory_space<semaphore_mem>>
    tpu.enqueue_dma source(%28 : memref<1x128xf32, #tpu.memory_space<any>>) target(%29 : memref<1x128xf32, #tpu.memory_space<vmem>>) target_semaphore(%31 : memref<!tpu.dma_semaphore, #tpu.memory_space<semaphore_mem>>)
    %c0_i32_26 = arith.constant 0 : i32
    %c2_i32 = arith.constant 2 : i32
    %c0_i32_27 = arith.constant 0 : i32
    %32 = tpu.memref_slice %arg5[%2, %c0_i32_27] : memref<64x128xf32, #tpu.memory_space<any>> -> memref<1x128xf32, #tpu.memory_space<any>>
    %c2_i32_28 = arith.constant 2 : i32
    %c0_i32_29 = arith.constant 0 : i32
    %33 = tpu.memref_slice %arg9[%c2_i32_28, %c0_i32_29] : memref<8x128xf32, #tpu.memory_space<vmem>> -> memref<1x128xf32, #tpu.memory_space<vmem>>
    %34 = tpu.memref_slice %arg11[%c0_i32_26, %c2_i32] : memref<2x8x!tpu.dma_semaphore, #tpu.memory_space<semaphore_mem>> -> memref<1x1x!tpu.dma_semaphore, #tpu.memory_space<semaphore_mem>>
    %35 = tpu.memref_squeeze %34 : memref<1x1x!tpu.dma_semaphore, #tpu.memory_space<semaphore_mem>> -> memref<!tpu.dma_semaphore, #tpu.memory_space<semaphore_mem>>
    tpu.enqueue_dma source(%32 : memref<1x128xf32, #tpu.memory_space<any>>) target(%33 : memref<1x128xf32, #tpu.memory_space<vmem>>) target_semaphore(%35 : memref<!tpu.dma_semaphore, #tpu.memory_space<semaphore_mem>>)
    %c1_i32_30 = arith.constant 1 : i32
    %c2_i32_31 = arith.constant 2 : i32
    %c0_i32_32 = arith.constant 0 : i32
    %36 = tpu.memref_slice %arg6[%2, %c0_i32_32] : memref<64x128xf32, #tpu.memory_space<any>> -> memref<1x128xf32, #tpu.memory_space<any>>
    %c2_i32_33 = arith.constant 2 : i32
    %c0_i32_34 = arith.constant 0 : i32
    %37 = tpu.memref_slice %arg10[%c2_i32_33, %c0_i32_34] : memref<8x128xf32, #tpu.memory_space<vmem>> -> memref<1x128xf32, #tpu.memory_space<vmem>>
    %38 = tpu.memref_slice %arg11[%c1_i32_30, %c2_i32_31] : memref<2x8x!tpu.dma_semaphore, #tpu.memory_space<semaphore_mem>> -> memref<1x1x!tpu.dma_semaphore, #tpu.memory_space<semaphore_mem>>
    %39 = tpu.memref_squeeze %38 : memref<1x1x!tpu.dma_semaphore, #tpu.memory_space<semaphore_mem>> -> memref<!tpu.dma_semaphore, #tpu.memory_space<semaphore_mem>>
    tpu.enqueue_dma source(%36 : memref<1x128xf32, #tpu.memory_space<any>>) target(%37 : memref<1x128xf32, #tpu.memory_space<vmem>>) target_semaphore(%39 : memref<!tpu.dma_semaphore, #tpu.memory_space<semaphore_mem>>)
    %c0_i32_35 = arith.constant 0 : i32
    %c3_i32 = arith.constant 3 : i32
    %c0_i32_36 = arith.constant 0 : i32
    %40 = tpu.memref_slice %arg5[%3, %c0_i32_36] : memref<64x128xf32, #tpu.memory_space<any>> -> memref<1x128xf32, #tpu.memory_space<any>>
    %c3_i32_37 = arith.constant 3 : i32
    %c0_i32_38 = arith.constant 0 : i32
    %41 = tpu.memref_slice %arg9[%c3_i32_37, %c0_i32_38] : memref<8x128xf32, #tpu.memory_space<vmem>> -> memref<1x128xf32, #tpu.memory_space<vmem>>
    %42 = tpu.memref_slice %arg11[%c0_i32_35, %c3_i32] : memref<2x8x!tpu.dma_semaphore, #tpu.memory_space<semaphore_mem>> -> memref<1x1x!tpu.dma_semaphore, #tpu.memory_space<semaphore_mem>>
    %43 = tpu.memref_squeeze %42 : memref<1x1x!tpu.dma_semaphore, #tpu.memory_space<semaphore_mem>> -> memref<!tpu.dma_semaphore, #tpu.memory_space<semaphore_mem>>
    tpu.enqueue_dma source(%40 : memref<1x128xf32, #tpu.memory_space<any>>) target(%41 : memref<1x128xf32, #tpu.memory_space<vmem>>) target_semaphore(%43 : memref<!tpu.dma_semaphore, #tpu.memory_space<semaphore_mem>>)
    %c1_i32_39 = arith.constant 1 : i32
    %c3_i32_40 = arith.constant 3 : i32
    %c0_i32_41 = arith.constant 0 : i32
    %44 = tpu.memref_slice %arg6[%3, %c0_i32_41] : memref<64x128xf32, #tpu.memory_space<any>> -> memref<1x128xf32, #tpu.memory_space<any>>
    %c3_i32_42 = arith.constant 3 : i32
    %c0_i32_43 = arith.constant 0 : i32
    %45 = tpu.memref_slice %arg10[%c3_i32_42, %c0_i32_43] : memref<8x128xf32, #tpu.memory_space<vmem>> -> memref<1x128xf32, #tpu.memory_space<vmem>>
    %46 = tpu.memref_slice %arg11[%c1_i32_39, %c3_i32_40] : memref<2x8x!tpu.dma_semaphore, #tpu.memory_space<semaphore_mem>> -> memref<1x1x!tpu.dma_semaphore, #tpu.memory_space<semaphore_mem>>
    %47 = tpu.memref_squeeze %46 : memref<1x1x!tpu.dma_semaphore, #tpu.memory_space<semaphore_mem>> -> memref<!tpu.dma_semaphore, #tpu.memory_space<semaphore_mem>>
    tpu.enqueue_dma source(%44 : memref<1x128xf32, #tpu.memory_space<any>>) target(%45 : memref<1x128xf32, #tpu.memory_space<vmem>>) target_semaphore(%47 : memref<!tpu.dma_semaphore, #tpu.memory_space<semaphore_mem>>)
    %c0_i32_44 = arith.constant 0 : i32
    %c4_i32 = arith.constant 4 : i32
    %c0_i32_45 = arith.constant 0 : i32
    %48 = tpu.memref_slice %arg5[%4, %c0_i32_45] : memref<64x128xf32, #tpu.memory_space<any>> -> memref<1x128xf32, #tpu.memory_space<any>>
    %c4_i32_46 = arith.constant 4 : i32
    %c0_i32_47 = arith.constant 0 : i32
    %49 = tpu.memref_slice %arg9[%c4_i32_46, %c0_i32_47] : memref<8x128xf32, #tpu.memory_space<vmem>> -> memref<1x128xf32, #tpu.memory_space<vmem>>
    %50 = tpu.memref_slice %arg11[%c0_i32_44, %c4_i32] : memref<2x8x!tpu.dma_semaphore, #tpu.memory_space<semaphore_mem>> -> memref<1x1x!tpu.dma_semaphore, #tpu.memory_space<semaphore_mem>>
    %51 = tpu.memref_squeeze %50 : memref<1x1x!tpu.dma_semaphore, #tpu.memory_space<semaphore_mem>> -> memref<!tpu.dma_semaphore, #tpu.memory_space<semaphore_mem>>
    tpu.enqueue_dma source(%48 : memref<1x128xf32, #tpu.memory_space<any>>) target(%49 : memref<1x128xf32, #tpu.memory_space<vmem>>) target_semaphore(%51 : memref<!tpu.dma_semaphore, #tpu.memory_space<semaphore_mem>>)
    %c1_i32_48 = arith.constant 1 : i32
    %c4_i32_49 = arith.constant 4 : i32
    %c0_i32_50 = arith.constant 0 : i32
    %52 = tpu.memref_slice %arg6[%4, %c0_i32_50] : memref<64x128xf32, #tpu.memory_space<any>> -> memref<1x128xf32, #tpu.memory_space<any>>
    %c4_i32_51 = arith.constant 4 : i32
    %c0_i32_52 = arith.constant 0 : i32
    %53 = tpu.memref_slice %arg10[%c4_i32_51, %c0_i32_52] : memref<8x128xf32, #tpu.memory_space<vmem>> -> memref<1x128xf32, #tpu.memory_space<vmem>>
    %54 = tpu.memref_slice %arg11[%c1_i32_48, %c4_i32_49] : memref<2x8x!tpu.dma_semaphore, #tpu.memory_space<semaphore_mem>> -> memref<1x1x!tpu.dma_semaphore, #tpu.memory_space<semaphore_mem>>
    %55 = tpu.memref_squeeze %54 : memref<1x1x!tpu.dma_semaphore, #tpu.memory_space<semaphore_mem>> -> memref<!tpu.dma_semaphore, #tpu.memory_space<semaphore_mem>>
    tpu.enqueue_dma source(%52 : memref<1x128xf32, #tpu.memory_space<any>>) target(%53 : memref<1x128xf32, #tpu.memory_space<vmem>>) target_semaphore(%55 : memref<!tpu.dma_semaphore, #tpu.memory_space<semaphore_mem>>)
    %c0_i32_53 = arith.constant 0 : i32
    %c5_i32 = arith.constant 5 : i32
    %c0_i32_54 = arith.constant 0 : i32
    %56 = tpu.memref_slice %arg5[%5, %c0_i32_54] : memref<64x128xf32, #tpu.memory_space<any>> -> memref<1x128xf32, #tpu.memory_space<any>>
    %c5_i32_55 = arith.constant 5 : i32
    %c0_i32_56 = arith.constant 0 : i32
    %57 = tpu.memref_slice %arg9[%c5_i32_55, %c0_i32_56] : memref<8x128xf32, #tpu.memory_space<vmem>> -> memref<1x128xf32, #tpu.memory_space<vmem>>
    %58 = tpu.memref_slice %arg11[%c0_i32_53, %c5_i32] : memref<2x8x!tpu.dma_semaphore, #tpu.memory_space<semaphore_mem>> -> memref<1x1x!tpu.dma_semaphore, #tpu.memory_space<semaphore_mem>>
    %59 = tpu.memref_squeeze %58 : memref<1x1x!tpu.dma_semaphore, #tpu.memory_space<semaphore_mem>> -> memref<!tpu.dma_semaphore, #tpu.memory_space<semaphore_mem>>
    tpu.enqueue_dma source(%56 : memref<1x128xf32, #tpu.memory_space<any>>) target(%57 : memref<1x128xf32, #tpu.memory_space<vmem>>) target_semaphore(%59 : memref<!tpu.dma_semaphore, #tpu.memory_space<semaphore_mem>>)
    %c1_i32_57 = arith.constant 1 : i32
    %c5_i32_58 = arith.constant 5 : i32
    %c0_i32_59 = arith.constant 0 : i32
    %60 = tpu.memref_slice %arg6[%5, %c0_i32_59] : memref<64x128xf32, #tpu.memory_space<any>> -> memref<1x128xf32, #tpu.memory_space<any>>
    %c5_i32_60 = arith.constant 5 : i32
    %c0_i32_61 = arith.constant 0 : i32
    %61 = tpu.memref_slice %arg10[%c5_i32_60, %c0_i32_61] : memref<8x128xf32, #tpu.memory_space<vmem>> -> memref<1x128xf32, #tpu.memory_space<vmem>>
    %62 = tpu.memref_slice %arg11[%c1_i32_57, %c5_i32_58] : memref<2x8x!tpu.dma_semaphore, #tpu.memory_space<semaphore_mem>> -> memref<1x1x!tpu.dma_semaphore, #tpu.memory_space<semaphore_mem>>
    %63 = tpu.memref_squeeze %62 : memref<1x1x!tpu.dma_semaphore, #tpu.memory_space<semaphore_mem>> -> memref<!tpu.dma_semaphore, #tpu.memory_space<semaphore_mem>>
    tpu.enqueue_dma source(%60 : memref<1x128xf32, #tpu.memory_space<any>>) target(%61 : memref<1x128xf32, #tpu.memory_space<vmem>>) target_semaphore(%63 : memref<!tpu.dma_semaphore, #tpu.memory_space<semaphore_mem>>)
    %c0_i32_62 = arith.constant 0 : i32
    %c6_i32 = arith.constant 6 : i32
    %c0_i32_63 = arith.constant 0 : i32
    %64 = tpu.memref_slice %arg5[%6, %c0_i32_63] : memref<64x128xf32, #tpu.memory_space<any>> -> memref<1x128xf32, #tpu.memory_space<any>>
    %c6_i32_64 = arith.constant 6 : i32
    %c0_i32_65 = arith.constant 0 : i32
    %65 = tpu.memref_slice %arg9[%c6_i32_64, %c0_i32_65] : memref<8x128xf32, #tpu.memory_space<vmem>> -> memref<1x128xf32, #tpu.memory_space<vmem>>
    %66 = tpu.memref_slice %arg11[%c0_i32_62, %c6_i32] : memref<2x8x!tpu.dma_semaphore, #tpu.memory_space<semaphore_mem>> -> memref<1x1x!tpu.dma_semaphore, #tpu.memory_space<semaphore_mem>>
    %67 = tpu.memref_squeeze %66 : memref<1x1x!tpu.dma_semaphore, #tpu.memory_space<semaphore_mem>> -> memref<!tpu.dma_semaphore, #tpu.memory_space<semaphore_mem>>
    tpu.enqueue_dma source(%64 : memref<1x128xf32, #tpu.memory_space<any>>) target(%65 : memref<1x128xf32, #tpu.memory_space<vmem>>) target_semaphore(%67 : memref<!tpu.dma_semaphore, #tpu.memory_space<semaphore_mem>>)
    %c1_i32_66 = arith.constant 1 : i32
    %c6_i32_67 = arith.constant 6 : i32
    %c0_i32_68 = arith.constant 0 : i32
    %68 = tpu.memref_slice %arg6[%6, %c0_i32_68] : memref<64x128xf32, #tpu.memory_space<any>> -> memref<1x128xf32, #tpu.memory_space<any>>
    %c6_i32_69 = arith.constant 6 : i32
    %c0_i32_70 = arith.constant 0 : i32
    %69 = tpu.memref_slice %arg10[%c6_i32_69, %c0_i32_70] : memref<8x128xf32, #tpu.memory_space<vmem>> -> memref<1x128xf32, #tpu.memory_space<vmem>>
    %70 = tpu.memref_slice %arg11[%c1_i32_66, %c6_i32_67] : memref<2x8x!tpu.dma_semaphore, #tpu.memory_space<semaphore_mem>> -> memref<1x1x!tpu.dma_semaphore, #tpu.memory_space<semaphore_mem>>
    %71 = tpu.memref_squeeze %70 : memref<1x1x!tpu.dma_semaphore, #tpu.memory_space<semaphore_mem>> -> memref<!tpu.dma_semaphore, #tpu.memory_space<semaphore_mem>>
    tpu.enqueue_dma source(%68 : memref<1x128xf32, #tpu.memory_space<any>>) target(%69 : memref<1x128xf32, #tpu.memory_space<vmem>>) target_semaphore(%71 : memref<!tpu.dma_semaphore, #tpu.memory_space<semaphore_mem>>)
    %c0_i32_71 = arith.constant 0 : i32
    %c7_i32 = arith.constant 7 : i32
    %c0_i32_72 = arith.constant 0 : i32
    %72 = tpu.memref_slice %arg5[%7, %c0_i32_72] : memref<64x128xf32, #tpu.memory_space<any>> -> memref<1x128xf32, #tpu.memory_space<any>>
    %c7_i32_73 = arith.constant 7 : i32
    %c0_i32_74 = arith.constant 0 : i32
    %73 = tpu.memref_slice %arg9[%c7_i32_73, %c0_i32_74] : memref<8x128xf32, #tpu.memory_space<vmem>> -> memref<1x128xf32, #tpu.memory_space<vmem>>
    %74 = tpu.memref_slice %arg11[%c0_i32_71, %c7_i32] : memref<2x8x!tpu.dma_semaphore, #tpu.memory_space<semaphore_mem>> -> memref<1x1x!tpu.dma_semaphore, #tpu.memory_space<semaphore_mem>>
    %75 = tpu.memref_squeeze %74 : memref<1x1x!tpu.dma_semaphore, #tpu.memory_space<semaphore_mem>> -> memref<!tpu.dma_semaphore, #tpu.memory_space<semaphore_mem>>
    tpu.enqueue_dma source(%72 : memref<1x128xf32, #tpu.memory_space<any>>) target(%73 : memref<1x128xf32, #tpu.memory_space<vmem>>) target_semaphore(%75 : memref<!tpu.dma_semaphore, #tpu.memory_space<semaphore_mem>>)
    %c1_i32_75 = arith.constant 1 : i32
    %c7_i32_76 = arith.constant 7 : i32
    %c0_i32_77 = arith.constant 0 : i32
    %76 = tpu.memref_slice %arg6[%7, %c0_i32_77] : memref<64x128xf32, #tpu.memory_space<any>> -> memref<1x128xf32, #tpu.memory_space<any>>
    %c7_i32_78 = arith.constant 7 : i32
    %c0_i32_79 = arith.constant 0 : i32
    %77 = tpu.memref_slice %arg10[%c7_i32_78, %c0_i32_79] : memref<8x128xf32, #tpu.memory_space<vmem>> -> memref<1x128xf32, #tpu.memory_space<vmem>>
    %78 = tpu.memref_slice %arg11[%c1_i32_75, %c7_i32_76] : memref<2x8x!tpu.dma_semaphore, #tpu.memory_space<semaphore_mem>> -> memref<1x1x!tpu.dma_semaphore, #tpu.memory_space<semaphore_mem>>
    %79 = tpu.memref_squeeze %78 : memref<1x1x!tpu.dma_semaphore, #tpu.memory_space<semaphore_mem>> -> memref<!tpu.dma_semaphore, #tpu.memory_space<semaphore_mem>>
    tpu.enqueue_dma source(%76 : memref<1x128xf32, #tpu.memory_space<any>>) target(%77 : memref<1x128xf32, #tpu.memory_space<vmem>>) target_semaphore(%79 : memref<!tpu.dma_semaphore, #tpu.memory_space<semaphore_mem>>)
    %c0_i32_80 = arith.constant 0 : i32
    %c0_i32_81 = arith.constant 0 : i32
    %c0_i32_82 = arith.constant 0 : i32
    %c0_i32_83 = arith.constant 0 : i32
    %80 = tpu.memref_slice %arg5[%c0_i32_82, %c0_i32_83] : memref<64x128xf32, #tpu.memory_space<any>> -> memref<1x128xf32, #tpu.memory_space<any>>
    %c0_i32_84 = arith.constant 0 : i32
    %c0_i32_85 = arith.constant 0 : i32
    %81 = tpu.memref_slice %arg9[%c0_i32_84, %c0_i32_85] : memref<8x128xf32, #tpu.memory_space<vmem>> -> memref<1x128xf32, #tpu.memory_space<vmem>>
    %82 = tpu.memref_slice %arg11[%c0_i32_80, %c0_i32_81] : memref<2x8x!tpu.dma_semaphore, #tpu.memory_space<semaphore_mem>> -> memref<1x1x!tpu.dma_semaphore, #tpu.memory_space<semaphore_mem>>
    %83 = tpu.memref_squeeze %82 : memref<1x1x!tpu.dma_semaphore, #tpu.memory_space<semaphore_mem>> -> memref<!tpu.dma_semaphore, #tpu.memory_space<semaphore_mem>>
    tpu.wait_dma2 semaphore(%83 : memref<!tpu.dma_semaphore, #tpu.memory_space<semaphore_mem>>) src(%80 : memref<1x128xf32, #tpu.memory_space<any>>) dst(%81 : memref<1x128xf32, #tpu.memory_space<vmem>>)
    %c1_i32_86 = arith.constant 1 : i32
    %c0_i32_87 = arith.constant 0 : i32
    %c0_i32_88 = arith.constant 0 : i32
    %c0_i32_89 = arith.constant 0 : i32
    %84 = tpu.memref_slice %arg6[%c0_i32_88, %c0_i32_89] : memref<64x128xf32, #tpu.memory_space<any>> -> memref<1x128xf32, #tpu.memory_space<any>>
    %c0_i32_90 = arith.constant 0 : i32
    %c0_i32_91 = arith.constant 0 : i32
    %85 = tpu.memref_slice %arg10[%c0_i32_90, %c0_i32_91] : memref<8x128xf32, #tpu.memory_space<vmem>> -> memref<1x128xf32, #tpu.memory_space<vmem>>
    %86 = tpu.memref_slice %arg11[%c1_i32_86, %c0_i32_87] : memref<2x8x!tpu.dma_semaphore, #tpu.memory_space<semaphore_mem>> -> memref<1x1x!tpu.dma_semaphore, #tpu.memory_space<semaphore_mem>>
    %87 = tpu.memref_squeeze %86 : memref<1x1x!tpu.dma_semaphore, #tpu.memory_space<semaphore_mem>> -> memref<!tpu.dma_semaphore, #tpu.memory_space<semaphore_mem>>
    tpu.wait_dma2 semaphore(%87 : memref<!tpu.dma_semaphore, #tpu.memory_space<semaphore_mem>>) src(%84 : memref<1x128xf32, #tpu.memory_space<any>>) dst(%85 : memref<1x128xf32, #tpu.memory_space<vmem>>)
    %c0_i32_92 = arith.constant 0 : i32
    %c1_i32_93 = arith.constant 1 : i32
    %c0_i32_94 = arith.constant 0 : i32
    %c0_i32_95 = arith.constant 0 : i32
    %88 = tpu.memref_slice %arg5[%c0_i32_94, %c0_i32_95] : memref<64x128xf32, #tpu.memory_space<any>> -> memref<1x128xf32, #tpu.memory_space<any>>
    %c1_i32_96 = arith.constant 1 : i32
    %c0_i32_97 = arith.constant 0 : i32
    %89 = tpu.memref_slice %arg9[%c1_i32_96, %c0_i32_97] : memref<8x128xf32, #tpu.memory_space<vmem>> -> memref<1x128xf32, #tpu.memory_space<vmem>>
    %90 = tpu.memref_slice %arg11[%c0_i32_92, %c1_i32_93] : memref<2x8x!tpu.dma_semaphore, #tpu.memory_space<semaphore_mem>> -> memref<1x1x!tpu.dma_semaphore, #tpu.memory_space<semaphore_mem>>
    %91 = tpu.memref_squeeze %90 : memref<1x1x!tpu.dma_semaphore, #tpu.memory_space<semaphore_mem>> -> memref<!tpu.dma_semaphore, #tpu.memory_space<semaphore_mem>>
    tpu.wait_dma2 semaphore(%91 : memref<!tpu.dma_semaphore, #tpu.memory_space<semaphore_mem>>) src(%88 : memref<1x128xf32, #tpu.memory_space<any>>) dst(%89 : memref<1x128xf32, #tpu.memory_space<vmem>>)
    %c1_i32_98 = arith.constant 1 : i32
    %c1_i32_99 = arith.constant 1 : i32
    %c0_i32_100 = arith.constant 0 : i32
    %c0_i32_101 = arith.constant 0 : i32
    %92 = tpu.memref_slice %arg6[%c0_i32_100, %c0_i32_101] : memref<64x128xf32, #tpu.memory_space<any>> -> memref<1x128xf32, #tpu.memory_space<any>>
    %c1_i32_102 = arith.constant 1 : i32
    %c0_i32_103 = arith.constant 0 : i32
    %93 = tpu.memref_slice %arg10[%c1_i32_102, %c0_i32_103] : memref<8x128xf32, #tpu.memory_space<vmem>> -> memref<1x128xf32, #tpu.memory_space<vmem>>
    %94 = tpu.memref_slice %arg11[%c1_i32_98, %c1_i32_99] : memref<2x8x!tpu.dma_semaphore, #tpu.memory_space<semaphore_mem>> -> memref<1x1x!tpu.dma_semaphore, #tpu.memory_space<semaphore_mem>>
    %95 = tpu.memref_squeeze %94 : memref<1x1x!tpu.dma_semaphore, #tpu.memory_space<semaphore_mem>> -> memref<!tpu.dma_semaphore, #tpu.memory_space<semaphore_mem>>
    tpu.wait_dma2 semaphore(%95 : memref<!tpu.dma_semaphore, #tpu.memory_space<semaphore_mem>>) src(%92 : memref<1x128xf32, #tpu.memory_space<any>>) dst(%93 : memref<1x128xf32, #tpu.memory_space<vmem>>)
    %c0_i32_104 = arith.constant 0 : i32
    %c2_i32_105 = arith.constant 2 : i32
    %c0_i32_106 = arith.constant 0 : i32
    %c0_i32_107 = arith.constant 0 : i32
    %96 = tpu.memref_slice %arg5[%c0_i32_106, %c0_i32_107] : memref<64x128xf32, #tpu.memory_space<any>> -> memref<1x128xf32, #tpu.memory_space<any>>
    %c2_i32_108 = arith.constant 2 : i32
    %c0_i32_109 = arith.constant 0 : i32
    %97 = tpu.memref_slice %arg9[%c2_i32_108, %c0_i32_109] : memref<8x128xf32, #tpu.memory_space<vmem>> -> memref<1x128xf32, #tpu.memory_space<vmem>>
    %98 = tpu.memref_slice %arg11[%c0_i32_104, %c2_i32_105] : memref<2x8x!tpu.dma_semaphore, #tpu.memory_space<semaphore_mem>> -> memref<1x1x!tpu.dma_semaphore, #tpu.memory_space<semaphore_mem>>
    %99 = tpu.memref_squeeze %98 : memref<1x1x!tpu.dma_semaphore, #tpu.memory_space<semaphore_mem>> -> memref<!tpu.dma_semaphore, #tpu.memory_space<semaphore_mem>>
    tpu.wait_dma2 semaphore(%99 : memref<!tpu.dma_semaphore, #tpu.memory_space<semaphore_mem>>) src(%96 : memref<1x128xf32, #tpu.memory_space<any>>) dst(%97 : memref<1x128xf32, #tpu.memory_space<vmem>>)
    %c1_i32_110 = arith.constant 1 : i32
    %c2_i32_111 = arith.constant 2 : i32
    %c0_i32_112 = arith.constant 0 : i32
    %c0_i32_113 = arith.constant 0 : i32
    %100 = tpu.memref_slice %arg6[%c0_i32_112, %c0_i32_113] : memref<64x128xf32, #tpu.memory_space<any>> -> memref<1x128xf32, #tpu.memory_space<any>>
    %c2_i32_114 = arith.constant 2 : i32
    %c0_i32_115 = arith.constant 0 : i32
    %101 = tpu.memref_slice %arg10[%c2_i32_114, %c0_i32_115] : memref<8x128xf32, #tpu.memory_space<vmem>> -> memref<1x128xf32, #tpu.memory_space<vmem>>
    %102 = tpu.memref_slice %arg11[%c1_i32_110, %c2_i32_111] : memref<2x8x!tpu.dma_semaphore, #tpu.memory_space<semaphore_mem>> -> memref<1x1x!tpu.dma_semaphore, #tpu.memory_space<semaphore_mem>>
    %103 = tpu.memref_squeeze %102 : memref<1x1x!tpu.dma_semaphore, #tpu.memory_space<semaphore_mem>> -> memref<!tpu.dma_semaphore, #tpu.memory_space<semaphore_mem>>
    tpu.wait_dma2 semaphore(%103 : memref<!tpu.dma_semaphore, #tpu.memory_space<semaphore_mem>>) src(%100 : memref<1x128xf32, #tpu.memory_space<any>>) dst(%101 : memref<1x128xf32, #tpu.memory_space<vmem>>)
    %c0_i32_116 = arith.constant 0 : i32
    %c3_i32_117 = arith.constant 3 : i32
    %c0_i32_118 = arith.constant 0 : i32
    %c0_i32_119 = arith.constant 0 : i32
    %104 = tpu.memref_slice %arg5[%c0_i32_118, %c0_i32_119] : memref<64x128xf32, #tpu.memory_space<any>> -> memref<1x128xf32, #tpu.memory_space<any>>
    %c3_i32_120 = arith.constant 3 : i32
    %c0_i32_121 = arith.constant 0 : i32
    %105 = tpu.memref_slice %arg9[%c3_i32_120, %c0_i32_121] : memref<8x128xf32, #tpu.memory_space<vmem>> -> memref<1x128xf32, #tpu.memory_space<vmem>>
    %106 = tpu.memref_slice %arg11[%c0_i32_116, %c3_i32_117] : memref<2x8x!tpu.dma_semaphore, #tpu.memory_space<semaphore_mem>> -> memref<1x1x!tpu.dma_semaphore, #tpu.memory_space<semaphore_mem>>
    %107 = tpu.memref_squeeze %106 : memref<1x1x!tpu.dma_semaphore, #tpu.memory_space<semaphore_mem>> -> memref<!tpu.dma_semaphore, #tpu.memory_space<semaphore_mem>>
    tpu.wait_dma2 semaphore(%107 : memref<!tpu.dma_semaphore, #tpu.memory_space<semaphore_mem>>) src(%104 : memref<1x128xf32, #tpu.memory_space<any>>) dst(%105 : memref<1x128xf32, #tpu.memory_space<vmem>>)
    %c1_i32_122 = arith.constant 1 : i32
    %c3_i32_123 = arith.constant 3 : i32
    %c0_i32_124 = arith.constant 0 : i32
    %c0_i32_125 = arith.constant 0 : i32
    %108 = tpu.memref_slice %arg6[%c0_i32_124, %c0_i32_125] : memref<64x128xf32, #tpu.memory_space<any>> -> memref<1x128xf32, #tpu.memory_space<any>>
    %c3_i32_126 = arith.constant 3 : i32
    %c0_i32_127 = arith.constant 0 : i32
    %109 = tpu.memref_slice %arg10[%c3_i32_126, %c0_i32_127] : memref<8x128xf32, #tpu.memory_space<vmem>> -> memref<1x128xf32, #tpu.memory_space<vmem>>
    %110 = tpu.memref_slice %arg11[%c1_i32_122, %c3_i32_123] : memref<2x8x!tpu.dma_semaphore, #tpu.memory_space<semaphore_mem>> -> memref<1x1x!tpu.dma_semaphore, #tpu.memory_space<semaphore_mem>>
    %111 = tpu.memref_squeeze %110 : memref<1x1x!tpu.dma_semaphore, #tpu.memory_space<semaphore_mem>> -> memref<!tpu.dma_semaphore, #tpu.memory_space<semaphore_mem>>
    tpu.wait_dma2 semaphore(%111 : memref<!tpu.dma_semaphore, #tpu.memory_space<semaphore_mem>>) src(%108 : memref<1x128xf32, #tpu.memory_space<any>>) dst(%109 : memref<1x128xf32, #tpu.memory_space<vmem>>)
    %c0_i32_128 = arith.constant 0 : i32
    %c4_i32_129 = arith.constant 4 : i32
    %c0_i32_130 = arith.constant 0 : i32
    %c0_i32_131 = arith.constant 0 : i32
    %112 = tpu.memref_slice %arg5[%c0_i32_130, %c0_i32_131] : memref<64x128xf32, #tpu.memory_space<any>> -> memref<1x128xf32, #tpu.memory_space<any>>
    %c4_i32_132 = arith.constant 4 : i32
    %c0_i32_133 = arith.constant 0 : i32
    %113 = tpu.memref_slice %arg9[%c4_i32_132, %c0_i32_133] : memref<8x128xf32, #tpu.memory_space<vmem>> -> memref<1x128xf32, #tpu.memory_space<vmem>>
    %114 = tpu.memref_slice %arg11[%c0_i32_128, %c4_i32_129] : memref<2x8x!tpu.dma_semaphore, #tpu.memory_space<semaphore_mem>> -> memref<1x1x!tpu.dma_semaphore, #tpu.memory_space<semaphore_mem>>
    %115 = tpu.memref_squeeze %114 : memref<1x1x!tpu.dma_semaphore, #tpu.memory_space<semaphore_mem>> -> memref<!tpu.dma_semaphore, #tpu.memory_space<semaphore_mem>>
    tpu.wait_dma2 semaphore(%115 : memref<!tpu.dma_semaphore, #tpu.memory_space<semaphore_mem>>) src(%112 : memref<1x128xf32, #tpu.memory_space<any>>) dst(%113 : memref<1x128xf32, #tpu.memory_space<vmem>>)
    %c1_i32_134 = arith.constant 1 : i32
    %c4_i32_135 = arith.constant 4 : i32
    %c0_i32_136 = arith.constant 0 : i32
    %c0_i32_137 = arith.constant 0 : i32
    %116 = tpu.memref_slice %arg6[%c0_i32_136, %c0_i32_137] : memref<64x128xf32, #tpu.memory_space<any>> -> memref<1x128xf32, #tpu.memory_space<any>>
    %c4_i32_138 = arith.constant 4 : i32
    %c0_i32_139 = arith.constant 0 : i32
    %117 = tpu.memref_slice %arg10[%c4_i32_138, %c0_i32_139] : memref<8x128xf32, #tpu.memory_space<vmem>> -> memref<1x128xf32, #tpu.memory_space<vmem>>
    %118 = tpu.memref_slice %arg11[%c1_i32_134, %c4_i32_135] : memref<2x8x!tpu.dma_semaphore, #tpu.memory_space<semaphore_mem>> -> memref<1x1x!tpu.dma_semaphore, #tpu.memory_space<semaphore_mem>>
    %119 = tpu.memref_squeeze %118 : memref<1x1x!tpu.dma_semaphore, #tpu.memory_space<semaphore_mem>> -> memref<!tpu.dma_semaphore, #tpu.memory_space<semaphore_mem>>
    tpu.wait_dma2 semaphore(%119 : memref<!tpu.dma_semaphore, #tpu.memory_space<semaphore_mem>>) src(%116 : memref<1x128xf32, #tpu.memory_space<any>>) dst(%117 : memref<1x128xf32, #tpu.memory_space<vmem>>)
    %c0_i32_140 = arith.constant 0 : i32
    %c5_i32_141 = arith.constant 5 : i32
    %c0_i32_142 = arith.constant 0 : i32
    %c0_i32_143 = arith.constant 0 : i32
    %120 = tpu.memref_slice %arg5[%c0_i32_142, %c0_i32_143] : memref<64x128xf32, #tpu.memory_space<any>> -> memref<1x128xf32, #tpu.memory_space<any>>
    %c5_i32_144 = arith.constant 5 : i32
    %c0_i32_145 = arith.constant 0 : i32
    %121 = tpu.memref_slice %arg9[%c5_i32_144, %c0_i32_145] : memref<8x128xf32, #tpu.memory_space<vmem>> -> memref<1x128xf32, #tpu.memory_space<vmem>>
    %122 = tpu.memref_slice %arg11[%c0_i32_140, %c5_i32_141] : memref<2x8x!tpu.dma_semaphore, #tpu.memory_space<semaphore_mem>> -> memref<1x1x!tpu.dma_semaphore, #tpu.memory_space<semaphore_mem>>
    %123 = tpu.memref_squeeze %122 : memref<1x1x!tpu.dma_semaphore, #tpu.memory_space<semaphore_mem>> -> memref<!tpu.dma_semaphore, #tpu.memory_space<semaphore_mem>>
    tpu.wait_dma2 semaphore(%123 : memref<!tpu.dma_semaphore, #tpu.memory_space<semaphore_mem>>) src(%120 : memref<1x128xf32, #tpu.memory_space<any>>) dst(%121 : memref<1x128xf32, #tpu.memory_space<vmem>>)
    %c1_i32_146 = arith.constant 1 : i32
    %c5_i32_147 = arith.constant 5 : i32
    %c0_i32_148 = arith.constant 0 : i32
    %c0_i32_149 = arith.constant 0 : i32
    %124 = tpu.memref_slice %arg6[%c0_i32_148, %c0_i32_149] : memref<64x128xf32, #tpu.memory_space<any>> -> memref<1x128xf32, #tpu.memory_space<any>>
    %c5_i32_150 = arith.constant 5 : i32
    %c0_i32_151 = arith.constant 0 : i32
    %125 = tpu.memref_slice %arg10[%c5_i32_150, %c0_i32_151] : memref<8x128xf32, #tpu.memory_space<vmem>> -> memref<1x128xf32, #tpu.memory_space<vmem>>
    %126 = tpu.memref_slice %arg11[%c1_i32_146, %c5_i32_147] : memref<2x8x!tpu.dma_semaphore, #tpu.memory_space<semaphore_mem>> -> memref<1x1x!tpu.dma_semaphore, #tpu.memory_space<semaphore_mem>>
    %127 = tpu.memref_squeeze %126 : memref<1x1x!tpu.dma_semaphore, #tpu.memory_space<semaphore_mem>> -> memref<!tpu.dma_semaphore, #tpu.memory_space<semaphore_mem>>
    tpu.wait_dma2 semaphore(%127 : memref<!tpu.dma_semaphore, #tpu.memory_space<semaphore_mem>>) src(%124 : memref<1x128xf32, #tpu.memory_space<any>>) dst(%125 : memref<1x128xf32, #tpu.memory_space<vmem>>)
    %c0_i32_152 = arith.constant 0 : i32
    %c6_i32_153 = arith.constant 6 : i32
    %c0_i32_154 = arith.constant 0 : i32
    %c0_i32_155 = arith.constant 0 : i32
    %128 = tpu.memref_slice %arg5[%c0_i32_154, %c0_i32_155] : memref<64x128xf32, #tpu.memory_space<any>> -> memref<1x128xf32, #tpu.memory_space<any>>
    %c6_i32_156 = arith.constant 6 : i32
    %c0_i32_157 = arith.constant 0 : i32
    %129 = tpu.memref_slice %arg9[%c6_i32_156, %c0_i32_157] : memref<8x128xf32, #tpu.memory_space<vmem>> -> memref<1x128xf32, #tpu.memory_space<vmem>>
    %130 = tpu.memref_slice %arg11[%c0_i32_152, %c6_i32_153] : memref<2x8x!tpu.dma_semaphore, #tpu.memory_space<semaphore_mem>> -> memref<1x1x!tpu.dma_semaphore, #tpu.memory_space<semaphore_mem>>
    %131 = tpu.memref_squeeze %130 : memref<1x1x!tpu.dma_semaphore, #tpu.memory_space<semaphore_mem>> -> memref<!tpu.dma_semaphore, #tpu.memory_space<semaphore_mem>>
    tpu.wait_dma2 semaphore(%131 : memref<!tpu.dma_semaphore, #tpu.memory_space<semaphore_mem>>) src(%128 : memref<1x128xf32, #tpu.memory_space<any>>) dst(%129 : memref<1x128xf32, #tpu.memory_space<vmem>>)
    %c1_i32_158 = arith.constant 1 : i32
    %c6_i32_159 = arith.constant 6 : i32
    %c0_i32_160 = arith.constant 0 : i32
    %c0_i32_161 = arith.constant 0 : i32
    %132 = tpu.memref_slice %arg6[%c0_i32_160, %c0_i32_161] : memref<64x128xf32, #tpu.memory_space<any>> -> memref<1x128xf32, #tpu.memory_space<any>>
    %c6_i32_162 = arith.constant 6 : i32
    %c0_i32_163 = arith.constant 0 : i32
    %133 = tpu.memref_slice %arg10[%c6_i32_162, %c0_i32_163] : memref<8x128xf32, #tpu.memory_space<vmem>> -> memref<1x128xf32, #tpu.memory_space<vmem>>
    %134 = tpu.memref_slice %arg11[%c1_i32_158, %c6_i32_159] : memref<2x8x!tpu.dma_semaphore, #tpu.memory_space<semaphore_mem>> -> memref<1x1x!tpu.dma_semaphore, #tpu.memory_space<semaphore_mem>>
    %135 = tpu.memref_squeeze %134 : memref<1x1x!tpu.dma_semaphore, #tpu.memory_space<semaphore_mem>> -> memref<!tpu.dma_semaphore, #tpu.memory_space<semaphore_mem>>
    tpu.wait_dma2 semaphore(%135 : memref<!tpu.dma_semaphore, #tpu.memory_space<semaphore_mem>>) src(%132 : memref<1x128xf32, #tpu.memory_space<any>>) dst(%133 : memref<1x128xf32, #tpu.memory_space<vmem>>)
    %c0_i32_164 = arith.constant 0 : i32
    %c7_i32_165 = arith.constant 7 : i32
    %c0_i32_166 = arith.constant 0 : i32
    %c0_i32_167 = arith.constant 0 : i32
    %136 = tpu.memref_slice %arg5[%c0_i32_166, %c0_i32_167] : memref<64x128xf32, #tpu.memory_space<any>> -> memref<1x128xf32, #tpu.memory_space<any>>
    %c7_i32_168 = arith.constant 7 : i32
    %c0_i32_169 = arith.constant 0 : i32
    %137 = tpu.memref_slice %arg9[%c7_i32_168, %c0_i32_169] : memref<8x128xf32, #tpu.memory_space<vmem>> -> memref<1x128xf32, #tpu.memory_space<vmem>>
    %138 = tpu.memref_slice %arg11[%c0_i32_164, %c7_i32_165] : memref<2x8x!tpu.dma_semaphore, #tpu.memory_space<semaphore_mem>> -> memref<1x1x!tpu.dma_semaphore, #tpu.memory_space<semaphore_mem>>
    %139 = tpu.memref_squeeze %138 : memref<1x1x!tpu.dma_semaphore, #tpu.memory_space<semaphore_mem>> -> memref<!tpu.dma_semaphore, #tpu.memory_space<semaphore_mem>>
    tpu.wait_dma2 semaphore(%139 : memref<!tpu.dma_semaphore, #tpu.memory_space<semaphore_mem>>) src(%136 : memref<1x128xf32, #tpu.memory_space<any>>) dst(%137 : memref<1x128xf32, #tpu.memory_space<vmem>>)
    %c1_i32_170 = arith.constant 1 : i32
    %c7_i32_171 = arith.constant 7 : i32
    %c0_i32_172 = arith.constant 0 : i32
    %c0_i32_173 = arith.constant 0 : i32
    %140 = tpu.memref_slice %arg6[%c0_i32_172, %c0_i32_173] : memref<64x128xf32, #tpu.memory_space<any>> -> memref<1x128xf32, #tpu.memory_space<any>>
    %c7_i32_174 = arith.constant 7 : i32
    %c0_i32_175 = arith.constant 0 : i32
    %141 = tpu.memref_slice %arg10[%c7_i32_174, %c0_i32_175] : memref<8x128xf32, #tpu.memory_space<vmem>> -> memref<1x128xf32, #tpu.memory_space<vmem>>
    %142 = tpu.memref_slice %arg11[%c1_i32_170, %c7_i32_171] : memref<2x8x!tpu.dma_semaphore, #tpu.memory_space<semaphore_mem>> -> memref<1x1x!tpu.dma_semaphore, #tpu.memory_space<semaphore_mem>>
    %143 = tpu.memref_squeeze %142 : memref<1x1x!tpu.dma_semaphore, #tpu.memory_space<semaphore_mem>> -> memref<!tpu.dma_semaphore, #tpu.memory_space<semaphore_mem>>
    tpu.wait_dma2 semaphore(%143 : memref<!tpu.dma_semaphore, #tpu.memory_space<semaphore_mem>>) src(%140 : memref<1x128xf32, #tpu.memory_space<any>>) dst(%141 : memref<1x128xf32, #tpu.memory_space<vmem>>)
    %c0_176 = arith.constant 0 : index
    %c0_177 = arith.constant 0 : index
    %144 = vector.load %arg9[%c0_176, %c0_177] : memref<8x128xf32, #tpu.memory_space<vmem>>, vector<8x128xf32>
    %cst = arith.constant 5.000000e-01 : f32
    %145 = vector.broadcast %cst : f32 to vector<8x128xf32>
    %146 = arith.mulf %145, %144 : vector<8x128xf32>
    %c0_178 = arith.constant 0 : index
    %c0_179 = arith.constant 0 : index
    %147 = vector.load %arg3[%c0_178, %c0_179] : memref<8x128xf32, #tpu.memory_space<vmem>>, vector<8x128xf32>
    %cst_180 = arith.constant 5.000000e-01 : f32
    %148 = vector.broadcast %cst_180 : f32 to vector<8x128xf32>
    %149 = arith.mulf %148, %147 : vector<8x128xf32>
    %150 = arith.addf %146, %149 : vector<8x128xf32>
    %c0_181 = arith.constant 0 : index
    %c0_182 = arith.constant 0 : index
    %151 = vector.load %arg10[%c0_181, %c0_182] : memref<8x128xf32, #tpu.memory_space<vmem>>, vector<8x128xf32>
    %cst_183 = arith.constant 5.000000e-01 : f32
    %152 = vector.broadcast %cst_183 : f32 to vector<8x128xf32>
    %153 = arith.mulf %152, %151 : vector<8x128xf32>
    %c0_184 = arith.constant 0 : index
    %c0_185 = arith.constant 0 : index
    %154 = vector.load %arg4[%c0_184, %c0_185] : memref<8x128xf32, #tpu.memory_space<vmem>>, vector<8x128xf32>
    %cst_186 = arith.constant 5.000000e-01 : f32
    %155 = vector.broadcast %cst_186 : f32 to vector<8x128xf32>
    %156 = arith.mulf %155, %154 : vector<8x128xf32>
    %157 = arith.addf %153, %156 : vector<8x128xf32>
    %158 = arith.mulf %150, %150 : vector<8x128xf32>
    %cst_187 = arith.constant dense<0.000000e+00> : vector<8xf32>
    %159 = vector.multi_reduction <add>, %158, %cst_187 [1] : vector<8x128xf32> to vector<8xf32>
    %160 = vector.shape_cast %159 : vector<8xf32> to vector<8x1xf32>
    %cst_188 = arith.constant 9.99999996E-13 : f32
    %161 = vector.broadcast %cst_188 : f32 to vector<8x1xf32>
    %162 = arith.addf %160, %161 : vector<8x1xf32>
    %163 = math.rsqrt %162 : vector<8x1xf32>
    %164 = vector.broadcast %163 : vector<8x1xf32> to vector<8x128xf32>
    %165 = arith.mulf %150, %164 : vector<8x128xf32>
    %c0_189 = arith.constant 0 : index
    %c0_190 = arith.constant 0 : index
    %166 = vector.load %arg9[%c0_189, %c0_190] : memref<8x128xf32, #tpu.memory_space<vmem>>, vector<8x128xf32>
    tpu.vector_store %arg9[%c0_189, %c0_190], %165 {strides = array<i32>} : memref<8x128xf32, #tpu.memory_space<vmem>>, vector<8x128xf32>,
    %167 = arith.mulf %157, %157 : vector<8x128xf32>
    %cst_191 = arith.constant dense<0.000000e+00> : vector<8xf32>
    %168 = vector.multi_reduction <add>, %167, %cst_191 [1] : vector<8x128xf32> to vector<8xf32>
    %169 = vector.shape_cast %168 : vector<8xf32> to vector<8x1xf32>
    %cst_192 = arith.constant 9.99999996E-13 : f32
    %170 = vector.broadcast %cst_192 : f32 to vector<8x1xf32>
    %171 = arith.addf %169, %170 : vector<8x1xf32>
    %172 = math.rsqrt %171 : vector<8x1xf32>
    %173 = vector.broadcast %172 : vector<8x1xf32> to vector<8x128xf32>
    %174 = arith.mulf %157, %173 : vector<8x128xf32>
    %c0_193 = arith.constant 0 : index
    %c0_194 = arith.constant 0 : index
    %175 = vector.load %arg10[%c0_193, %c0_194] : memref<8x128xf32, #tpu.memory_space<vmem>>, vector<8x128xf32>
    tpu.vector_store %arg10[%c0_193, %c0_194], %174 {strides = array<i32>} : memref<8x128xf32, #tpu.memory_space<vmem>>, vector<8x128xf32>,
    %c1_i32_195 = arith.constant 1 : i32
    %176 = arith.cmpi eq, %8, %c1_i32_195 : i32
    %177 = arith.extui %176 : i1 to i32
    %c0_i32_196 = arith.constant 0 : i32
    %178 = arith.cmpi ne, %177, %c0_i32_196 : i32
    scf.if %178 {
      %c0_i32_227 = arith.constant 0 : i32
      %c0_i32_228 = arith.constant 0 : i32
      %c0_i32_229 = arith.constant 0 : i32
      %c0_i32_230 = arith.constant 0 : i32
      %224 = tpu.memref_slice %arg9[%c0_i32_229, %c0_i32_230] : memref<8x128xf32, #tpu.memory_space<vmem>> -> memref<1x128xf32, #tpu.memory_space<vmem>>
      %c0_i32_231 = arith.constant 0 : i32
      %225 = tpu.memref_slice %arg7[%0, %c0_i32_231] : memref<64x128xf32, #tpu.memory_space<any>> -> memref<1x128xf32, #tpu.memory_space<any>>
      %226 = tpu.memref_slice %arg11[%c0_i32_227, %c0_i32_228] : memref<2x8x!tpu.dma_semaphore, #tpu.memory_space<semaphore_mem>> -> memref<1x1x!tpu.dma_semaphore, #tpu.memory_space<semaphore_mem>>
      %227 = tpu.memref_squeeze %226 : memref<1x1x!tpu.dma_semaphore, #tpu.memory_space<semaphore_mem>> -> memref<!tpu.dma_semaphore, #tpu.memory_space<semaphore_mem>>
      tpu.enqueue_dma source(%224 : memref<1x128xf32, #tpu.memory_space<vmem>>) target(%225 : memref<1x128xf32, #tpu.memory_space<any>>) target_semaphore(%227 : memref<!tpu.dma_semaphore, #tpu.memory_space<semaphore_mem>>)
      %c1_i32_232 = arith.constant 1 : i32
      %c0_i32_233 = arith.constant 0 : i32
      %c0_i32_234 = arith.constant 0 : i32
      %c0_i32_235 = arith.constant 0 : i32
      %228 = tpu.memref_slice %arg10[%c0_i32_234, %c0_i32_235] : memref<8x128xf32, #tpu.memory_space<vmem>> -> memref<1x128xf32, #tpu.memory_space<vmem>>
      %c0_i32_236 = arith.constant 0 : i32
      %229 = tpu.memref_slice %arg8[%0, %c0_i32_236] : memref<64x128xf32, #tpu.memory_space<any>> -> memref<1x128xf32, #tpu.memory_space<any>>
      %230 = tpu.memref_slice %arg11[%c1_i32_232, %c0_i32_233] : memref<2x8x!tpu.dma_semaphore, #tpu.memory_space<semaphore_mem>> -> memref<1x1x!tpu.dma_semaphore, #tpu.memory_space<semaphore_mem>>
      %231 = tpu.memref_squeeze %230 : memref<1x1x!tpu.dma_semaphore, #tpu.memory_space<semaphore_mem>> -> memref<!tpu.dma_semaphore, #tpu.memory_space<semaphore_mem>>
      tpu.enqueue_dma source(%228 : memref<1x128xf32, #tpu.memory_space<vmem>>) target(%229 : memref<1x128xf32, #tpu.memory_space<any>>) target_semaphore(%231 : memref<!tpu.dma_semaphore, #tpu.memory_space<semaphore_mem>>)
    } else {
    }
    %c1_i32_197 = arith.constant 1 : i32
    %179 = arith.cmpi eq, %9, %c1_i32_197 : i32
    %180 = arith.extui %179 : i1 to i32
    %c0_i32_198 = arith.constant 0 : i32
    %181 = arith.cmpi ne, %180, %c0_i32_198 : i32
    scf.if %181 {
      %c0_i32_227 = arith.constant 0 : i32
      %c1_i32_228 = arith.constant 1 : i32
      %c1_i32_229 = arith.constant 1 : i32
      %c0_i32_230 = arith.constant 0 : i32
      %224 = tpu.memref_slice %arg9[%c1_i32_229, %c0_i32_230] : memref<8x128xf32, #tpu.memory_space<vmem>> -> memref<1x128xf32, #tpu.memory_space<vmem>>
      %c0_i32_231 = arith.constant 0 : i32
      %225 = tpu.memref_slice %arg7[%1, %c0_i32_231] : memref<64x128xf32, #tpu.memory_space<any>> -> memref<1x128xf32, #tpu.memory_space<any>>
      %226 = tpu.memref_slice %arg11[%c0_i32_227, %c1_i32_228] : memref<2x8x!tpu.dma_semaphore, #tpu.memory_space<semaphore_mem>> -> memref<1x1x!tpu.dma_semaphore, #tpu.memory_space<semaphore_mem>>
      %227 = tpu.memref_squeeze %226 : memref<1x1x!tpu.dma_semaphore, #tpu.memory_space<semaphore_mem>> -> memref<!tpu.dma_semaphore, #tpu.memory_space<semaphore_mem>>
      tpu.enqueue_dma source(%224 : memref<1x128xf32, #tpu.memory_space<vmem>>) target(%225 : memref<1x128xf32, #tpu.memory_space<any>>) target_semaphore(%227 : memref<!tpu.dma_semaphore, #tpu.memory_space<semaphore_mem>>)
      %c1_i32_232 = arith.constant 1 : i32
      %c1_i32_233 = arith.constant 1 : i32
      %c1_i32_234 = arith.constant 1 : i32
      %c0_i32_235 = arith.constant 0 : i32
      %228 = tpu.memref_slice %arg10[%c1_i32_234, %c0_i32_235] : memref<8x128xf32, #tpu.memory_space<vmem>> -> memref<1x128xf32, #tpu.memory_space<vmem>>
      %c0_i32_236 = arith.constant 0 : i32
      %229 = tpu.memref_slice %arg8[%1, %c0_i32_236] : memref<64x128xf32, #tpu.memory_space<any>> -> memref<1x128xf32, #tpu.memory_space<any>>
      %230 = tpu.memref_slice %arg11[%c1_i32_232, %c1_i32_233] : memref<2x8x!tpu.dma_semaphore, #tpu.memory_space<semaphore_mem>> -> memref<1x1x!tpu.dma_semaphore, #tpu.memory_space<semaphore_mem>>
      %231 = tpu.memref_squeeze %230 : memref<1x1x!tpu.dma_semaphore, #tpu.memory_space<semaphore_mem>> -> memref<!tpu.dma_semaphore, #tpu.memory_space<semaphore_mem>>
      tpu.enqueue_dma source(%228 : memref<1x128xf32, #tpu.memory_space<vmem>>) target(%229 : memref<1x128xf32, #tpu.memory_space<any>>) target_semaphore(%231 : memref<!tpu.dma_semaphore, #tpu.memory_space<semaphore_mem>>)
    } else {
    }
    %c1_i32_199 = arith.constant 1 : i32
    %182 = arith.cmpi eq, %10, %c1_i32_199 : i32
    %183 = arith.extui %182 : i1 to i32
    %c0_i32_200 = arith.constant 0 : i32
    %184 = arith.cmpi ne, %183, %c0_i32_200 : i32
    scf.if %184 {
      %c0_i32_227 = arith.constant 0 : i32
      %c2_i32_228 = arith.constant 2 : i32
      %c2_i32_229 = arith.constant 2 : i32
      %c0_i32_230 = arith.constant 0 : i32
      %224 = tpu.memref_slice %arg9[%c2_i32_229, %c0_i32_230] : memref<8x128xf32, #tpu.memory_space<vmem>> -> memref<1x128xf32, #tpu.memory_space<vmem>>
      %c0_i32_231 = arith.constant 0 : i32
      %225 = tpu.memref_slice %arg7[%2, %c0_i32_231] : memref<64x128xf32, #tpu.memory_space<any>> -> memref<1x128xf32, #tpu.memory_space<any>>
      %226 = tpu.memref_slice %arg11[%c0_i32_227, %c2_i32_228] : memref<2x8x!tpu.dma_semaphore, #tpu.memory_space<semaphore_mem>> -> memref<1x1x!tpu.dma_semaphore, #tpu.memory_space<semaphore_mem>>
      %227 = tpu.memref_squeeze %226 : memref<1x1x!tpu.dma_semaphore, #tpu.memory_space<semaphore_mem>> -> memref<!tpu.dma_semaphore, #tpu.memory_space<semaphore_mem>>
      tpu.enqueue_dma source(%224 : memref<1x128xf32, #tpu.memory_space<vmem>>) target(%225 : memref<1x128xf32, #tpu.memory_space<any>>) target_semaphore(%227 : memref<!tpu.dma_semaphore, #tpu.memory_space<semaphore_mem>>)
      %c1_i32_232 = arith.constant 1 : i32
      %c2_i32_233 = arith.constant 2 : i32
      %c2_i32_234 = arith.constant 2 : i32
      %c0_i32_235 = arith.constant 0 : i32
      %228 = tpu.memref_slice %arg10[%c2_i32_234, %c0_i32_235] : memref<8x128xf32, #tpu.memory_space<vmem>> -> memref<1x128xf32, #tpu.memory_space<vmem>>
      %c0_i32_236 = arith.constant 0 : i32
      %229 = tpu.memref_slice %arg8[%2, %c0_i32_236] : memref<64x128xf32, #tpu.memory_space<any>> -> memref<1x128xf32, #tpu.memory_space<any>>
      %230 = tpu.memref_slice %arg11[%c1_i32_232, %c2_i32_233] : memref<2x8x!tpu.dma_semaphore, #tpu.memory_space<semaphore_mem>> -> memref<1x1x!tpu.dma_semaphore, #tpu.memory_space<semaphore_mem>>
      %231 = tpu.memref_squeeze %230 : memref<1x1x!tpu.dma_semaphore, #tpu.memory_space<semaphore_mem>> -> memref<!tpu.dma_semaphore, #tpu.memory_space<semaphore_mem>>
      tpu.enqueue_dma source(%228 : memref<1x128xf32, #tpu.memory_space<vmem>>) target(%229 : memref<1x128xf32, #tpu.memory_space<any>>) target_semaphore(%231 : memref<!tpu.dma_semaphore, #tpu.memory_space<semaphore_mem>>)
    } else {
    }
    %c1_i32_201 = arith.constant 1 : i32
    %185 = arith.cmpi eq, %11, %c1_i32_201 : i32
    %186 = arith.extui %185 : i1 to i32
    %c0_i32_202 = arith.constant 0 : i32
    %187 = arith.cmpi ne, %186, %c0_i32_202 : i32
    scf.if %187 {
      %c0_i32_227 = arith.constant 0 : i32
      %c3_i32_228 = arith.constant 3 : i32
      %c3_i32_229 = arith.constant 3 : i32
      %c0_i32_230 = arith.constant 0 : i32
      %224 = tpu.memref_slice %arg9[%c3_i32_229, %c0_i32_230] : memref<8x128xf32, #tpu.memory_space<vmem>> -> memref<1x128xf32, #tpu.memory_space<vmem>>
      %c0_i32_231 = arith.constant 0 : i32
      %225 = tpu.memref_slice %arg7[%3, %c0_i32_231] : memref<64x128xf32, #tpu.memory_space<any>> -> memref<1x128xf32, #tpu.memory_space<any>>
      %226 = tpu.memref_slice %arg11[%c0_i32_227, %c3_i32_228] : memref<2x8x!tpu.dma_semaphore, #tpu.memory_space<semaphore_mem>> -> memref<1x1x!tpu.dma_semaphore, #tpu.memory_space<semaphore_mem>>
      %227 = tpu.memref_squeeze %226 : memref<1x1x!tpu.dma_semaphore, #tpu.memory_space<semaphore_mem>> -> memref<!tpu.dma_semaphore, #tpu.memory_space<semaphore_mem>>
      tpu.enqueue_dma source(%224 : memref<1x128xf32, #tpu.memory_space<vmem>>) target(%225 : memref<1x128xf32, #tpu.memory_space<any>>) target_semaphore(%227 : memref<!tpu.dma_semaphore, #tpu.memory_space<semaphore_mem>>)
      %c1_i32_232 = arith.constant 1 : i32
      %c3_i32_233 = arith.constant 3 : i32
      %c3_i32_234 = arith.constant 3 : i32
      %c0_i32_235 = arith.constant 0 : i32
      %228 = tpu.memref_slice %arg10[%c3_i32_234, %c0_i32_235] : memref<8x128xf32, #tpu.memory_space<vmem>> -> memref<1x128xf32, #tpu.memory_space<vmem>>
      %c0_i32_236 = arith.constant 0 : i32
      %229 = tpu.memref_slice %arg8[%3, %c0_i32_236] : memref<64x128xf32, #tpu.memory_space<any>> -> memref<1x128xf32, #tpu.memory_space<any>>
      %230 = tpu.memref_slice %arg11[%c1_i32_232, %c3_i32_233] : memref<2x8x!tpu.dma_semaphore, #tpu.memory_space<semaphore_mem>> -> memref<1x1x!tpu.dma_semaphore, #tpu.memory_space<semaphore_mem>>
      %231 = tpu.memref_squeeze %230 : memref<1x1x!tpu.dma_semaphore, #tpu.memory_space<semaphore_mem>> -> memref<!tpu.dma_semaphore, #tpu.memory_space<semaphore_mem>>
      tpu.enqueue_dma source(%228 : memref<1x128xf32, #tpu.memory_space<vmem>>) target(%229 : memref<1x128xf32, #tpu.memory_space<any>>) target_semaphore(%231 : memref<!tpu.dma_semaphore, #tpu.memory_space<semaphore_mem>>)
    } else {
    }
    %c1_i32_203 = arith.constant 1 : i32
    %188 = arith.cmpi eq, %12, %c1_i32_203 : i32
    %189 = arith.extui %188 : i1 to i32
    %c0_i32_204 = arith.constant 0 : i32
    %190 = arith.cmpi ne, %189, %c0_i32_204 : i32
    scf.if %190 {
      %c0_i32_227 = arith.constant 0 : i32
      %c4_i32_228 = arith.constant 4 : i32
      %c4_i32_229 = arith.constant 4 : i32
      %c0_i32_230 = arith.constant 0 : i32
      %224 = tpu.memref_slice %arg9[%c4_i32_229, %c0_i32_230] : memref<8x128xf32, #tpu.memory_space<vmem>> -> memref<1x128xf32, #tpu.memory_space<vmem>>
      %c0_i32_231 = arith.constant 0 : i32
      %225 = tpu.memref_slice %arg7[%4, %c0_i32_231] : memref<64x128xf32, #tpu.memory_space<any>> -> memref<1x128xf32, #tpu.memory_space<any>>
      %226 = tpu.memref_slice %arg11[%c0_i32_227, %c4_i32_228] : memref<2x8x!tpu.dma_semaphore, #tpu.memory_space<semaphore_mem>> -> memref<1x1x!tpu.dma_semaphore, #tpu.memory_space<semaphore_mem>>
      %227 = tpu.memref_squeeze %226 : memref<1x1x!tpu.dma_semaphore, #tpu.memory_space<semaphore_mem>> -> memref<!tpu.dma_semaphore, #tpu.memory_space<semaphore_mem>>
      tpu.enqueue_dma source(%224 : memref<1x128xf32, #tpu.memory_space<vmem>>) target(%225 : memref<1x128xf32, #tpu.memory_space<any>>) target_semaphore(%227 : memref<!tpu.dma_semaphore, #tpu.memory_space<semaphore_mem>>)
      %c1_i32_232 = arith.constant 1 : i32
      %c4_i32_233 = arith.constant 4 : i32
      %c4_i32_234 = arith.constant 4 : i32
      %c0_i32_235 = arith.constant 0 : i32
      %228 = tpu.memref_slice %arg10[%c4_i32_234, %c0_i32_235] : memref<8x128xf32, #tpu.memory_space<vmem>> -> memref<1x128xf32, #tpu.memory_space<vmem>>
      %c0_i32_236 = arith.constant 0 : i32
      %229 = tpu.memref_slice %arg8[%4, %c0_i32_236] : memref<64x128xf32, #tpu.memory_space<any>> -> memref<1x128xf32, #tpu.memory_space<any>>
      %230 = tpu.memref_slice %arg11[%c1_i32_232, %c4_i32_233] : memref<2x8x!tpu.dma_semaphore, #tpu.memory_space<semaphore_mem>> -> memref<1x1x!tpu.dma_semaphore, #tpu.memory_space<semaphore_mem>>
      %231 = tpu.memref_squeeze %230 : memref<1x1x!tpu.dma_semaphore, #tpu.memory_space<semaphore_mem>> -> memref<!tpu.dma_semaphore, #tpu.memory_space<semaphore_mem>>
      tpu.enqueue_dma source(%228 : memref<1x128xf32, #tpu.memory_space<vmem>>) target(%229 : memref<1x128xf32, #tpu.memory_space<any>>) target_semaphore(%231 : memref<!tpu.dma_semaphore, #tpu.memory_space<semaphore_mem>>)
    } else {
    }
    %c1_i32_205 = arith.constant 1 : i32
    %191 = arith.cmpi eq, %13, %c1_i32_205 : i32
    %192 = arith.extui %191 : i1 to i32
    %c0_i32_206 = arith.constant 0 : i32
    %193 = arith.cmpi ne, %192, %c0_i32_206 : i32
    scf.if %193 {
      %c0_i32_227 = arith.constant 0 : i32
      %c5_i32_228 = arith.constant 5 : i32
      %c5_i32_229 = arith.constant 5 : i32
      %c0_i32_230 = arith.constant 0 : i32
      %224 = tpu.memref_slice %arg9[%c5_i32_229, %c0_i32_230] : memref<8x128xf32, #tpu.memory_space<vmem>> -> memref<1x128xf32, #tpu.memory_space<vmem>>
      %c0_i32_231 = arith.constant 0 : i32
      %225 = tpu.memref_slice %arg7[%5, %c0_i32_231] : memref<64x128xf32, #tpu.memory_space<any>> -> memref<1x128xf32, #tpu.memory_space<any>>
      %226 = tpu.memref_slice %arg11[%c0_i32_227, %c5_i32_228] : memref<2x8x!tpu.dma_semaphore, #tpu.memory_space<semaphore_mem>> -> memref<1x1x!tpu.dma_semaphore, #tpu.memory_space<semaphore_mem>>
      %227 = tpu.memref_squeeze %226 : memref<1x1x!tpu.dma_semaphore, #tpu.memory_space<semaphore_mem>> -> memref<!tpu.dma_semaphore, #tpu.memory_space<semaphore_mem>>
      tpu.enqueue_dma source(%224 : memref<1x128xf32, #tpu.memory_space<vmem>>) target(%225 : memref<1x128xf32, #tpu.memory_space<any>>) target_semaphore(%227 : memref<!tpu.dma_semaphore, #tpu.memory_space<semaphore_mem>>)
      %c1_i32_232 = arith.constant 1 : i32
      %c5_i32_233 = arith.constant 5 : i32
      %c5_i32_234 = arith.constant 5 : i32
      %c0_i32_235 = arith.constant 0 : i32
      %228 = tpu.memref_slice %arg10[%c5_i32_234, %c0_i32_235] : memref<8x128xf32, #tpu.memory_space<vmem>> -> memref<1x128xf32, #tpu.memory_space<vmem>>
      %c0_i32_236 = arith.constant 0 : i32
      %229 = tpu.memref_slice %arg8[%5, %c0_i32_236] : memref<64x128xf32, #tpu.memory_space<any>> -> memref<1x128xf32, #tpu.memory_space<any>>
      %230 = tpu.memref_slice %arg11[%c1_i32_232, %c5_i32_233] : memref<2x8x!tpu.dma_semaphore, #tpu.memory_space<semaphore_mem>> -> memref<1x1x!tpu.dma_semaphore, #tpu.memory_space<semaphore_mem>>
      %231 = tpu.memref_squeeze %230 : memref<1x1x!tpu.dma_semaphore, #tpu.memory_space<semaphore_mem>> -> memref<!tpu.dma_semaphore, #tpu.memory_space<semaphore_mem>>
      tpu.enqueue_dma source(%228 : memref<1x128xf32, #tpu.memory_space<vmem>>) target(%229 : memref<1x128xf32, #tpu.memory_space<any>>) target_semaphore(%231 : memref<!tpu.dma_semaphore, #tpu.memory_space<semaphore_mem>>)
    } else {
    }
    %c1_i32_207 = arith.constant 1 : i32
    %194 = arith.cmpi eq, %14, %c1_i32_207 : i32
    %195 = arith.extui %194 : i1 to i32
    %c0_i32_208 = arith.constant 0 : i32
    %196 = arith.cmpi ne, %195, %c0_i32_208 : i32
    scf.if %196 {
      %c0_i32_227 = arith.constant 0 : i32
      %c6_i32_228 = arith.constant 6 : i32
      %c6_i32_229 = arith.constant 6 : i32
      %c0_i32_230 = arith.constant 0 : i32
      %224 = tpu.memref_slice %arg9[%c6_i32_229, %c0_i32_230] : memref<8x128xf32, #tpu.memory_space<vmem>> -> memref<1x128xf32, #tpu.memory_space<vmem>>
      %c0_i32_231 = arith.constant 0 : i32
      %225 = tpu.memref_slice %arg7[%6, %c0_i32_231] : memref<64x128xf32, #tpu.memory_space<any>> -> memref<1x128xf32, #tpu.memory_space<any>>
      %226 = tpu.memref_slice %arg11[%c0_i32_227, %c6_i32_228] : memref<2x8x!tpu.dma_semaphore, #tpu.memory_space<semaphore_mem>> -> memref<1x1x!tpu.dma_semaphore, #tpu.memory_space<semaphore_mem>>
      %227 = tpu.memref_squeeze %226 : memref<1x1x!tpu.dma_semaphore, #tpu.memory_space<semaphore_mem>> -> memref<!tpu.dma_semaphore, #tpu.memory_space<semaphore_mem>>
      tpu.enqueue_dma source(%224 : memref<1x128xf32, #tpu.memory_space<vmem>>) target(%225 : memref<1x128xf32, #tpu.memory_space<any>>) target_semaphore(%227 : memref<!tpu.dma_semaphore, #tpu.memory_space<semaphore_mem>>)
      %c1_i32_232 = arith.constant 1 : i32
      %c6_i32_233 = arith.constant 6 : i32
      %c6_i32_234 = arith.constant 6 : i32
      %c0_i32_235 = arith.constant 0 : i32
      %228 = tpu.memref_slice %arg10[%c6_i32_234, %c0_i32_235] : memref<8x128xf32, #tpu.memory_space<vmem>> -> memref<1x128xf32, #tpu.memory_space<vmem>>
      %c0_i32_236 = arith.constant 0 : i32
      %229 = tpu.memref_slice %arg8[%6, %c0_i32_236] : memref<64x128xf32, #tpu.memory_space<any>> -> memref<1x128xf32, #tpu.memory_space<any>>
      %230 = tpu.memref_slice %arg11[%c1_i32_232, %c6_i32_233] : memref<2x8x!tpu.dma_semaphore, #tpu.memory_space<semaphore_mem>> -> memref<1x1x!tpu.dma_semaphore, #tpu.memory_space<semaphore_mem>>
      %231 = tpu.memref_squeeze %230 : memref<1x1x!tpu.dma_semaphore, #tpu.memory_space<semaphore_mem>> -> memref<!tpu.dma_semaphore, #tpu.memory_space<semaphore_mem>>
      tpu.enqueue_dma source(%228 : memref<1x128xf32, #tpu.memory_space<vmem>>) target(%229 : memref<1x128xf32, #tpu.memory_space<any>>) target_semaphore(%231 : memref<!tpu.dma_semaphore, #tpu.memory_space<semaphore_mem>>)
    } else {
    }
    %c1_i32_209 = arith.constant 1 : i32
    %197 = arith.cmpi eq, %15, %c1_i32_209 : i32
    %198 = arith.extui %197 : i1 to i32
    %c0_i32_210 = arith.constant 0 : i32
    %199 = arith.cmpi ne, %198, %c0_i32_210 : i32
    scf.if %199 {
      %c0_i32_227 = arith.constant 0 : i32
      %c7_i32_228 = arith.constant 7 : i32
      %c7_i32_229 = arith.constant 7 : i32
      %c0_i32_230 = arith.constant 0 : i32
      %224 = tpu.memref_slice %arg9[%c7_i32_229, %c0_i32_230] : memref<8x128xf32, #tpu.memory_space<vmem>> -> memref<1x128xf32, #tpu.memory_space<vmem>>
      %c0_i32_231 = arith.constant 0 : i32
      %225 = tpu.memref_slice %arg7[%7, %c0_i32_231] : memref<64x128xf32, #tpu.memory_space<any>> -> memref<1x128xf32, #tpu.memory_space<any>>
      %226 = tpu.memref_slice %arg11[%c0_i32_227, %c7_i32_228] : memref<2x8x!tpu.dma_semaphore, #tpu.memory_space<semaphore_mem>> -> memref<1x1x!tpu.dma_semaphore, #tpu.memory_space<semaphore_mem>>
      %227 = tpu.memref_squeeze %226 : memref<1x1x!tpu.dma_semaphore, #tpu.memory_space<semaphore_mem>> -> memref<!tpu.dma_semaphore, #tpu.memory_space<semaphore_mem>>
      tpu.enqueue_dma source(%224 : memref<1x128xf32, #tpu.memory_space<vmem>>) target(%225 : memref<1x128xf32, #tpu.memory_space<any>>) target_semaphore(%227 : memref<!tpu.dma_semaphore, #tpu.memory_space<semaphore_mem>>)
      %c1_i32_232 = arith.constant 1 : i32
      %c7_i32_233 = arith.constant 7 : i32
      %c7_i32_234 = arith.constant 7 : i32
      %c0_i32_235 = arith.constant 0 : i32
      %228 = tpu.memref_slice %arg10[%c7_i32_234, %c0_i32_235] : memref<8x128xf32, #tpu.memory_space<vmem>> -> memref<1x128xf32, #tpu.memory_space<vmem>>
      %c0_i32_236 = arith.constant 0 : i32
      %229 = tpu.memref_slice %arg8[%7, %c0_i32_236] : memref<64x128xf32, #tpu.memory_space<any>> -> memref<1x128xf32, #tpu.memory_space<any>>
      %230 = tpu.memref_slice %arg11[%c1_i32_232, %c7_i32_233] : memref<2x8x!tpu.dma_semaphore, #tpu.memory_space<semaphore_mem>> -> memref<1x1x!tpu.dma_semaphore, #tpu.memory_space<semaphore_mem>>
      %231 = tpu.memref_squeeze %230 : memref<1x1x!tpu.dma_semaphore, #tpu.memory_space<semaphore_mem>> -> memref<!tpu.dma_semaphore, #tpu.memory_space<semaphore_mem>>
      tpu.enqueue_dma source(%228 : memref<1x128xf32, #tpu.memory_space<vmem>>) target(%229 : memref<1x128xf32, #tpu.memory_space<any>>) target_semaphore(%231 : memref<!tpu.dma_semaphore, #tpu.memory_space<semaphore_mem>>)
    } else {
    }
    %c1_i32_211 = arith.constant 1 : i32
    %200 = arith.cmpi eq, %8, %c1_i32_211 : i32
    %201 = arith.extui %200 : i1 to i32
    %c0_i32_212 = arith.constant 0 : i32
    %202 = arith.cmpi ne, %201, %c0_i32_212 : i32
    scf.if %202 {
      %c0_i32_227 = arith.constant 0 : i32
      %c0_i32_228 = arith.constant 0 : i32
      %c0_i32_229 = arith.constant 0 : i32
      %c0_i32_230 = arith.constant 0 : i32
      %224 = tpu.memref_slice %arg9[%c0_i32_229, %c0_i32_230] : memref<8x128xf32, #tpu.memory_space<vmem>> -> memref<1x128xf32, #tpu.memory_space<vmem>>
      %c0_i32_231 = arith.constant 0 : i32
      %c0_i32_232 = arith.constant 0 : i32
      %225 = tpu.memref_slice %arg7[%c0_i32_231, %c0_i32_232] : memref<64x128xf32, #tpu.memory_space<any>> -> memref<1x128xf32, #tpu.memory_space<any>>
      %226 = tpu.memref_slice %arg11[%c0_i32_227, %c0_i32_228] : memref<2x8x!tpu.dma_semaphore, #tpu.memory_space<semaphore_mem>> -> memref<1x1x!tpu.dma_semaphore, #tpu.memory_space<semaphore_mem>>
      %227 = tpu.memref_squeeze %226 : memref<1x1x!tpu.dma_semaphore, #tpu.memory_space<semaphore_mem>> -> memref<!tpu.dma_semaphore, #tpu.memory_space<semaphore_mem>>
      tpu.wait_dma2 semaphore(%227 : memref<!tpu.dma_semaphore, #tpu.memory_space<semaphore_mem>>) src(%224 : memref<1x128xf32, #tpu.memory_space<vmem>>) dst(%225 : memref<1x128xf32, #tpu.memory_space<any>>)
      %c1_i32_233 = arith.constant 1 : i32
      %c0_i32_234 = arith.constant 0 : i32
      %c0_i32_235 = arith.constant 0 : i32
      %c0_i32_236 = arith.constant 0 : i32
      %228 = tpu.memref_slice %arg10[%c0_i32_235, %c0_i32_236] : memref<8x128xf32, #tpu.memory_space<vmem>> -> memref<1x128xf32, #tpu.memory_space<vmem>>
      %c0_i32_237 = arith.constant 0 : i32
      %c0_i32_238 = arith.constant 0 : i32
      %229 = tpu.memref_slice %arg8[%c0_i32_237, %c0_i32_238] : memref<64x128xf32, #tpu.memory_space<any>> -> memref<1x128xf32, #tpu.memory_space<any>>
      %230 = tpu.memref_slice %arg11[%c1_i32_233, %c0_i32_234] : memref<2x8x!tpu.dma_semaphore, #tpu.memory_space<semaphore_mem>> -> memref<1x1x!tpu.dma_semaphore, #tpu.memory_space<semaphore_mem>>
      %231 = tpu.memref_squeeze %230 : memref<1x1x!tpu.dma_semaphore, #tpu.memory_space<semaphore_mem>> -> memref<!tpu.dma_semaphore, #tpu.memory_space<semaphore_mem>>
      tpu.wait_dma2 semaphore(%231 : memref<!tpu.dma_semaphore, #tpu.memory_space<semaphore_mem>>) src(%228 : memref<1x128xf32, #tpu.memory_space<vmem>>) dst(%229 : memref<1x128xf32, #tpu.memory_space<any>>)
    } else {
    }
    %c1_i32_213 = arith.constant 1 : i32
    %203 = arith.cmpi eq, %9, %c1_i32_213 : i32
    %204 = arith.extui %203 : i1 to i32
    %c0_i32_214 = arith.constant 0 : i32
    %205 = arith.cmpi ne, %204, %c0_i32_214 : i32
    scf.if %205 {
      %c0_i32_227 = arith.constant 0 : i32
      %c1_i32_228 = arith.constant 1 : i32
      %c1_i32_229 = arith.constant 1 : i32
      %c0_i32_230 = arith.constant 0 : i32
      %224 = tpu.memref_slice %arg9[%c1_i32_229, %c0_i32_230] : memref<8x128xf32, #tpu.memory_space<vmem>> -> memref<1x128xf32, #tpu.memory_space<vmem>>
      %c0_i32_231 = arith.constant 0 : i32
      %c0_i32_232 = arith.constant 0 : i32
      %225 = tpu.memref_slice %arg7[%c0_i32_231, %c0_i32_232] : memref<64x128xf32, #tpu.memory_space<any>> -> memref<1x128xf32, #tpu.memory_space<any>>
      %226 = tpu.memref_slice %arg11[%c0_i32_227, %c1_i32_228] : memref<2x8x!tpu.dma_semaphore, #tpu.memory_space<semaphore_mem>> -> memref<1x1x!tpu.dma_semaphore, #tpu.memory_space<semaphore_mem>>
      %227 = tpu.memref_squeeze %226 : memref<1x1x!tpu.dma_semaphore, #tpu.memory_space<semaphore_mem>> -> memref<!tpu.dma_semaphore, #tpu.memory_space<semaphore_mem>>
      tpu.wait_dma2 semaphore(%227 : memref<!tpu.dma_semaphore, #tpu.memory_space<semaphore_mem>>) src(%224 : memref<1x128xf32, #tpu.memory_space<vmem>>) dst(%225 : memref<1x128xf32, #tpu.memory_space<any>>)
      %c1_i32_233 = arith.constant 1 : i32
      %c1_i32_234 = arith.constant 1 : i32
      %c1_i32_235 = arith.constant 1 : i32
      %c0_i32_236 = arith.constant 0 : i32
      %228 = tpu.memref_slice %arg10[%c1_i32_235, %c0_i32_236] : memref<8x128xf32, #tpu.memory_space<vmem>> -> memref<1x128xf32, #tpu.memory_space<vmem>>
      %c0_i32_237 = arith.constant 0 : i32
      %c0_i32_238 = arith.constant 0 : i32
      %229 = tpu.memref_slice %arg8[%c0_i32_237, %c0_i32_238] : memref<64x128xf32, #tpu.memory_space<any>> -> memref<1x128xf32, #tpu.memory_space<any>>
      %230 = tpu.memref_slice %arg11[%c1_i32_233, %c1_i32_234] : memref<2x8x!tpu.dma_semaphore, #tpu.memory_space<semaphore_mem>> -> memref<1x1x!tpu.dma_semaphore, #tpu.memory_space<semaphore_mem>>
      %231 = tpu.memref_squeeze %230 : memref<1x1x!tpu.dma_semaphore, #tpu.memory_space<semaphore_mem>> -> memref<!tpu.dma_semaphore, #tpu.memory_space<semaphore_mem>>
      tpu.wait_dma2 semaphore(%231 : memref<!tpu.dma_semaphore, #tpu.memory_space<semaphore_mem>>) src(%228 : memref<1x128xf32, #tpu.memory_space<vmem>>) dst(%229 : memref<1x128xf32, #tpu.memory_space<any>>)
    } else {
    }
    %c1_i32_215 = arith.constant 1 : i32
    %206 = arith.cmpi eq, %10, %c1_i32_215 : i32
    %207 = arith.extui %206 : i1 to i32
    %c0_i32_216 = arith.constant 0 : i32
    %208 = arith.cmpi ne, %207, %c0_i32_216 : i32
    scf.if %208 {
      %c0_i32_227 = arith.constant 0 : i32
      %c2_i32_228 = arith.constant 2 : i32
      %c2_i32_229 = arith.constant 2 : i32
      %c0_i32_230 = arith.constant 0 : i32
      %224 = tpu.memref_slice %arg9[%c2_i32_229, %c0_i32_230] : memref<8x128xf32, #tpu.memory_space<vmem>> -> memref<1x128xf32, #tpu.memory_space<vmem>>
      %c0_i32_231 = arith.constant 0 : i32
      %c0_i32_232 = arith.constant 0 : i32
      %225 = tpu.memref_slice %arg7[%c0_i32_231, %c0_i32_232] : memref<64x128xf32, #tpu.memory_space<any>> -> memref<1x128xf32, #tpu.memory_space<any>>
      %226 = tpu.memref_slice %arg11[%c0_i32_227, %c2_i32_228] : memref<2x8x!tpu.dma_semaphore, #tpu.memory_space<semaphore_mem>> -> memref<1x1x!tpu.dma_semaphore, #tpu.memory_space<semaphore_mem>>
      %227 = tpu.memref_squeeze %226 : memref<1x1x!tpu.dma_semaphore, #tpu.memory_space<semaphore_mem>> -> memref<!tpu.dma_semaphore, #tpu.memory_space<semaphore_mem>>
      tpu.wait_dma2 semaphore(%227 : memref<!tpu.dma_semaphore, #tpu.memory_space<semaphore_mem>>) src(%224 : memref<1x128xf32, #tpu.memory_space<vmem>>) dst(%225 : memref<1x128xf32, #tpu.memory_space<any>>)
      %c1_i32_233 = arith.constant 1 : i32
      %c2_i32_234 = arith.constant 2 : i32
      %c2_i32_235 = arith.constant 2 : i32
      %c0_i32_236 = arith.constant 0 : i32
      %228 = tpu.memref_slice %arg10[%c2_i32_235, %c0_i32_236] : memref<8x128xf32, #tpu.memory_space<vmem>> -> memref<1x128xf32, #tpu.memory_space<vmem>>
      %c0_i32_237 = arith.constant 0 : i32
      %c0_i32_238 = arith.constant 0 : i32
      %229 = tpu.memref_slice %arg8[%c0_i32_237, %c0_i32_238] : memref<64x128xf32, #tpu.memory_space<any>> -> memref<1x128xf32, #tpu.memory_space<any>>
      %230 = tpu.memref_slice %arg11[%c1_i32_233, %c2_i32_234] : memref<2x8x!tpu.dma_semaphore, #tpu.memory_space<semaphore_mem>> -> memref<1x1x!tpu.dma_semaphore, #tpu.memory_space<semaphore_mem>>
      %231 = tpu.memref_squeeze %230 : memref<1x1x!tpu.dma_semaphore, #tpu.memory_space<semaphore_mem>> -> memref<!tpu.dma_semaphore, #tpu.memory_space<semaphore_mem>>
      tpu.wait_dma2 semaphore(%231 : memref<!tpu.dma_semaphore, #tpu.memory_space<semaphore_mem>>) src(%228 : memref<1x128xf32, #tpu.memory_space<vmem>>) dst(%229 : memref<1x128xf32, #tpu.memory_space<any>>)
    } else {
    }
    %c1_i32_217 = arith.constant 1 : i32
    %209 = arith.cmpi eq, %11, %c1_i32_217 : i32
    %210 = arith.extui %209 : i1 to i32
    %c0_i32_218 = arith.constant 0 : i32
    %211 = arith.cmpi ne, %210, %c0_i32_218 : i32
    scf.if %211 {
      %c0_i32_227 = arith.constant 0 : i32
      %c3_i32_228 = arith.constant 3 : i32
      %c3_i32_229 = arith.constant 3 : i32
      %c0_i32_230 = arith.constant 0 : i32
      %224 = tpu.memref_slice %arg9[%c3_i32_229, %c0_i32_230] : memref<8x128xf32, #tpu.memory_space<vmem>> -> memref<1x128xf32, #tpu.memory_space<vmem>>
      %c0_i32_231 = arith.constant 0 : i32
      %c0_i32_232 = arith.constant 0 : i32
      %225 = tpu.memref_slice %arg7[%c0_i32_231, %c0_i32_232] : memref<64x128xf32, #tpu.memory_space<any>> -> memref<1x128xf32, #tpu.memory_space<any>>
      %226 = tpu.memref_slice %arg11[%c0_i32_227, %c3_i32_228] : memref<2x8x!tpu.dma_semaphore, #tpu.memory_space<semaphore_mem>> -> memref<1x1x!tpu.dma_semaphore, #tpu.memory_space<semaphore_mem>>
      %227 = tpu.memref_squeeze %226 : memref<1x1x!tpu.dma_semaphore, #tpu.memory_space<semaphore_mem>> -> memref<!tpu.dma_semaphore, #tpu.memory_space<semaphore_mem>>
      tpu.wait_dma2 semaphore(%227 : memref<!tpu.dma_semaphore, #tpu.memory_space<semaphore_mem>>) src(%224 : memref<1x128xf32, #tpu.memory_space<vmem>>) dst(%225 : memref<1x128xf32, #tpu.memory_space<any>>)
      %c1_i32_233 = arith.constant 1 : i32
      %c3_i32_234 = arith.constant 3 : i32
      %c3_i32_235 = arith.constant 3 : i32
      %c0_i32_236 = arith.constant 0 : i32
      %228 = tpu.memref_slice %arg10[%c3_i32_235, %c0_i32_236] : memref<8x128xf32, #tpu.memory_space<vmem>> -> memref<1x128xf32, #tpu.memory_space<vmem>>
      %c0_i32_237 = arith.constant 0 : i32
      %c0_i32_238 = arith.constant 0 : i32
      %229 = tpu.memref_slice %arg8[%c0_i32_237, %c0_i32_238] : memref<64x128xf32, #tpu.memory_space<any>> -> memref<1x128xf32, #tpu.memory_space<any>>
      %230 = tpu.memref_slice %arg11[%c1_i32_233, %c3_i32_234] : memref<2x8x!tpu.dma_semaphore, #tpu.memory_space<semaphore_mem>> -> memref<1x1x!tpu.dma_semaphore, #tpu.memory_space<semaphore_mem>>
      %231 = tpu.memref_squeeze %230 : memref<1x1x!tpu.dma_semaphore, #tpu.memory_space<semaphore_mem>> -> memref<!tpu.dma_semaphore, #tpu.memory_space<semaphore_mem>>
      tpu.wait_dma2 semaphore(%231 : memref<!tpu.dma_semaphore, #tpu.memory_space<semaphore_mem>>) src(%228 : memref<1x128xf32, #tpu.memory_space<vmem>>) dst(%229 : memref<1x128xf32, #tpu.memory_space<any>>)
    } else {
    }
    %c1_i32_219 = arith.constant 1 : i32
    %212 = arith.cmpi eq, %12, %c1_i32_219 : i32
    %213 = arith.extui %212 : i1 to i32
    %c0_i32_220 = arith.constant 0 : i32
    %214 = arith.cmpi ne, %213, %c0_i32_220 : i32
    scf.if %214 {
      %c0_i32_227 = arith.constant 0 : i32
      %c4_i32_228 = arith.constant 4 : i32
      %c4_i32_229 = arith.constant 4 : i32
      %c0_i32_230 = arith.constant 0 : i32
      %224 = tpu.memref_slice %arg9[%c4_i32_229, %c0_i32_230] : memref<8x128xf32, #tpu.memory_space<vmem>> -> memref<1x128xf32, #tpu.memory_space<vmem>>
      %c0_i32_231 = arith.constant 0 : i32
      %c0_i32_232 = arith.constant 0 : i32
      %225 = tpu.memref_slice %arg7[%c0_i32_231, %c0_i32_232] : memref<64x128xf32, #tpu.memory_space<any>> -> memref<1x128xf32, #tpu.memory_space<any>>
      %226 = tpu.memref_slice %arg11[%c0_i32_227, %c4_i32_228] : memref<2x8x!tpu.dma_semaphore, #tpu.memory_space<semaphore_mem>> -> memref<1x1x!tpu.dma_semaphore, #tpu.memory_space<semaphore_mem>>
      %227 = tpu.memref_squeeze %226 : memref<1x1x!tpu.dma_semaphore, #tpu.memory_space<semaphore_mem>> -> memref<!tpu.dma_semaphore, #tpu.memory_space<semaphore_mem>>
      tpu.wait_dma2 semaphore(%227 : memref<!tpu.dma_semaphore, #tpu.memory_space<semaphore_mem>>) src(%224 : memref<1x128xf32, #tpu.memory_space<vmem>>) dst(%225 : memref<1x128xf32, #tpu.memory_space<any>>)
      %c1_i32_233 = arith.constant 1 : i32
      %c4_i32_234 = arith.constant 4 : i32
      %c4_i32_235 = arith.constant 4 : i32
      %c0_i32_236 = arith.constant 0 : i32
      %228 = tpu.memref_slice %arg10[%c4_i32_235, %c0_i32_236] : memref<8x128xf32, #tpu.memory_space<vmem>> -> memref<1x128xf32, #tpu.memory_space<vmem>>
      %c0_i32_237 = arith.constant 0 : i32
      %c0_i32_238 = arith.constant 0 : i32
      %229 = tpu.memref_slice %arg8[%c0_i32_237, %c0_i32_238] : memref<64x128xf32, #tpu.memory_space<any>> -> memref<1x128xf32, #tpu.memory_space<any>>
      %230 = tpu.memref_slice %arg11[%c1_i32_233, %c4_i32_234] : memref<2x8x!tpu.dma_semaphore, #tpu.memory_space<semaphore_mem>> -> memref<1x1x!tpu.dma_semaphore, #tpu.memory_space<semaphore_mem>>
      %231 = tpu.memref_squeeze %230 : memref<1x1x!tpu.dma_semaphore, #tpu.memory_space<semaphore_mem>> -> memref<!tpu.dma_semaphore, #tpu.memory_space<semaphore_mem>>
      tpu.wait_dma2 semaphore(%231 : memref<!tpu.dma_semaphore, #tpu.memory_space<semaphore_mem>>) src(%228 : memref<1x128xf32, #tpu.memory_space<vmem>>) dst(%229 : memref<1x128xf32, #tpu.memory_space<any>>)
    } else {
    }
    %c1_i32_221 = arith.constant 1 : i32
    %215 = arith.cmpi eq, %13, %c1_i32_221 : i32
    %216 = arith.extui %215 : i1 to i32
    %c0_i32_222 = arith.constant 0 : i32
    %217 = arith.cmpi ne, %216, %c0_i32_222 : i32
    scf.if %217 {
      %c0_i32_227 = arith.constant 0 : i32
      %c5_i32_228 = arith.constant 5 : i32
      %c5_i32_229 = arith.constant 5 : i32
      %c0_i32_230 = arith.constant 0 : i32
      %224 = tpu.memref_slice %arg9[%c5_i32_229, %c0_i32_230] : memref<8x128xf32, #tpu.memory_space<vmem>> -> memref<1x128xf32, #tpu.memory_space<vmem>>
      %c0_i32_231 = arith.constant 0 : i32
      %c0_i32_232 = arith.constant 0 : i32
      %225 = tpu.memref_slice %arg7[%c0_i32_231, %c0_i32_232] : memref<64x128xf32, #tpu.memory_space<any>> -> memref<1x128xf32, #tpu.memory_space<any>>
      %226 = tpu.memref_slice %arg11[%c0_i32_227, %c5_i32_228] : memref<2x8x!tpu.dma_semaphore, #tpu.memory_space<semaphore_mem>> -> memref<1x1x!tpu.dma_semaphore, #tpu.memory_space<semaphore_mem>>
      %227 = tpu.memref_squeeze %226 : memref<1x1x!tpu.dma_semaphore, #tpu.memory_space<semaphore_mem>> -> memref<!tpu.dma_semaphore, #tpu.memory_space<semaphore_mem>>
      tpu.wait_dma2 semaphore(%227 : memref<!tpu.dma_semaphore, #tpu.memory_space<semaphore_mem>>) src(%224 : memref<1x128xf32, #tpu.memory_space<vmem>>) dst(%225 : memref<1x128xf32, #tpu.memory_space<any>>)
      %c1_i32_233 = arith.constant 1 : i32
      %c5_i32_234 = arith.constant 5 : i32
      %c5_i32_235 = arith.constant 5 : i32
      %c0_i32_236 = arith.constant 0 : i32
      %228 = tpu.memref_slice %arg10[%c5_i32_235, %c0_i32_236] : memref<8x128xf32, #tpu.memory_space<vmem>> -> memref<1x128xf32, #tpu.memory_space<vmem>>
      %c0_i32_237 = arith.constant 0 : i32
      %c0_i32_238 = arith.constant 0 : i32
      %229 = tpu.memref_slice %arg8[%c0_i32_237, %c0_i32_238] : memref<64x128xf32, #tpu.memory_space<any>> -> memref<1x128xf32, #tpu.memory_space<any>>
      %230 = tpu.memref_slice %arg11[%c1_i32_233, %c5_i32_234] : memref<2x8x!tpu.dma_semaphore, #tpu.memory_space<semaphore_mem>> -> memref<1x1x!tpu.dma_semaphore, #tpu.memory_space<semaphore_mem>>
      %231 = tpu.memref_squeeze %230 : memref<1x1x!tpu.dma_semaphore, #tpu.memory_space<semaphore_mem>> -> memref<!tpu.dma_semaphore, #tpu.memory_space<semaphore_mem>>
      tpu.wait_dma2 semaphore(%231 : memref<!tpu.dma_semaphore, #tpu.memory_space<semaphore_mem>>) src(%228 : memref<1x128xf32, #tpu.memory_space<vmem>>) dst(%229 : memref<1x128xf32, #tpu.memory_space<any>>)
    } else {
    }
    %c1_i32_223 = arith.constant 1 : i32
    %218 = arith.cmpi eq, %14, %c1_i32_223 : i32
    %219 = arith.extui %218 : i1 to i32
    %c0_i32_224 = arith.constant 0 : i32
    %220 = arith.cmpi ne, %219, %c0_i32_224 : i32
    scf.if %220 {
      %c0_i32_227 = arith.constant 0 : i32
      %c6_i32_228 = arith.constant 6 : i32
      %c6_i32_229 = arith.constant 6 : i32
      %c0_i32_230 = arith.constant 0 : i32
      %224 = tpu.memref_slice %arg9[%c6_i32_229, %c0_i32_230] : memref<8x128xf32, #tpu.memory_space<vmem>> -> memref<1x128xf32, #tpu.memory_space<vmem>>
      %c0_i32_231 = arith.constant 0 : i32
      %c0_i32_232 = arith.constant 0 : i32
      %225 = tpu.memref_slice %arg7[%c0_i32_231, %c0_i32_232] : memref<64x128xf32, #tpu.memory_space<any>> -> memref<1x128xf32, #tpu.memory_space<any>>
      %226 = tpu.memref_slice %arg11[%c0_i32_227, %c6_i32_228] : memref<2x8x!tpu.dma_semaphore, #tpu.memory_space<semaphore_mem>> -> memref<1x1x!tpu.dma_semaphore, #tpu.memory_space<semaphore_mem>>
      %227 = tpu.memref_squeeze %226 : memref<1x1x!tpu.dma_semaphore, #tpu.memory_space<semaphore_mem>> -> memref<!tpu.dma_semaphore, #tpu.memory_space<semaphore_mem>>
      tpu.wait_dma2 semaphore(%227 : memref<!tpu.dma_semaphore, #tpu.memory_space<semaphore_mem>>) src(%224 : memref<1x128xf32, #tpu.memory_space<vmem>>) dst(%225 : memref<1x128xf32, #tpu.memory_space<any>>)
      %c1_i32_233 = arith.constant 1 : i32
      %c6_i32_234 = arith.constant 6 : i32
      %c6_i32_235 = arith.constant 6 : i32
      %c0_i32_236 = arith.constant 0 : i32
      %228 = tpu.memref_slice %arg10[%c6_i32_235, %c0_i32_236] : memref<8x128xf32, #tpu.memory_space<vmem>> -> memref<1x128xf32, #tpu.memory_space<vmem>>
      %c0_i32_237 = arith.constant 0 : i32
      %c0_i32_238 = arith.constant 0 : i32
      %229 = tpu.memref_slice %arg8[%c0_i32_237, %c0_i32_238] : memref<64x128xf32, #tpu.memory_space<any>> -> memref<1x128xf32, #tpu.memory_space<any>>
      %230 = tpu.memref_slice %arg11[%c1_i32_233, %c6_i32_234] : memref<2x8x!tpu.dma_semaphore, #tpu.memory_space<semaphore_mem>> -> memref<1x1x!tpu.dma_semaphore, #tpu.memory_space<semaphore_mem>>
      %231 = tpu.memref_squeeze %230 : memref<1x1x!tpu.dma_semaphore, #tpu.memory_space<semaphore_mem>> -> memref<!tpu.dma_semaphore, #tpu.memory_space<semaphore_mem>>
      tpu.wait_dma2 semaphore(%231 : memref<!tpu.dma_semaphore, #tpu.memory_space<semaphore_mem>>) src(%228 : memref<1x128xf32, #tpu.memory_space<vmem>>) dst(%229 : memref<1x128xf32, #tpu.memory_space<any>>)
    } else {
    }
    %c1_i32_225 = arith.constant 1 : i32
    %221 = arith.cmpi eq, %15, %c1_i32_225 : i32
    %222 = arith.extui %221 : i1 to i32
    %c0_i32_226 = arith.constant 0 : i32
    %223 = arith.cmpi ne, %222, %c0_i32_226 : i32
    scf.if %223 {
      %c0_i32_227 = arith.constant 0 : i32
      %c7_i32_228 = arith.constant 7 : i32
      %c7_i32_229 = arith.constant 7 : i32
      %c0_i32_230 = arith.constant 0 : i32
      %224 = tpu.memref_slice %arg9[%c7_i32_229, %c0_i32_230] : memref<8x128xf32, #tpu.memory_space<vmem>> -> memref<1x128xf32, #tpu.memory_space<vmem>>
      %c0_i32_231 = arith.constant 0 : i32
      %c0_i32_232 = arith.constant 0 : i32
      %225 = tpu.memref_slice %arg7[%c0_i32_231, %c0_i32_232] : memref<64x128xf32, #tpu.memory_space<any>> -> memref<1x128xf32, #tpu.memory_space<any>>
      %226 = tpu.memref_slice %arg11[%c0_i32_227, %c7_i32_228] : memref<2x8x!tpu.dma_semaphore, #tpu.memory_space<semaphore_mem>> -> memref<1x1x!tpu.dma_semaphore, #tpu.memory_space<semaphore_mem>>
      %227 = tpu.memref_squeeze %226 : memref<1x1x!tpu.dma_semaphore, #tpu.memory_space<semaphore_mem>> -> memref<!tpu.dma_semaphore, #tpu.memory_space<semaphore_mem>>
      tpu.wait_dma2 semaphore(%227 : memref<!tpu.dma_semaphore, #tpu.memory_space<semaphore_mem>>) src(%224 : memref<1x128xf32, #tpu.memory_space<vmem>>) dst(%225 : memref<1x128xf32, #tpu.memory_space<any>>)
      %c1_i32_233 = arith.constant 1 : i32
      %c7_i32_234 = arith.constant 7 : i32
      %c7_i32_235 = arith.constant 7 : i32
      %c0_i32_236 = arith.constant 0 : i32
      %228 = tpu.memref_slice %arg10[%c7_i32_235, %c0_i32_236] : memref<8x128xf32, #tpu.memory_space<vmem>> -> memref<1x128xf32, #tpu.memory_space<vmem>>
      %c0_i32_237 = arith.constant 0 : i32
      %c0_i32_238 = arith.constant 0 : i32
      %229 = tpu.memref_slice %arg8[%c0_i32_237, %c0_i32_238] : memref<64x128xf32, #tpu.memory_space<any>> -> memref<1x128xf32, #tpu.memory_space<any>>
      %230 = tpu.memref_slice %arg11[%c1_i32_233, %c7_i32_234] : memref<2x8x!tpu.dma_semaphore, #tpu.memory_space<semaphore_mem>> -> memref<1x1x!tpu.dma_semaphore, #tpu.memory_space<semaphore_mem>>
      %231 = tpu.memref_squeeze %230 : memref<1x1x!tpu.dma_semaphore, #tpu.memory_space<semaphore_mem>> -> memref<!tpu.dma_semaphore, #tpu.memory_space<semaphore_mem>>
      tpu.wait_dma2 semaphore(%231 : memref<!tpu.dma_semaphore, #tpu.memory_space<semaphore_mem>>) src(%228 : memref<1x128xf32, #tpu.memory_space<vmem>>) dst(%229 : memref<1x128xf32, #tpu.memory_space<any>>)
    } else {
    }
    return
  }
  func.func @transform_0(%arg0: i32) -> i32 {
    %c0_i32 = arith.constant 0 : i32
    %c0_i32_0 = arith.constant 0 : i32
    return %c0_i32 : i32
  }
  func.func @transform_1(%arg0: i32) -> i32 {
    %c0_i32 = arith.constant 0 : i32
    %c0_i32_0 = arith.constant 0 : i32
    return %c0_i32 : i32
  }
  func.func @transform_2(%arg0: i32) -> (i32, i32) {
    %c0_i32 = arith.constant 0 : i32
    %c0_i32_0 = arith.constant 0 : i32
    %c0_i32_1 = arith.constant 0 : i32
    return %c0_i32, %c0_i32_0 : i32, i32
  }
  func.func @transform_3(%arg0: i32) -> (i32, i32) {
    %c0_i32 = arith.constant 0 : i32
    %c0_i32_0 = arith.constant 0 : i32
    %c0_i32_1 = arith.constant 0 : i32
    return %c0_i32, %c0_i32_0 : i32, i32
  }
}

</mosaic_0001>

<bundles_post_ra>
// kernel: contrast_memory_forward.2
= control target key start
LH: loop header
LB: loop body
LE: loop exit
PB: predicated region body
PF: predicated region fallthrough
CT: control target
= control target key end

     0   :  { %s1339_s30 = smov [#allocation9]   ;;  %s1543_s0 = inlined_call_operand.vmem [shape: s32[128], index: 0, kind: input, shape index: {}]   ;;  %s1544_s1 = inlined_call_operand.vmem [shape: f32[2,8,128], index: 1, kind: input, shape index: {}]   ;;  %s1545_s2 = inlined_call_operand.vmem [shape: bf16[2,128,128], index: 2, kind: input, shape index: {}]   ;;  %s1546_s3 = inlined_call_operand.vmem [shape: f32[2,1,128], index: 3, kind: input, shape index: {}]   ;;  %s1547_s4 = inlined_call_operand.vmem [shape: bf16[2,128,128], index: 4, kind: input, shape index: {}]   ;;  %s1548_s5 = inlined_call_operand.vmem [shape: f32[2,1,128], index: 5, kind: input, shape index: {}]   ;;  %s1549_s6 = inlined_call_operand.vmem [shape: f32[64,128], index: 6, kind: input, shape index: {}]   ;;  %s1550_s7 = inlined_call_operand.vmem [shape: f32[64,128], index: 7, kind: input, shape index: {}]   ;;  %s1551_s8 = inlined_call_operand.vmem [shape: f32[2,8,128], index: 8, kind: output, shape index: {}]  }
   0x1   :  { %1553 = sst [smem:[#allocation19_spill]] %s1544_s1  ;;  %s14_s29 = sshll.u32 %s1543_s0, 4  ;;  %s15_s29 = int_to_ptr.vmem [resolvable:$true] %s14_s29 }
   0x2   :  { %17 = dma.vmem_to_smem %s15_s29, 16, %s1339_s30, [#allocation8] }
   0x3   :  { %1295 = dma.done.wait [#allocation8], 16 }
   0x4   :  { %1296 = vsyncadd [#allocation8], 4294967280 }
   0x5   :  { %20 = sfence }
   0x6   :  { %s1392_s9 = smov 0   ;;  %s1394_s10 = smov 0  }
   0x7   :  { %s1396_s11 = smov 0   ;;  %s1398_s12 = smov 0  }
   0x8   :  { %s1400_s13 = smov 0  }
   0x9 LB: > { %1554 = sst [smem:[#allocation16_spill]] %s1313_s12  ;;  %s35_s0 = sadd.s32 1, %s1309_s11  ;;  %s1317_s13 = sphi %s1400_s13, %s26_s13   ;;  %s1313_s12 = sphi %s1398_s12, %s1560_s12   ;;  %s1309_s11 = sphi %s1396_s11, %s1562_s11   ;;  %s1305_s10 = sphi %s1394_s10, %s1558_s10   ;;  %s1301_s9 = sphi %s1392_s9, %s1561_s9  }
   0xa   : > { %s38_s14 = sadd.s32 1, %s1313_s12  ;;  %p36_p0 = scmp.ge.s32.totalorder %s35_s0, 2 }
   0xb   : > { %p1024_p1 = scmp.ge.s32.totalorder %s1317_s13, 1  ;;  %p245_p2 = scmp.lt.s32.totalorder %s1317_s13, 5 }
   0xc   : > { %s1564_s0 = smov (%p36_p0, %s35_s0), 0  ;;  %s1566_s14 = smov (!%p36_p0, %s38_s14), %s1313_s12 }
   0xd   : > { %1555 = sst [smem:[#allocation17_spill]] %s1564_s0  ;;  %p246_p3 = pnand %p1024_p1, %p245_p2 }
   0xe   : > { %p40_p4 = scmp.ge.s32.totalorder %s1566_s14, 2  ;;  %p287_p5 = scmp.lt.s32.totalorder (!%p246_p3), %s1305_s10, 1 }
   0xf   : > { %249 = sbr.rel (%p246_p3) target bundleno = 1193 (0x4a9), region = 40  ;;  %s313_s15 = ssub.s32 (!%p246_p3), 0, %s1301_s9 }
  0x10   : > { %s1568_s14 = smov (%p40_p4, %s1566_s14), 0  ;;  %p312_p6 = scmp.lt.s32.totalorder (!%p246_p3), %s1301_s9, 0 }
  0x11   : > { %1556 = sst [smem:[#allocation18_spill]] %s1568_s14  ;;  %s1031_s17 = smin.u32 (!%p246_p3), %s1301_s9, %s313_s15 }
  0x12   : > { %s1557_s1 = sld [smem:[#allocation19_spill]] (!%p246_p3)  ;;  %s315_s23 = sand.u32 (!%p246_p3), 1, %s1031_s17  }
  0x13   : > { %s316_s24 = ssub.s32 (!%p246_p3), 0, %s315_s23  ;;  %p1034_p8 = scmp.ne.s32.totalorder (!%p246_p3), %s1301_s9, 0 }
  0x14   : > { %s1429_s16 = scalar_select %p287_p5, %s1305_s10, 1 }
  0x15   : > { %s1570_s24 = smov (!%p312_p6, %s316_s24), %s315_s23  ;;  %p1035_p9 = scmp.ne.s32.totalorder (!%p1034_p8), %s1305_s10, 0 }
  0x16   : > { %s1025_s18 = sshll.u32 %s1429_s16, 3  ;;  %s1115_s19 = sshll.u32 %s1429_s16, 6 }
  0x17   : > { %s1443_s25 = scalar_lea.vmem %s1545_s2, %s1115_s19  ;;  %s298_s28 = scalar_lea.vmem %s1546_s3, %s1429_s16 }
  0x18   : > { %s1438_s22 = scalar_lea.vmem %s1557_s1, %s1025_s18  ;;  %s1452_s15 = scalar_lea.vmem %s1547_s4, %s1115_s19 }
  0x19   : > { %s306_s20 = scalar_lea.vmem %s1548_s5, %s1429_s16  ;;  %s1461_s12 = scalar_lea.vmem %s1551_s8, %s1025_s18 }
  0x1a   : > { %p1033_p7 = scmp.lt.s32.totalorder %s1570_s24, 0  ;;  %s322_s26 = sadd.s32 2, %s1570_s24 }
  0x1b   : > { %328 = sbr.rel (%p1034_p8) target bundleno = 244 (0xf4), region = 44 }
  0x1c   : > { %s1572_s26 = smov (!%p1033_p7, %s322_s26), %s1570_s24 }
  0x1d   : > { %s1466_s27 = ssub.s32 1, %s1572_s26 }
  0x20   : > { %332 = sbr.rel (%p1035_p9) target bundleno = 54 (0x36), region = 48  ;;  %s1319_s0 = smov (!%p1035_p9), 0  }
  0x25 LB: >> { %s339_s1 = sld [smem:[#allocation9 + %s1321_s0]]  ;;  %s341_s19 = scalar_lea.vmem [#allocation2], %s1321_s0  ;;  %s1321_s0 = sphi %s1319_s0, %s338_s0  }
  0x2b   : >> { %s340_s18 = scalar_lea.vmem %s1549_s6, %s339_s1 }
  0x2c   : >> { %v356_v0 = vld [vmem:[%s340_s18] sm:$0x1] }
  0x2d   : >> { %357 = vst [vmem:[%s341_s19] sm:$0x1] %v356_v0 }
  0x2e   : >> { %375 = vsyncadd [#allocation7], 16  ;;  %s338_s0 = sadd.s32 1, %s1321_s0  }
  0x2f   : >> { %p335_p10 = scmp.ge.s32.totalorder %s338_s0, 64  }
  0x31   : > { %337 = sbr.rel (!%p335_p10) target bundleno = 37 (0x25), region = 294 }
  0x36 PF: > { %p1036_p11 = scmp.ne.s32.totalorder %s1305_s10, 1 }
  0x37   : > { %s1323_s29 = smov (!%p1036_p11), 0  }
  0x38   : > { %379 = sbr.rel (%p1036_p11) target bundleno = 78 (0x4e), region = 89 }
  0x3d LB: >> { %s386_s30 = sld [smem:[#allocation9 + %s1325_s29]]  ;;  %s388_s1 = scalar_lea.vmem [#allocation2], %s1325_s29  ;;  %s1325_s29 = sphi %s1323_s29, %s385_s29  }
  0x43   : >> { %s387_s24 = scalar_lea.vmem %s1550_s7, %s386_s30 }
  0x44   : >> { %v403_v1 = vld [vmem:[%s387_s24] sm:$0x1] }
  0x45   : >> { %404 = vst [vmem:[%s388_s1] sm:$0x1] %v403_v1 }
  0x46   : >> { %422 = vsyncadd [#allocation7], 16  ;;  %s385_s29 = sadd.s32 1, %s1325_s29  }
  0x47   : >> { %p382_p12 = scmp.ge.s32.totalorder %s385_s29, 64  }
  0x49   : > { %384 = sbr.rel (!%p382_p12) target bundleno = 61 (0x3d), region = 305 }
  0x4e PF: > { %v1124_v2 = vld [vmem:[%s1443_s25 + $0x38] sm:$0xff]  ;;  %v1123_v3 = vld [vmem:[%s1443_s25 + $0x30] sm:$0xff]  ;;  %v1122_v4 = vld [vmem:[%s1443_s25 + $0x28] sm:$0xff]  ;;  %vm509_vm0 = vcmask 7168   ;;  %v1340_v12 = vmov -inf   ;;  %v1341_v13 = vmov 0.0  }
  0x4f   : > { %493 = vmatpush.bf16.msra.mxu0 %v1124_v2  ;;  %v1121_v5 = vld [vmem:[%s1443_s25 + $0x20] sm:$0xff]  ;;  %v1120_v6 = vld [vmem:[%s1443_s25 + $0x18] sm:$0xff]  ;;  %v1119_v7 = vld [vmem:[%s1443_s25 + $0x10] sm:$0xff]  ;;  %510 = vst.msk [vmem:[#allocation4] sm:$0xff] %vm509_vm0, %v1340_v12 }
  0x50   : > { %v1118_v8 = vld [vmem:[%s1443_s25 + $0x8] sm:$0xff]  ;;  %v1117_v9 = vld [vmem:[%s1443_s25] sm:$0xff]  ;;  %511 = vst.msk [vmem:[#allocation5] sm:$0xff] %vm509_vm0, %v1341_v13 }
  0x51   : > { %v423_v10 = vld [vmem:[%s1438_s22] sm:$0xff]  ;;  %512 = vst [vmem:[#allocation6] sm:$0xff] %v1341_v13 }
  0x52   : > { %v424_v11 = vpack.c.bf16 %v423_v10, %v423_v10  ;;  %v1230_v14 = vld [vmem:[%s298_s28] ss:$0 sm:$0xff] }
  0x53   : > { %494 = vmatpush.bf16.msra.mxu0 %v1123_v3 }
  0x57   : > { %495 = vmatpush.bf16.msra.mxu0 %v1122_v4 }
  0x5b   : > { %496 = vmatpush.bf16.msra.mxu0 %v1121_v5 }
  0x5f   : > { %497 = vmatpush.bf16.msra.mxu0 %v1120_v6 }
  0x63   : > { %498 = vmatpush.bf16.msra.mxu0 %v1119_v7 }
  0x67   : > { %499 = vmatpush.bf16.msra.mxu0 %v1118_v8 }
  0x6b   : > { %500 = vmatpush.bf16.msra.mxu0 %v1117_v9 }
  0x6e   : > { %501 = vmatmul.bf16.vlgmr.msra.gmra.mxu0 %v424_v11 }
  0xeb   : > { %v502_v15 = vpop.f32.mrf.mxu0 }
  0xec   : > { %v503_v16 = vadd.f32 %v1230_v14, %v502_v15 }
  0xee   : > { %v506_v17 = vmul.f32 0.088388346, %v503_v16 }
  0xf0   : > { %v507_v18 = vpack.c.bf16 %v506_v17, %v506_v17 }
  0xf2   : > { %508 = vst [vmem:[#allocation3] sm:$0xf] %v507_v18 }
  0xf3   : > { %v504_v19 = vpop.f32.mrf.mxu0 }
  0xf4 PF: > { %s513_s22 = sadd.s32 1, %s1301_s9 }
  0xf5   : > { %p1069_p13 = scmp.ge.s32.totalorder %s513_s22, 2 }
  0xf6   : > { %p1070_p0 = scmp.ne.s32.totalorder (!%p1069_p13), %s1305_s10, 0 }
  0xf7   : > { %517 = sbr.rel (%p1069_p13) target bundleno = 304 (0x130), region = 130 }
  0xfc   : > { %521 = sbr.rel (%p1070_p0) target bundleno = 277 (0x115), region = 134  ;;  %s1327_s25 = smov (!%p1070_p0), 0  }
 0x101 LB: >> { %s1125_s28 = sshll.u32 %s1301_s9, 6  ;;  %s1072_s19 = sshll.u32 %s1466_s27, 6  ;;  %s1329_s25 = sphi %s1327_s25, %s527_s25  }
 0x102   : >> { %s1126_s17 = sadd.s32 64, %s1125_s28  ;;  %s532_s30 = sadd.s32 %s1329_s25, %s1072_s19 }
 0x103   : >> { %s529_s18 = sadd.s32 %s1329_s25, %s1126_s17  ;;  %s534_s1 = scalar_lea.vmem [#allocation2], %s532_s30 }
 0x104   : >> { %s530_s29 = sld [smem:[#allocation9 + %s529_s18]]  ;;  %s535_s0 = scalar_lea.sflag [#allocation7], %s1466_s27 }
 0x10a   : >> { %s533_s24 = scalar_lea.vmem %s1549_s6, %s530_s29 }
 0x10b   : >> { %v550_v20 = vld [vmem:[%s533_s24] sm:$0x1] }
 0x10c   : >> { %551 = vst [vmem:[%s534_s1] sm:$0x1] %v550_v20 }
 0x10d   : >> { %569 = vsyncadd %s535_s0, 16  ;;  %s527_s25 = sadd.s32 1, %s1329_s25  }
 0x10e   : >> { %p524_p1 = scmp.ge.s32.totalorder %s527_s25, 64  }
 0x110   : > { %526 = sbr.rel (!%p524_p1) target bundleno = 257 (0x101), region = 316 }
 0x115 PF: > { %p1073_p2 = scmp.ne.s32.totalorder %s1305_s10, 1 }
 0x116   : > { %s1331_s14 = smov (!%p1073_p2), 0  }
 0x117   : > { %573 = sbr.rel (%p1073_p2) target bundleno = 304 (0x130), region = 175 }
 0x11c LB: >> { %s1127_s22 = sshll.u32 %s1301_s9, 6  ;;  %s1075_s18 = sshll.u32 %s1466_s27, 6  ;;  %s1333_s14 = sphi %s1331_s14, %s579_s14  }
 0x11d   : >> { %s1128_s28 = sadd.s32 64, %s1127_s22  ;;  %s584_s29 = sadd.s32 %s1333_s14, %s1075_s18 }
 0x11e   : >> { %s581_s17 = sadd.s32 %s1333_s14, %s1128_s28  ;;  %s586_s10 = scalar_lea.vmem [#allocation2], %s584_s29 }
 0x11f   : >> { %s582_s19 = sld [smem:[#allocation9 + %s581_s17]]  ;;  %s587_s23 = scalar_lea.sflag [#allocation7], %s1466_s27 }
 0x125   : >> { %s585_s21 = scalar_lea.vmem %s1550_s7, %s582_s19 }
 0x126   : >> { %v602_v21 = vld [vmem:[%s585_s21] sm:$0x1] }
 0x127   : >> { %603 = vst [vmem:[%s586_s10] sm:$0x1] %v602_v21 }
 0x128   : >> { %621 = vsyncadd %s587_s23, 16  ;;  %s579_s14 = sadd.s32 1, %s1333_s14  }
 0x129   : >> { %p576_p3 = scmp.ge.s32.totalorder %s579_s14, 64  }
 0x12b   : > { %578 = sbr.rel (!%p576_p3) target bundleno = 284 (0x11c), region = 327 }
 0x130 PF: > { %s1335_s24 = smov 0  }
 0x131 LB: >> { %s628_s1 = scalar_lea.sflag [#allocation7], %s1572_s26  ;;  %s1337_s24 = sphi %s1335_s24, %s627_s24  }
 0x132   : >> { %1297 = dma.done.wait %s628_s1, 16 }
 0x133   : >> { %1298 = vsyncadd %s628_s1, 4294967280  ;;  %s627_s24 = sadd.s32 1, %s1337_s24  }
 0x134   : >> { %p624_p4 = scmp.ge.s32.totalorder %s627_s24, 64  }
 0x135   : > { %v1136_v22 = vld [vmem:[%s1452_s15 + $0x38] sm:$0xff] (%p624_p4)  ;;  %v1135_v23 = vld [vmem:[%s1452_s15 + $0x30] sm:$0xff] (%p624_p4)  ;;  %v1134_v24 = vld [vmem:[%s1452_s15 + $0x28] sm:$0xff] (%p624_p4)  ;;  %s1076_s27 = sshll.u32 (%p624_p4), %s1572_s26, 6  ;;  %vm762_vm1 = vcmask (%p624_p4), 523264   ;;  %v1342_v3 = vmov (%p624_p4), 0  }
 0x136   : > { %626 = sbr.rel (!%p624_p4) target bundleno = 305 (0x131), region = 338  ;;  %1137 = vmatpush.bf16.msra.mxu3 (%p624_p4), %v1136_v22  ;;  %714 = vmatpush.bf16.msra.mxu0 (%p624_p4), %v1136_v22  ;;  %v1133_v25 = vld [vmem:[%s1452_s15 + $0x20] sm:$0xff] (%p624_p4)  ;;  %v1132_v26 = vld [vmem:[%s1452_s15 + $0x18] sm:$0xff] (%p624_p4)  ;;  %v1131_v27 = vld [vmem:[%s1452_s15 + $0x10] sm:$0xff] (%p624_p4)  ;;  %s633_s0 = scalar_lea.vmem (%p624_p4), [#allocation2], %s1076_s27  ;;  %vm784_vm2 = vcmask (%p624_p4), 7168  }
 0x137   : > { %v1130_v28 = vld [vmem:[%s1452_s15 + $0x8] sm:$0xff] (%p624_p4)  ;;  %v1129_v29 = vld [vmem:[%s1452_s15] sm:$0xff] (%p624_p4)  ;;  %v640_v36 = vld [vmem:[%s633_s0 + $0x30] sm:$0xff] (%p624_p4)  ;;  %1231 = vset.pattern.permute.xlu0 (%p624_p4), %v1342_v3  ;;  %1232 = vset.pattern.permute.xlu1 (%p624_p4), %v1342_v3  ;;  %p1110_p5 = scmp.ne.s32.totalorder (%p624_p4), %s1301_s9, 1 }
 0x138   : > { %v638_v30 = vld [vmem:[%s633_s0 + $0x20] sm:$0xff] (%p624_p4)  ;;  %v639_v31 = vld [vmem:[%s633_s0 + $0x28] sm:$0xff] (%p624_p4)  ;;  %v641_v37 = vld [vmem:[%s633_s0 + $0x38] sm:$0xff] (%p624_p4) }
 0x139   : > { %v634_v32 = vld [vmem:[%s633_s0] sm:$0xff] (%p624_p4)  ;;  %v635_v33 = vld [vmem:[%s633_s0 + $0x8] sm:$0xff] (%p624_p4)  ;;  %v644_v34 = vpack.c.bf16 (%p624_p4), %v639_v31, %v638_v30  ;;  %v636_v38 = vld [vmem:[%s633_s0 + $0x10] sm:$0xff] (%p624_p4)  ;;  %v645_v40 = vpack.c.bf16 (%p624_p4), %v641_v37, %v640_v36 }
 0x13a   : > { %1138 = vmatpush.bf16.msra.mxu3 (%p624_p4), %v1135_v23  ;;  %715 = vmatpush.bf16.msra.mxu0 (%p624_p4), %v1135_v23  ;;  %v642_v35 = vpack.c.bf16 (%p624_p4), %v635_v33, %v634_v32  ;;  %v637_v39 = vld [vmem:[%s633_s0 + $0x18] sm:$0xff] (%p624_p4)  ;;  %v1233_v48 = vld [vmem:[%s306_s20] ss:$0 sm:$0xff] (%p624_p4)  ;;  %v761_v4 = vld [vmem:[#allocation4] sm:$0xff] (%p624_p4) }
 0x13b   : > { %v643_v41 = vpack.c.bf16 %v637_v39, %v636_v38  ;;  %v747_v63 = vld [vmem:[#allocation3] sm:$0xf]  ;;  %v778_v17 = vld [vmem:[#allocation5] sm:$0xff]  ;;  %v786_v21 = vld [vmem:[#allocation6] sm:$0xff] }
 0x13e   : > { %1139 = vmatpush.bf16.msra.mxu3 %v1134_v24  ;;  %716 = vmatpush.bf16.msra.mxu0 %v1134_v24 }
 0x142   : > { %1140 = vmatpush.bf16.msra.mxu3 %v1133_v25  ;;  %717 = vmatpush.bf16.msra.mxu0 %v1133_v25 }
 0x146   : > { %1141 = vmatpush.bf16.msra.mxu3 %v1132_v26  ;;  %718 = vmatpush.bf16.msra.mxu0 %v1132_v26 }
 0x14a   : > { %1142 = vmatpush.bf16.msra.mxu3 %v1131_v27  ;;  %719 = vmatpush.bf16.msra.mxu0 %v1131_v27 }
 0x14e   : > { %1143 = vmatpush.bf16.msra.mxu3 %v1130_v28  ;;  %720 = vmatpush.bf16.msra.mxu0 %v1130_v28 }
 0x152   : > { %1144 = vmatpush.bf16.msra.mxu3 %v1129_v29  ;;  %721 = vmatpush.bf16.msra.mxu0 %v1129_v29 }
 0x155   : > { %732 = vmatmul.bf16.vlgmr.msra.gmra.mxu3 %v644_v34  ;;  %722 = vmatmul.bf16.vlgmr.msra.gmra.mxu0 %v642_v35 }
 0x165   : > { %737 = vmatmul.bf16.gmra.mxu3 %v645_v40  ;;  %727 = vmatmul.bf16.gmra.mxu0 %v643_v41 }
 0x1d2   : > { %v723_v42 = vpop.f32.mrf.mxu0 }
 0x1d3   : > { %v724_v60 = vadd.f32 %v1233_v48, %v723_v42 }
 0x1d8   : > { %v733_v43 = vpop.f32.mrf.mxu3 }
 0x1d9   : > { %v734_v55 = vadd.f32 %v1233_v48, %v733_v43 }
 0x1da   : > { %v725_v44 = vpop.f32.mrf.mxu0 }
 0x1db   : > { %v726_v61 = vadd.f32 %v1233_v48, %v725_v44 }
 0x1dd   : > { %v743_v62 = vpack.c.bf16 %v726_v61, %v724_v60 }
 0x1e0   : > { %v735_v45 = vpop.f32.mrf.mxu3 }
 0x1e1   : > { %v736_v53 = vadd.f32 %v1233_v48, %v735_v45 }
 0x1e2   : > { %v728_v47 = vpop.f32.mrf.mxu0 }
 0x1e3   : > { %v729_v56 = vadd.f32 %v1233_v48, %v728_v47  ;;  %v745_v58 = vpack.c.bf16 %v736_v53, %v734_v55 }
 0x1e8   : > { %v738_v46 = vpop.f32.mrf.mxu3 }
 0x1e9   : > { %v739_v50 = vadd.f32 %v1233_v48, %v738_v46 }
 0x1ea   : > { %v730_v52 = vpop.f32.mrf.mxu0 }
 0x1eb   : > { %v731_v57 = vadd.f32 %v1233_v48, %v730_v52 }
 0x1ed   : > { %v744_v59 = vpack.c.bf16 %v731_v57, %v729_v56 }
 0x1f0   : > { %v740_v49 = vpop.f32.mrf.mxu3 }
 0x1f1   : > { %v741_v51 = vadd.f32 %v1233_v48, %v740_v49 }
 0x1f3   : > { %v746_v54 = vpack.c.bf16 %v741_v51, %v739_v50 }
 0x1f5   : > { %752 = vmatpush.bf16.xpose.msra.mxu1 %v746_v54  ;;  %801 = vmatpush.bf16.msra.mxu2 %v746_v54 }
 0x1f9   : > { %802 = vmatpush.bf16.msra.mxu2 %v745_v58 }
 0x1fd   : > { %753 = vmatpush.bf16.xpose.msra.mxu1 %v745_v58  ;;  %803 = vmatpush.bf16.msra.mxu2 %v744_v59 }
 0x201   : > { %804 = vmatpush.bf16.msra.mxu2 %v743_v62 }
 0x205   : > { %754 = vmatpush.bf16.xpose.msra.mxu1 %v744_v59 }
 0x20d   : > { %755 = vmatpush.bf16.xpose.msra.mxu1 %v743_v62 }
 0x214   : > { %756 = vmatmul.bf16.vlgmr.msra.gmra.mxu1 %v747_v63 }
 0x291   : > { %v757_v0 = vpop.f32.mrf.mxu1 }
 0x292   : > { %v763_v1 = vsel %vm762_vm1, %v757_v0, -inf }
 0x293   : > { %764 = vmax.xlane.f32.xlu0 %v763_v1 }
 0x299   : > { %v759_v2 = vpop.f32.mrf.mxu1 }
 0x306   : > { %v765_v5 = vpop.xlane.xlu0 %764 }
 0x307   : > { %v766_v6 = vmax.f32 %v761_v4, %v765_v5 }
 0x309   : > { %v767_v7 = vsub.f32 %v761_v4, %v766_v6  ;;  %812 = vst.msk [vmem:[#allocation4] sm:$0xff] %vm784_vm2, %v766_v6  ;;  %772 = vperm.xlu0 %1231, %v766_v6  }
 0x30b   : > { %v768_v8 = vmul.f32 1.442695, %v767_v7 }
 0x30d   : > { %1234 = vpow2.f32 %v768_v8 }
 0x313   : > { %v1235_v9 = vpop.eup %1234 }
 0x314   : > { %789 = vperm.xlu1 %1232, %v1235_v9   ;;  %v779_v18 = vmul.f32 %v1235_v9, %v778_v17 }
 0x37b   : > { %v773_v10 = vpop.permute.xlu0 %772 }
 0x37c   : > { %v775_v11 = vsub.f32 %v757_v0, %v773_v10 }
 0x37e   : > { %v776_v12 = vmul.f32 1.442695, %v775_v11 }
 0x380   : > { %1236 = vpow2.f32 %v776_v12 }
 0x386   : > { %v1237_v13 = vpop.eup %1236  ;;  %v790_v16 = vpop.permute.xlu1 %789 }
 0x387   : > { %v780_v14 = vsel %vm762_vm1, %v1237_v13, 0.0  ;;  %v793_v15 = vpack.c.bf16 %v1237_v13, %v1237_v13  ;;  %v792_v22 = vmul.f32 %v790_v16, %v786_v21 }
 0x388   : > { %781 = vadd.xlane.f32.xlu1 %v780_v14 }
 0x389   : > { %1109 = vmatmul.msk.bf16.vlgmr.msra.gmra.mxu2 %vm762_vm1, %v793_v15 }
 0x3fb   : > { %v782_v19 = vpop.xlane.xlu1 %781 }
 0x3fc   : > { %v783_v20 = vadd.f32 %v782_v19, %v779_v18 }
 0x3fe   : > { %785 = vst.msk [vmem:[#allocation5] sm:$0xff] %vm784_vm2, %v783_v20 }
 0x40c   : > { %v806_v23 = vpop.f32.mrf.mxu2 }
 0x40d   : > { %v810_v24 = vadd.f32 %v806_v23, %v792_v22 }
 0x40f   : > { %811 = vst [vmem:[#allocation6] sm:$0xff] %v810_v24 }
 0x410   : > { %816 = sbr.rel (%p1110_p5) target bundleno = 1193 (0x4a9), region = 223 }
 0x414   : > { %v808_v25 = vpop.f32.mrf.mxu2 }
 0x415   : > { %v818_v26 = vld [vmem:[#allocation5] sm:$0xff]  ;;  %v1343_v27 = vmov 0  }
 0x416   : > { %1238 = vset.pattern.permute.xlu0 %v1343_v27  ;;  %v817_v36 = vld [vmem:[#allocation6] sm:$0xff] }
 0x417   : > { %821 = vperm.xlu0 %1238, %v818_v26  }
 0x489   : > { %v822_v28 = vpop.permute.xlu0 %821 }
 0x48a   : > { %1239 = vrcp.f32 %v822_v28  ;;  %v835_v32 = vand.u32 2147483648, %v822_v28  ;;  %v833_v34 = vand.u32 2147483647, %v822_v28  ;;  %vm829_vm4 = vweird.f32 %v822_v28 }
 0x48c   : > { %v836_v37 = vor.u32 1.1754944e-38, %v835_v32  ;;  %vm834_vm6 = vcmp.eq.f32.partialorder %v833_v34, 8.507059e+37 }
 0x490   : > { %v1240_v29 = vpop.eup %1239 }
 0x491   : > { %v825_v30 = vmul.f32 %v1240_v29, %v822_v28  ;;  %vm830_vm3 = vweird.f32 %v1240_v29 }
 0x492   : > { %vm831_vm5 = vmor %vm829_vm4, %vm830_vm3 }
 0x493   : > { %v826_v31 = vsub.f32 1.0, %v825_v30 }
 0x495   : > { %v827_v33 = vmul.f32 %v1240_v29, %v826_v31 }
 0x497   : > { %v828_v35 = vadd.f32 %v1240_v29, %v827_v33 }
 0x499   : > { %v832_v38 = vsel %vm831_vm5, %v1240_v29, %v828_v35 }
 0x49a   : > { %v837_v39 = vsel %vm834_vm6, %v836_v37, %v832_v38 }
 0x49b   : > { %v838_v40 = vmul.f32 %v837_v39, %v817_v36 }
 0x49d   : > { %v839_v41 = vmul.f32 14.285714, %v838_v40 }
 0x49f   : > { %v840_v42 = vmul.f32 1.442695, %v839_v41 }
 0x4a1   : > { %1241 = vpow2.f32 %v840_v42 }
 0x4a7   : > { %v1242_v43 = vpop.eup %1241 }
 0x4a8   : > { %842 = vst [vmem:[%s1461_s12] sm:$0xff] %v1242_v43 }
 0x4a9 PF: > { %s26_s13 = sadd.s32 1, %s1317_s13   ;;  %s1558_s10 = sld [smem:[#allocation16_spill]] }
 0x4aa   : > { %p23_p6 = scmp.ge.s32.totalorder %s26_s13, 6   ;;  %s1559_s16 = sld [smem:[#allocation17_spill]] }
 0x4ab   : > { %s1560_s12 = sld [smem:[#allocation18_spill]]  ;;  %s1561_s9 = smov %s1309_s11 }
 0x4ac   :  { %25 = sbr.rel (!%p23_p6) target bundleno = 9 (0x9), region = 349 }
 0x4b0   : > { %s1562_s11 = smov %s1559_s16 }
 0x4b1   :  { %862 = vsyncmov [#allocation7] }
 0x4b4   :  { %s863_s20 = vpop.sfrf %862 }
 0x4b5   :  { %p1113_p7 = scmp.ne.s32.totalorder %s863_s20, 0 }
 0x4b7   :  { %867 = shalt.err (%p1113_p7)  }
 0x4b8   :  { %869 = vsyncmov [#allocation7 + $0x1] }
 0x4bb   :  { %s870_s14 = vpop.sfrf %869 }
 0x4bc   :  { %p1114_p8 = scmp.ne.s32.totalorder %s870_s14, 0 }
 0x4be   :  { %874 = shalt.err (%p1114_p8)  }

// kernel: contrast_memory_forward.3
= control target key start
LH: loop header
LB: loop body
LE: loop exit
PB: predicated region body
PF: predicated region fallthrough
CT: control target
= control target key end

     0   :  { %13 = vsyncpa [#allocation6], 0  ;;  %s2085_s0 = inlined_call_operand.vmem [shape: s32[8], index: 0, kind: input, shape index: {}]   ;;  %s2086_s1 = inlined_call_operand.vmem [shape: s32[8], index: 1, kind: input, shape index: {}]   ;;  %s2087_s2 = inlined_call_operand.vmem [shape: f32[8,128], index: 2, kind: input, shape index: {}]   ;;  %s2088_s3 = inlined_call_operand.vmem [shape: f32[8,128], index: 3, kind: input, shape index: {}]   ;;  %s2089_s4 = inlined_call_operand.vmem [shape: f32[64,128], index: 4, kind: input, shape index: {}, may-alias: {4,6}]   ;;  %s2090_s5 = inlined_call_operand.vmem [shape: f32[64,128], index: 5, kind: input, shape index: {}, may-alias: {5,7}]   ;;  %s2091_s6 = inlined_call_operand.vmem [shape: f32[64,128], index: 6, kind: output, shape index: {0}, may-alias: {4,6}]   ;;  %s2092_s7 = inlined_call_operand.vmem [shape: f32[64,128], index: 7, kind: output, shape index: {1}, may-alias: {5,7}]  }
   0x1   :  { %s20_s26 = sshll.u32 %s2085_s0, 4  ;;  %s21_s26 = int_to_ptr.vmem [resolvable:$true] %s20_s26 }
   0x2   :  { %14 = vsyncpa [#allocation8], 0  ;;  %s29_s29 = sshll.u32 %s2086_s1, 4  ;;  %s1855_s30 = smov [#allocation5]   ;;  %s30_s29 = int_to_ptr.vmem [resolvable:$true] %s29_s29 }
   0x3   :  { %23 = dma.vmem_to_smem %s21_s26, 16, %s1855_s30, [#allocation6]  }
   0x4   :  { %s1856_s8 = smov [#allocation7]  }
   0x5   :  { %32 = dma.vmem_to_smem %s30_s29, 16, %s1856_s8, [#allocation8]  }
   0x6   :  { %1755 = dma.done.wait [#allocation6], 16  }
   0x7   :  { %1756 = vsyncadd [#allocation6], 4294967280 }
   0x8   :  { %1757 = dma.done.wait [#allocation8], 16  }
   0x9   :  { %1758 = vsyncadd [#allocation8], 4294967280 }
   0xa   :  { %45 = sfence }
   0xb   :  { %s1903_s9 = sld [smem:[#allocation5]] }
   0xc   :  { %s1905_s0 = sld [smem:[#allocation5 + $0x1]] }
   0xd   :  { %s1907_s10 = sld [smem:[#allocation5 + $0x2]] }
   0xe   :  { %s1909_s11 = sld [smem:[#allocation5 + $0x3]] }
   0xf   :  { %s1911_s1 = sld [smem:[#allocation5 + $0x4]] }
  0x10   :  { %s1913_s12 = sld [smem:[#allocation5 + $0x5]] }
  0x11   :  { %s1915_s13 = sld [smem:[#allocation5 + $0x6]]  ;;  %s62_s16 = scalar_lea.vmem %s2089_s4, %s1903_s9 }
  0x12   :  { %s1921_s17 = sld [smem:[#allocation5 + $0x7]]  ;;  %v77_v0 = vld [vmem:[%s62_s16] sm:$0x1] }
  0x13   :  { %s1923_s18 = sld [smem:[#allocation7]]  ;;  %78 = vst [vmem:[#allocation2] sm:$0x1] %v77_v0 }
  0x14   :  { %s1925_s19 = sld [smem:[#allocation7 + $0x1]] }
  0x15   :  { %s1927_s20 = sld [smem:[#allocation7 + $0x2]] }
  0x16   :  { %s1929_s21 = sld [smem:[#allocation7 + $0x3]] }
  0x17   :  { %s1931_s22 = sld [smem:[#allocation7 + $0x4]] }
  0x18   :  { %s1933_s23 = sld [smem:[#allocation7 + $0x5]] }
  0x19   :  { %s1935_s24 = sld [smem:[#allocation7 + $0x6]] }
  0x1a   :  { %s1937_s25 = sld [smem:[#allocation7 + $0x7]] }
  0x1b   :  { %96 = vsyncadd [#allocation4], 16  ;;  %s97_s28 = scalar_lea.vmem %s2090_s5, %s1903_s9 }
  0x1c   :  { %v113_v1 = vld [vmem:[%s97_s28] sm:$0x1] }
  0x1d   :  { %114 = vst [vmem:[#allocation3] sm:$0x1] %v113_v1 }
  0x1e   :  { %132 = vsyncadd [#allocation4 + $0x8], 16  ;;  %s133_s8 = scalar_lea.vmem %s2089_s4, %s1905_s0 }
  0x1f   :  { %v150_v2 = vld [vmem:[%s133_s8] sm:$0x1] }
  0x20   :  { %151 = vst [vmem:[#allocation2 + $0x1] sm:$0x1] %v150_v2 }
  0x21   :  { %169 = vsyncadd [#allocation4 + $0x1], 16  ;;  %s170_s16 = scalar_lea.vmem %s2090_s5, %s1905_s0 }
  0x22   :  { %v187_v3 = vld [vmem:[%s170_s16] sm:$0x1] }
  0x23   :  { %188 = vst [vmem:[#allocation3 + $0x1] sm:$0x1] %v187_v3 }
  0x24   :  { %206 = vsyncadd [#allocation4 + $0x9], 16  ;;  %s207_s28 = scalar_lea.vmem %s2089_s4, %s1907_s10 }
  0x25   :  { %v224_v4 = vld [vmem:[%s207_s28] sm:$0x1] }
  0x26   :  { %225 = vst [vmem:[#allocation2 + $0x2] sm:$0x1] %v224_v4 }
  0x27   :  { %243 = vsyncadd [#allocation4 + $0x2], 16  ;;  %s244_s8 = scalar_lea.vmem %s2090_s5, %s1907_s10 }
  0x28   :  { %v261_v5 = vld [vmem:[%s244_s8] sm:$0x1] }
  0x29   :  { %262 = vst [vmem:[#allocation3 + $0x2] sm:$0x1] %v261_v5 }
  0x2a   :  { %280 = vsyncadd [#allocation4 + $0xa], 16  ;;  %s281_s16 = scalar_lea.vmem %s2089_s4, %s1909_s11 }
  0x2b   :  { %v298_v6 = vld [vmem:[%s281_s16] sm:$0x1] }
  0x2c   :  { %299 = vst [vmem:[#allocation2 + $0x3] sm:$0x1] %v298_v6 }
  0x2d   :  { %317 = vsyncadd [#allocation4 + $0x3], 16  ;;  %s318_s28 = scalar_lea.vmem %s2090_s5, %s1909_s11 }
  0x2e   :  { %v335_v7 = vld [vmem:[%s318_s28] sm:$0x1] }
  0x2f   :  { %336 = vst [vmem:[#allocation3 + $0x3] sm:$0x1] %v335_v7 }
  0x30   :  { %354 = vsyncadd [#allocation4 + $0xb], 16  ;;  %s355_s8 = scalar_lea.vmem %s2089_s4, %s1911_s1 }
  0x31   :  { %v372_v8 = vld [vmem:[%s355_s8] sm:$0x1] }
  0x32   :  { %373 = vst [vmem:[#allocation2 + $0x4] sm:$0x1] %v372_v8 }
  0x33   :  { %391 = vsyncadd [#allocation4 + $0x4], 16  ;;  %s392_s16 = scalar_lea.vmem %s2090_s5, %s1911_s1 }
  0x34   :  { %v409_v9 = vld [vmem:[%s392_s16] sm:$0x1] }
  0x35   :  { %410 = vst [vmem:[#allocation3 + $0x4] sm:$0x1] %v409_v9 }
  0x36   :  { %428 = vsyncadd [#allocation4 + $0xc], 16  ;;  %s429_s28 = scalar_lea.vmem %s2089_s4, %s1913_s12 }
  0x37   :  { %v446_v10 = vld [vmem:[%s429_s28] sm:$0x1] }
  0x38   :  { %447 = vst [vmem:[#allocation2 + $0x5] sm:$0x1] %v446_v10 }
  0x39   :  { %465 = vsyncadd [#allocation4 + $0x5], 16  ;;  %s466_s8 = scalar_lea.vmem %s2090_s5, %s1913_s12 }
  0x3a   :  { %v483_v11 = vld [vmem:[%s466_s8] sm:$0x1] }
  0x3b   :  { %484 = vst [vmem:[#allocation3 + $0x5] sm:$0x1] %v483_v11 }
  0x3c   :  { %502 = vsyncadd [#allocation4 + $0xd], 16  ;;  %s503_s16 = scalar_lea.vmem %s2089_s4, %s1915_s13 }
  0x3d   :  { %v520_v12 = vld [vmem:[%s503_s16] sm:$0x1] }
  0x3e   :  { %521 = vst [vmem:[#allocation2 + $0x6] sm:$0x1] %v520_v12 }
  0x3f   :  { %539 = vsyncadd [#allocation4 + $0x6], 16  ;;  %s540_s28 = scalar_lea.vmem %s2090_s5, %s1915_s13 }
  0x40   :  { %v557_v13 = vld [vmem:[%s540_s28] sm:$0x1] }
  0x41   :  { %558 = vst [vmem:[#allocation3 + $0x6] sm:$0x1] %v557_v13 }
  0x42   :  { %576 = vsyncadd [#allocation4 + $0xe], 16  ;;  %s577_s8 = scalar_lea.vmem %s2089_s4, %s1921_s17 }
  0x43   :  { %v594_v14 = vld [vmem:[%s577_s8] sm:$0x1] }
  0x44   :  { %595 = vst [vmem:[#allocation2 + $0x7] sm:$0x1] %v594_v14 }
  0x45   :  { %613 = vsyncadd [#allocation4 + $0x7], 16  ;;  %s614_s16 = scalar_lea.vmem %s2090_s5, %s1921_s17 }
  0x46   :  { %v631_v15 = vld [vmem:[%s614_s16] sm:$0x1] }
  0x47   :  { %632 = vst [vmem:[#allocation3 + $0x7] sm:$0x1] %v631_v15 }
  0x48   :  { %650 = vsyncadd [#allocation4 + $0xf], 16 }
  0x49   :  { %1759 = dma.done.wait [#allocation4], 16 }
  0x4a   :  { %1760 = vsyncadd [#allocation4], 4294967280 }
  0x4b   :  { %1761 = dma.done.wait [#allocation4 + $0x8], 16 }
  0x4c   :  { %1762 = vsyncadd [#allocation4 + $0x8], 4294967280 }
  0x4d   :  { %1763 = dma.done.wait [#allocation4 + $0x1], 16 }
  0x4e   :  { %1764 = vsyncadd [#allocation4 + $0x1], 4294967280 }
  0x4f   :  { %1765 = dma.done.wait [#allocation4 + $0x9], 16 }
  0x50   :  { %1766 = vsyncadd [#allocation4 + $0x9], 4294967280 }
  0x51   :  { %1767 = dma.done.wait [#allocation4 + $0x2], 16 }
  0x52   :  { %1768 = vsyncadd [#allocation4 + $0x2], 4294967280 }
  0x53   :  { %1769 = dma.done.wait [#allocation4 + $0xa], 16 }
  0x54   :  { %1770 = vsyncadd [#allocation4 + $0xa], 4294967280 }
  0x55   :  { %1771 = dma.done.wait [#allocation4 + $0x3], 16 }
  0x56   :  { %1772 = vsyncadd [#allocation4 + $0x3], 4294967280 }
  0x57   :  { %1773 = dma.done.wait [#allocation4 + $0xb], 16 }
  0x58   :  { %1774 = vsyncadd [#allocation4 + $0xb], 4294967280 }
  0x59   :  { %1775 = dma.done.wait [#allocation4 + $0x4], 16 }
  0x5a   :  { %1776 = vsyncadd [#allocation4 + $0x4], 4294967280 }
  0x5b   :  { %1777 = dma.done.wait [#allocation4 + $0xc], 16 }
  0x5c   :  { %1778 = vsyncadd [#allocation4 + $0xc], 4294967280 }
  0x5d   :  { %1779 = dma.done.wait [#allocation4 + $0x5], 16 }
  0x5e   :  { %1780 = vsyncadd [#allocation4 + $0x5], 4294967280 }
  0x5f   :  { %1781 = dma.done.wait [#allocation4 + $0xd], 16 }
  0x60   :  { %1782 = vsyncadd [#allocation4 + $0xd], 4294967280 }
  0x61   :  { %1783 = dma.done.wait [#allocation4 + $0x6], 16 }
  0x62   :  { %1784 = vsyncadd [#allocation4 + $0x6], 4294967280 }
  0x63   :  { %1785 = dma.done.wait [#allocation4 + $0xe], 16 }
  0x64   :  { %1786 = vsyncadd [#allocation4 + $0xe], 4294967280 }
  0x65   :  { %1787 = dma.done.wait [#allocation4 + $0x7], 16 }
  0x66   :  { %1788 = vsyncadd [#allocation4 + $0x7], 4294967280 }
  0x67   :  { %1789 = dma.done.wait [#allocation4 + $0xf], 16 }
  0x68   :  { %1790 = vsyncadd [#allocation4 + $0xf], 4294967280  ;;  %v684_v16 = vld [vmem:[#allocation2] sm:$0xff]  ;;  %v689_v18 = vld [vmem:[#allocation3] sm:$0xff]  ;;  %p1661_p0 = scmp.ne.s32.totalorder %s1923_s18, 1 }
  0x69   :  { %v686_v17 = vld [vmem:[%s2087_s2] sm:$0xff]  ;;  %v685_v19 = vmul.f32 0.5, %v684_v16  ;;  %v690_v23 = vmul.f32 0.5, %v689_v18  ;;  %s730_s28 = scalar_lea.vmem (!%p1661_p0), %s2091_s6, %s1903_s9 }
  0x6a   :  { %v687_v20 = vmul.f32 0.5, %v686_v17  ;;  %v691_v21 = vld [vmem:[%s2088_s3] sm:$0xff] }
  0x6b   :  { %v692_v24 = vmul.f32 0.5, %v691_v21 }
  0x6c   :  { %v688_v22 = vadd.f32 %v687_v20, %v685_v19 }
  0x6d   :  { %v693_v26 = vadd.f32 %v692_v24, %v690_v23 }
  0x6e   :  { %v694_v25 = vmul.f32 %v688_v22, %v688_v22 }
  0x6f   :  { %v710_v27 = vmul.f32 %v693_v26, %v693_v26 }
  0x70   :  { %695 = vadd.xlane.f32.xlu0 %v694_v25 }
  0x78   :  { %711 = vadd.xlane.f32.xlu0 %v710_v27 }
  0xe3   :  { %v696_v28 = vpop.xlane.xlu0 %695 }
  0xe4   :  { %v697_v29 = vadd.f32 1e-12, %v696_v28 }
  0xe6   :  { %1727 = vrsqrt.f32 %v697_v29  ;;  %vm704_vm1 = vweird.f32 %v697_v29 }
  0xeb   :  { %v712_v30 = vpop.xlane.xlu0 %711 }
  0xec   :  { %v1728_v31 = vpop.eup %1727  ;;  %v713_v32 = vadd.f32 1e-12, %v712_v30 }
  0xed   :  { %v699_v33 = vmul.f32 %v1728_v31, %v697_v29  ;;  %vm705_vm0 = vweird.f32 %v1728_v31 }
  0xee   :  { %1729 = vrsqrt.f32 %v713_v32  ;;  %vm706_vm2 = vmor %vm704_vm1, %vm705_vm0  ;;  %vm720_vm4 = vweird.f32 %v713_v32 }
  0xef   :  { %v700_v34 = vmul.f32 %v1728_v31, %v699_v33 }
  0xf1   :  { %v701_v35 = vmul.f32 0.5, %v700_v34 }
  0xf3   :  { %v702_v36 = vsub.f32 1.5, %v701_v35 }
  0xf4   :  { %v1730_v37 = vpop.eup %1729 }
  0xf5   :  { %v703_v38 = vmul.f32 %v1728_v31, %v702_v36  ;;  %v715_v39 = vmul.f32 %v1730_v37, %v713_v32  ;;  %vm721_vm3 = vweird.f32 %v1730_v37 }
  0xf6   :  { %vm722_vm5 = vmor %vm720_vm4, %vm721_vm3 }
  0xf7   :  { %v707_v40 = vsel %vm706_vm2, %v1728_v31, %v703_v38  ;;  %v716_v41 = vmul.f32 %v1730_v37, %v715_v39 }
  0xf8   :  { %v708_v42 = vmul.f32 %v707_v40, %v688_v22 }
  0xf9   :  { %v717_v43 = vmul.f32 0.5, %v716_v41 }
  0xfa   :  { %709 = vst [vmem:[#allocation2] sm:$0xff] %v708_v42 }
  0xfb   :  { %v718_v44 = vsub.f32 1.5, %v717_v43 }
  0xfd   :  { %v719_v45 = vmul.f32 %v1730_v37, %v718_v44 }
  0xfe   :  { %729 = sbr.rel (%p1661_p0) target bundleno = 268 (0x10c), region = 509 }
  0xff   :  { %v723_v46 = vsel %vm722_vm5, %v1730_v37, %v719_v45 }
 0x100   :  { %v724_v47 = vmul.f32 %v723_v46, %v693_v26 }
 0x102   :  { %725 = vst [vmem:[#allocation3] sm:$0xff] %v724_v47 }
 0x103   :  { %v745_v48 = vld [vmem:[#allocation2] sm:$0x1] }
 0x104   :  { %746 = vst [vmem:[%s730_s28] sm:$0x1] %v745_v48 }
 0x105   :  { %764 = vsyncadd [#allocation4], 16  ;;  %s765_s8 = scalar_lea.vmem %s2092_s7, %s1903_s9 }
 0x109   :  { %v780_v49 = vld [vmem:[#allocation3] sm:$0x1] }
 0x10a   :  { %781 = vst [vmem:[%s765_s8] sm:$0x1] %v780_v49 }
 0x10b   :  { %799 = vsyncadd [#allocation4 + $0x8], 16 }
 0x10c PF:  { %p1662_p1 = scmp.ne.s32.totalorder %s1925_s19, 1 }
 0x10d   :  { %s804_s16 = scalar_lea.vmem (!%p1662_p1), %s2091_s6, %s1905_s0 }
 0x10e   :  { %803 = sbr.rel (%p1662_p1) target bundleno = 280 (0x118), region = 573 }
 0x113   :  { %v819_v50 = vld [vmem:[#allocation2 + $0x1] sm:$0x1] }
 0x114   :  { %820 = vst [vmem:[%s804_s16] sm:$0x1] %v819_v50 }
 0x115   :  { %838 = vsyncadd [#allocation4 + $0x1], 16  ;;  %s839_s9 = scalar_lea.vmem %s2092_s7, %s1905_s0  ;;  %v854_v51 = vld [vmem:[#allocation3 + $0x1] sm:$0x1] }
 0x116   :  { %855 = vst [vmem:[%s839_s9] sm:$0x1] %v854_v51 }
 0x117   :  { %873 = vsyncadd [#allocation4 + $0x9], 16 }
 0x118 PF:  { %p1663_p2 = scmp.ne.s32.totalorder %s1927_s20, 1 }
 0x119   :  { %s878_s2 = scalar_lea.vmem (!%p1663_p2), %s2091_s6, %s1907_s10 }
 0x11a   :  { %877 = sbr.rel (%p1663_p2) target bundleno = 292 (0x124), region = 637 }
 0x11f   :  { %v893_v52 = vld [vmem:[#allocation2 + $0x2] sm:$0x1] }
 0x120   :  { %894 = vst [vmem:[%s878_s2] sm:$0x1] %v893_v52 }
 0x121   :  { %912 = vsyncadd [#allocation4 + $0x2], 16  ;;  %s913_s0 = scalar_lea.vmem %s2092_s7, %s1907_s10  ;;  %v928_v53 = vld [vmem:[#allocation3 + $0x2] sm:$0x1] }
 0x122   :  { %929 = vst [vmem:[%s913_s0] sm:$0x1] %v928_v53 }
 0x123   :  { %947 = vsyncadd [#allocation4 + $0xa], 16 }
 0x124 PF:  { %p1664_p3 = scmp.ne.s32.totalorder %s1929_s21, 1 }
 0x125   :  { %s952_s8 = scalar_lea.vmem (!%p1664_p3), %s2091_s6, %s1909_s11 }
 0x126   :  { %951 = sbr.rel (%p1664_p3) target bundleno = 304 (0x130), region = 701 }
 0x12b   :  { %v967_v54 = vld [vmem:[#allocation2 + $0x3] sm:$0x1] }
 0x12c   :  { %968 = vst [vmem:[%s952_s8] sm:$0x1] %v967_v54 }
 0x12d   :  { %986 = vsyncadd [#allocation4 + $0x3], 16  ;;  %s987_s10 = scalar_lea.vmem %s2092_s7, %s1909_s11  ;;  %v1002_v55 = vld [vmem:[#allocation3 + $0x3] sm:$0x1] }
 0x12e   :  { %1003 = vst [vmem:[%s987_s10] sm:$0x1] %v1002_v55 }
 0x12f   :  { %1021 = vsyncadd [#allocation4 + $0xb], 16 }
 0x130 PF:  { %p1665_p4 = scmp.ne.s32.totalorder %s1931_s22, 1 }
 0x131   :  { %s1026_s5 = scalar_lea.vmem (!%p1665_p4), %s2091_s6, %s1911_s1 }
 0x132   :  { %1025 = sbr.rel (%p1665_p4) target bundleno = 316 (0x13c), region = 765 }
 0x137   :  { %v1041_v56 = vld [vmem:[#allocation2 + $0x4] sm:$0x1] }
 0x138   :  { %1042 = vst [vmem:[%s1026_s5] sm:$0x1] %v1041_v56 }
 0x139   :  { %1060 = vsyncadd [#allocation4 + $0x4], 16  ;;  %s1061_s11 = scalar_lea.vmem %s2092_s7, %s1911_s1  ;;  %v1076_v57 = vld [vmem:[#allocation3 + $0x4] sm:$0x1] }
 0x13a   :  { %1077 = vst [vmem:[%s1061_s11] sm:$0x1] %v1076_v57 }
 0x13b   :  { %1095 = vsyncadd [#allocation4 + $0xc], 16 }
 0x13c PF:  { %p1666_p5 = scmp.ne.s32.totalorder %s1933_s23, 1 }
 0x13d   :  { %s1100_s3 = scalar_lea.vmem (!%p1666_p5), %s2091_s6, %s1913_s12 }
 0x13e   :  { %1099 = sbr.rel (%p1666_p5) target bundleno = 328 (0x148), region = 829 }
 0x143   :  { %v1115_v58 = vld [vmem:[#allocation2 + $0x5] sm:$0x1] }
 0x144   :  { %1116 = vst [vmem:[%s1100_s3] sm:$0x1] %v1115_v58 }
 0x145   :  { %1134 = vsyncadd [#allocation4 + $0x5], 16  ;;  %s1135_s1 = scalar_lea.vmem %s2092_s7, %s1913_s12  ;;  %v1150_v59 = vld [vmem:[#allocation3 + $0x5] sm:$0x1] }
 0x146   :  { %1151 = vst [vmem:[%s1135_s1] sm:$0x1] %v1150_v59 }
 0x147   :  { %1169 = vsyncadd [#allocation4 + $0xd], 16 }
 0x148 PF:  { %p1667_p6 = scmp.ne.s32.totalorder %s1935_s24, 1 }
 0x149   :  { %s1174_s8 = scalar_lea.vmem (!%p1667_p6), %s2091_s6, %s1915_s13 }
 0x14a   :  { %1173 = sbr.rel (%p1667_p6) target bundleno = 340 (0x154), region = 893 }
 0x14f   :  { %v1189_v60 = vld [vmem:[#allocation2 + $0x6] sm:$0x1] }
 0x150   :  { %1190 = vst [vmem:[%s1174_s8] sm:$0x1] %v1189_v60 }
 0x151   :  { %1208 = vsyncadd [#allocation4 + $0x6], 16  ;;  %s1209_s12 = scalar_lea.vmem %s2092_s7, %s1915_s13  ;;  %v1224_v61 = vld [vmem:[#allocation3 + $0x6] sm:$0x1] }
 0x152   :  { %1225 = vst [vmem:[%s1209_s12] sm:$0x1] %v1224_v61 }
 0x153   :  { %1243 = vsyncadd [#allocation4 + $0xe], 16 }
 0x154 PF:  { %p1668_p7 = scmp.ne.s32.totalorder %s1937_s25, 1 }
 0x155   :  { %s1248_s4 = scalar_lea.vmem (!%p1668_p7), %s2091_s6, %s1921_s17 }
 0x156   :  { %1247 = sbr.rel (%p1668_p7) target bundleno = 352 (0x160), region = 957 }
 0x15b   :  { %v1263_v62 = vld [vmem:[#allocation2 + $0x7] sm:$0x1] }
 0x15c   :  { %1264 = vst [vmem:[%s1248_s4] sm:$0x1] %v1263_v62 }
 0x15d   :  { %1282 = vsyncadd [#allocation4 + $0x7], 16  ;;  %s1283_s13 = scalar_lea.vmem %s2092_s7, %s1921_s17  ;;  %v1298_v63 = vld [vmem:[#allocation3 + $0x7] sm:$0x1] }
 0x15e   :  { %1299 = vst [vmem:[%s1283_s13] sm:$0x1] %v1298_v63 }
 0x15f   :  { %1317 = vsyncadd [#allocation4 + $0xf], 16 }
 0x160 PF:  { %p1717_p8 = scmp.eq.s32.totalorder %s1923_s18, 1 }
 0x162   :  { %1792 = dma.done.wait (%p1717_p8), [#allocation4], 16 }
 0x163   :  { %1794 = vsyncadd (%p1717_p8), [#allocation4], 4294967280 }
 0x164   :  { %1796 = dma.done.wait (%p1717_p8), [#allocation4 + $0x8], 16 }
 0x165   :  { %1798 = vsyncadd (%p1717_p8), [#allocation4 + $0x8], 4294967280  ;;  %p1718_p9 = scmp.eq.s32.totalorder %s1925_s19, 1 }
 0x167   :  { %1800 = dma.done.wait (%p1718_p9), [#allocation4 + $0x1], 16 }
 0x168   :  { %1802 = vsyncadd (%p1718_p9), [#allocation4 + $0x1], 4294967280 }
 0x169   :  { %1804 = dma.done.wait (%p1718_p9), [#allocation4 + $0x9], 16 }
 0x16a   :  { %1806 = vsyncadd (%p1718_p9), [#allocation4 + $0x9], 4294967280  ;;  %p1719_p10 = scmp.eq.s32.totalorder %s1927_s20, 1 }
 0x16c   :  { %1808 = dma.done.wait (%p1719_p10), [#allocation4 + $0x2], 16 }
 0x16d   :  { %1810 = vsyncadd (%p1719_p10), [#allocation4 + $0x2], 4294967280 }
 0x16e   :  { %1812 = dma.done.wait (%p1719_p10), [#allocation4 + $0xa], 16 }
 0x16f   :  { %1814 = vsyncadd (%p1719_p10), [#allocation4 + $0xa], 4294967280  ;;  %p1720_p11 = scmp.eq.s32.totalorder %s1929_s21, 1 }
 0x171   :  { %1816 = dma.done.wait (%p1720_p11), [#allocation4 + $0x3], 16 }
 0x172   :  { %1818 = vsyncadd (%p1720_p11), [#allocation4 + $0x3], 4294967280 }
 0x173   :  { %1820 = dma.done.wait (%p1720_p11), [#allocation4 + $0xb], 16 }
 0x174   :  { %1822 = vsyncadd (%p1720_p11), [#allocation4 + $0xb], 4294967280  ;;  %p1721_p12 = scmp.eq.s32.totalorder %s1931_s22, 1 }
 0x176   :  { %1824 = dma.done.wait (%p1721_p12), [#allocation4 + $0x4], 16 }
 0x177   :  { %1826 = vsyncadd (%p1721_p12), [#allocation4 + $0x4], 4294967280 }
 0x178   :  { %1828 = dma.done.wait (%p1721_p12), [#allocation4 + $0xc], 16 }
 0x179   :  { %1830 = vsyncadd (%p1721_p12), [#allocation4 + $0xc], 4294967280  ;;  %p1722_p13 = scmp.eq.s32.totalorder %s1933_s23, 1 }
 0x17b   :  { %1832 = dma.done.wait (%p1722_p13), [#allocation4 + $0x5], 16 }
 0x17c   :  { %1834 = vsyncadd (%p1722_p13), [#allocation4 + $0x5], 4294967280 }
 0x17d   :  { %1836 = dma.done.wait (%p1722_p13), [#allocation4 + $0xd], 16 }
 0x17e   :  { %1838 = vsyncadd (%p1722_p13), [#allocation4 + $0xd], 4294967280  ;;  %p1723_p0 = scmp.eq.s32.totalorder %s1935_s24, 1 }
 0x180   :  { %1840 = dma.done.wait (%p1723_p0), [#allocation4 + $0x6], 16 }
 0x181   :  { %1842 = vsyncadd (%p1723_p0), [#allocation4 + $0x6], 4294967280 }
 0x182   :  { %1844 = dma.done.wait (%p1723_p0), [#allocation4 + $0xe], 16 }
 0x183   :  { %1846 = vsyncadd (%p1723_p0), [#allocation4 + $0xe], 4294967280  ;;  %p1724_p1 = scmp.eq.s32.totalorder %s1937_s25, 1 }
 0x185   :  { %1848 = dma.done.wait (%p1724_p1), [#allocation4 + $0x7], 16 }
 0x186   :  { %1850 = vsyncadd (%p1724_p1), [#allocation4 + $0x7], 4294967280 }
 0x187   :  { %1852 = dma.done.wait (%p1724_p1), [#allocation4 + $0xf], 16 }
 0x188   :  { %1854 = vsyncadd (%p1724_p1), [#allocation4 + $0xf], 4294967280 }
 0x189   :  { %1374 = vsyncpa [#allocation6], 1 }
 0x18a   :  { %1375 = vsyncpa [#allocation8], 1 }
 0x18b   :  { %1376 = vsyncmov [#allocation4] }
 0x18e   :  { %s1377_s6 = vpop.sfrf %1376 }
 0x18f   :  { %p1677_p2 = scmp.ne.s32.totalorder %s1377_s6, 0 }
 0x191   :  { %1381 = shalt.err (%p1677_p2)  }
 0x192   :  { %1383 = vsyncmov [#allocation4 + $0x1] }
 0x195   :  { %s1384_s7 = vpop.sfrf %1383 }
 0x196   :  { %p1678_p3 = scmp.ne.s32.totalorder %s1384_s7, 0 }
 0x198   :  { %1388 = shalt.err (%p1678_p3)  }
 0x199   :  { %1390 = vsyncmov [#allocation4 + $0x2] }
 0x19c   :  { %s1391_s17 = vpop.sfrf %1390 }
 0x19d   :  { %p1679_p4 = scmp.ne.s32.totalorder %s1391_s17, 0 }
 0x19f   :  { %1395 = shalt.err (%p1679_p4)  }
 0x1a0   :  { %1397 = vsyncmov [#allocation4 + $0x3] }
 0x1a3   :  { %s1398_s18 = vpop.sfrf %1397 }
 0x1a4   :  { %p1680_p5 = scmp.ne.s32.totalorder %s1398_s18, 0 }
 0x1a6   :  { %1402 = shalt.err (%p1680_p5)  }
 0x1a7   :  { %1404 = vsyncmov [#allocation4 + $0x4] }
 0x1aa   :  { %s1405_s19 = vpop.sfrf %1404 }
 0x1ab   :  { %p1681_p6 = scmp.ne.s32.totalorder %s1405_s19, 0 }
 0x1ad   :  { %1409 = shalt.err (%p1681_p6)  }
 0x1ae   :  { %1411 = vsyncmov [#allocation4 + $0x5] }
 0x1b1   :  { %s1412_s20 = vpop.sfrf %1411 }
 0x1b2   :  { %p1682_p7 = scmp.ne.s32.totalorder %s1412_s20, 0 }
 0x1b4   :  { %1416 = shalt.err (%p1682_p7)  }
 0x1b5   :  { %1418 = vsyncmov [#allocation4 + $0x6] }
 0x1b8   :  { %s1419_s21 = vpop.sfrf %1418 }
 0x1b9   :  { %p1683_p8 = scmp.ne.s32.totalorder %s1419_s21, 0 }
 0x1bb   :  { %1423 = shalt.err (%p1683_p8)  }
 0x1bc   :  { %1425 = vsyncmov [#allocation4 + $0x7] }
 0x1bf   :  { %s1426_s22 = vpop.sfrf %1425 }
 0x1c0   :  { %p1684_p9 = scmp.ne.s32.totalorder %s1426_s22, 0 }
 0x1c2   :  { %1430 = shalt.err (%p1684_p9)  }
 0x1c3   :  { %1432 = vsyncmov [#allocation4 + $0x8] }
 0x1c6   :  { %s1433_s23 = vpop.sfrf %1432 }
 0x1c7   :  { %p1685_p10 = scmp.ne.s32.totalorder %s1433_s23, 0 }
 0x1c9   :  { %1437 = shalt.err (%p1685_p10)  }
 0x1ca   :  { %1439 = vsyncmov [#allocation4 + $0x9] }
 0x1cd   :  { %s1440_s24 = vpop.sfrf %1439 }
 0x1ce   :  { %p1686_p11 = scmp.ne.s32.totalorder %s1440_s24, 0 }
 0x1d0   :  { %1444 = shalt.err (%p1686_p11)  }
 0x1d1   :  { %1446 = vsyncmov [#allocation4 + $0xa] }
 0x1d4   :  { %s1447_s25 = vpop.sfrf %1446 }
 0x1d5   :  { %p1687_p12 = scmp.ne.s32.totalorder %s1447_s25, 0 }
 0x1d7   :  { %1451 = shalt.err (%p1687_p12)  }
 0x1d8   :  { %1453 = vsyncmov [#allocation4 + $0xb] }
 0x1db   :  { %s1454_s26 = vpop.sfrf %1453 }
 0x1dc   :  { %p1688_p13 = scmp.ne.s32.totalorder %s1454_s26, 0 }
 0x1de   :  { %1458 = shalt.err (%p1688_p13)  }
 0x1df   :  { %1460 = vsyncmov [#allocation4 + $0xc] }
 0x1e2   :  { %s1461_s11 = vpop.sfrf %1460 }
 0x1e3   :  { %p1689_p0 = scmp.ne.s32.totalorder %s1461_s11, 0 }
 0x1e5   :  { %1465 = shalt.err (%p1689_p0)  }
 0x1e6   :  { %1467 = vsyncmov [#allocation4 + $0xd] }
 0x1e9   :  { %s1468_s27 = vpop.sfrf %1467 }
 0x1ea   :  { %p1690_p1 = scmp.ne.s32.totalorder %s1468_s27, 0 }
 0x1ec   :  { %1472 = shalt.err (%p1690_p1)  }
 0x1ed   :  { %1474 = vsyncmov [#allocation4 + $0xe] }
 0x1f0   :  { %s1475_s2 = vpop.sfrf %1474 }
 0x1f1   :  { %p1691_p2 = scmp.ne.s32.totalorder %s1475_s2, 0 }
 0x1f3   :  { %1479 = shalt.err (%p1691_p2)  }
 0x1f4   :  { %1481 = vsyncmov [#allocation4 + $0xf] }
 0x1f7   :  { %s1482_s3 = vpop.sfrf %1481 }
 0x1f8   :  { %p1692_p3 = scmp.ne.s32.totalorder %s1482_s3, 0 }
 0x1fa   :  { %1486 = shalt.err (%p1692_p3)  }

</bundles_post_ra>
